<compile_context>
chip_gen: v5e
topology: v5e:2x2
jax: 0.10.0
libtpu: 0.0.40
codegen_flags: <defaults>
</compile_context>

<pallas_src>
import jax
import jax.numpy as jnp
from jax import lax
from jax.experimental import pallas as pl
from jax.experimental.pallas import tpu as pltpu

EPS = 1e-5
PADL = 8  # aligned left-pad column inside the conv scratch (multiple of 8)
# Set to jnp.bfloat16 on v6e/v7x for ~3x MXU throughput (loosen the test tol).
MXU_DTYPE = jnp.float32


# --------------------------------------------------------------------------- #
# Stage 1: y1 = Conv3x3_pad1(ReLU(x)) + b1, plus per-image (sum, sumsq) of y1. #
# --------------------------------------------------------------------------- #
def _stage1_kernel(x_ref, w1_ref, b1_ref, y1_ref, st_ref, xpad_ref):
    _, H, W, C = x_ref.shape
    HW = H * W

    # Zero-filled padded copy of ReLU(x) in VMEM (ReLU(0)=0, so padding
    # commutes with ReLU).  Interior lives at [1:1+H, PADL:PADL+W]; the real
    # zero-pad columns are PADL-1 and PADL+W.
    xpad_ref[...] = jnp.zeros(xpad_ref.shape, xpad_ref.dtype)
    xpad_ref[1:1 + H, PADL:PADL + W, :] = jnp.maximum(x_ref[0], 0.0)
    xp = xpad_ref[...]                                   # (H+2, W+2*PADL, C)

    # im2col along kx only: concat the three kx-shifted views on channels.
    slab = jnp.concatenate(
        [xp[:, PADL - 1 + kx:PADL - 1 + kx + W, :] for kx in range(3)],
        axis=-1)                                          # (H+2, W, 3C)
    slab = slab.reshape((H + 2) * W, 3 * C).astype(MXU_DTYPE)

    # The three ky taps are aligned row windows of the flattened slab:
    # output pixel (y, x)  <-  slab row (y + ky) * W + x.
    acc = jnp.dot(slab[0:HW], w1_ref[0],
                  preferred_element_type=jnp.float32) + b1_ref[...]
    acc = acc + jnp.dot(slab[W:W + HW], w1_ref[1],
                        preferred_element_type=jnp.float32)
    acc = acc + jnp.dot(slab[2 * W:2 * W + HW], w1_ref[2],
                        preferred_element_type=jnp.float32)

    y1_ref[0] = acc
    st_ref[0, 0:1, :] = jnp.sum(acc, axis=0, keepdims=True)
    st_ref[0, 1:2, :] = jnp.sum(acc * acc, axis=0, keepdims=True)


# --------------------------------------------------------------------------- #
# Stage 2: y2 = Conv1x1(ReLU(BN1(y1))) + b2, plus per-image (sum, sumsq) of y2 #
# --------------------------------------------------------------------------- #
def _stage2_kernel(y1_ref, sc1_ref, sh1_ref, w2_ref, b2_ref, y2_ref, st_ref):
    h = jnp.maximum(y1_ref[0] * sc1_ref[...] + sh1_ref[...], 0.0)
    y2 = jnp.dot(h.astype(MXU_DTYPE), w2_ref[...],
                 preferred_element_type=jnp.float32) + b2_ref[...]
    y2_ref[0] = y2
    st_ref[0, 0:1, :] = jnp.sum(y2, axis=0, keepdims=True)
    st_ref[0, 1:2, :] = jnp.sum(y2 * y2, axis=0, keepdims=True)


# --------------------------------------------------------------------------- #
# Stage 3: out = x + BN2(y2)   (residual uses the original, unpadded x).      #
# --------------------------------------------------------------------------- #
def _stage3_kernel(x_ref, y2_ref, sc2_ref, sh2_ref, o_ref):
    o_ref[0] = x_ref[0] + y2_ref[0] * sc2_ref[...] + sh2_ref[...]


def _bn_fold(stats, count, gamma, beta):
    """Fold batch statistics + (gamma, beta) into per-channel scale/shift."""
    s = jnp.sum(stats, axis=0)                        # (2, C)
    mean = s[0] / count
    var = jnp.maximum(s[1] / count - mean * mean, 0.0)
    scale = gamma[0] * lax.rsqrt(var + EPS)
    shift = beta[0] - mean * scale
    return scale[None, :], shift[None, :]             # (1, C) each


def init_params(key, dim):
    k1, k2, k3, k4 = jax.random.split(key, 4)
    scale1 = 1.0 / jnp.sqrt(dim * 9.0)
    scale2 = 1.0 / jnp.sqrt(dim * 1.0)
    return dict(
        w1=jax.random.uniform(k1, (3, 3, dim, dim), jnp.float32, -scale1, scale1),
        b1=jax.random.uniform(k2, (1, dim), jnp.float32, -scale1, scale1),
        g1=jnp.ones((1, dim), jnp.float32),
        be1=jnp.zeros((1, dim), jnp.float32),
        w2=jax.random.uniform(k3, (1, 1, dim, dim), jnp.float32, -scale2, scale2),
        b2=jax.random.uniform(k4, (1, dim), jnp.float32, -scale2, scale2),
        g2=jnp.ones((1, dim), jnp.float32),
        be2=jnp.zeros((1, dim), jnp.float32),
    )


def resblock_forward(x_nchw, params):
    """x_nchw: (N, C, H, W) float32 -> (N, C, H, W) float32."""
    N, C, H, W = x_nchw.shape
    HW = H * W
    count = N * HW

    # One layout change at the module boundary (hoist for a stack of blocks).
    x = jnp.transpose(x_nchw, (0, 2, 3, 1))           # (N, H, W, C)
    xf = x.reshape(N, HW, C)                          # metadata-only reshape

    w1 = params["w1"].reshape(3, 3 * C, C).astype(MXU_DTYPE)   # (ky, kx*Cin, Cout)
    w2 = params["w2"][0, 0].astype(MXU_DTYPE)                  # (Cin, Cout)

    cp = pltpu.CompilerParams(dimension_semantics=("parallel",),
                              vmem_limit_bytes=32 * 1024 * 1024)

    row_spec = pl.BlockSpec((1, HW, C), lambda n: (n, 0, 0))
    st_spec = pl.BlockSpec((1, 2, C), lambda n: (n, 0, 0))
    vec_spec = pl.BlockSpec((1, C), lambda n: (0, 0))

    # Pass 1: conv3x3(ReLU(x)) + b1, with per-image sum / sumsq.
    y1, st1 = pl.pallas_call(
        _stage1_kernel,
        grid=(N,),
        in_specs=[pl.BlockSpec((1, H, W, C), lambda n: (n, 0, 0, 0)),
                  pl.BlockSpec((3, 3 * C, C), lambda n: (0, 0, 0)),
                  vec_spec],
        out_specs=[row_spec, st_spec],
        out_shape=[jax.ShapeDtypeStruct((N, HW, C), jnp.float32),
                   jax.ShapeDtypeStruct((N, 2, C), jnp.float32)],
        scratch_shapes=[pltpu.VMEM((H + 2, W + 2 * PADL, C), jnp.float32)],
        compiler_params=cp,
    )(x, w1, params["b1"])

    scale1, shift1 = _bn_fold(st1, count, params["g1"], params["be1"])

    # Pass 2: BN1 -> ReLU -> conv1x1 + b2, with per-image sum / sumsq.
    y2, st2 = pl.pallas_call(
        _stage2_kernel,
        grid=(N,),
        in_specs=[row_spec, vec_spec, vec_spec,
                  pl.BlockSpec((C, C), lambda n: (0, 0)),
                  vec_spec],
        out_specs=[row_spec, st_spec],
        out_shape=[jax.ShapeDtypeStruct((N, HW, C), jnp.float32),
                   jax.ShapeDtypeStruct((N, 2, C), jnp.float32)],
        compiler_params=cp,
    )(y1, scale1, shift1, w2, params["b2"])

    scale2, shift2 = _bn_fold(st2, count, params["g2"], params["be2"])

    # Pass 3: BN2 + residual add against the original (unpadded) x.
    out = pl.pallas_call(
        _stage3_kernel,
        grid=(N,),
        in_specs=[row_spec, row_spec, vec_spec, vec_spec],
        out_specs=row_spec,
        out_shape=jax.ShapeDtypeStruct((N, HW, C), jnp.float32),
        compiler_params=cp,
    )(xf, y2, scale2, shift2)

    out = out.reshape(N, H, W, C)
    return jnp.transpose(out, (0, 3, 1, 2))           # -> NCHW


def resblock_reference(x_nchw, params):
    """Pure-JAX reference (same math, no Pallas) for a correctness check."""
    x = jnp.transpose(x_nchw, (0, 2, 3, 1))
    h = jnp.maximum(x, 0.0)
    h = lax.conv_general_dilated(
        h, params["w1"], window_strides=(1, 1), padding=((1, 1), (1, 1)),
        dimension_numbers=("NHWC", "HWIO", "NHWC")) + params["b1"][0]

    def bn(t, g, b):
        m = jnp.mean(t, axis=(0, 1, 2), keepdims=True)
        v = jnp.mean((t - m) ** 2, axis=(0, 1, 2), keepdims=True)
        return (t - m) * lax.rsqrt(v + EPS) * g[0] + b[0]

    h = bn(h, params["g1"], params["be1"])
    h = jnp.maximum(h, 0.0)
    h = lax.conv_general_dilated(
        h, params["w2"], window_strides=(1, 1), padding="VALID",
        dimension_numbers=("NHWC", "HWIO", "NHWC")) + params["b2"][0]
    h = bn(h, params["g2"], params["be2"])
    return jnp.transpose(x + h, (0, 3, 1, 2))


if __name__ == "__main__":
    key = jax.random.PRNGKey(0)
    kx_, kp = jax.random.split(key)

    # Small but representative VQ-VAE ResBlock shape; C=128 keeps every block
    # lane-dense and W=16 keeps reshapes/slices 8-sublane aligned.
    N, C, H, W = 2, 128, 16, 16
    x = jax.random.normal(kx_, (N, C, H, W), jnp.float32)
    params = init_params(kp, C)

    out = jax.block_until_ready(jax.jit(resblock_forward)(x, params))
    ref = resblock_reference(x, params)

    assert out.shape == (N, C, H, W)
    assert bool(jnp.all(jnp.isfinite(out)))
    err = float(jnp.max(jnp.abs(out - ref)))
    assert jnp.allclose(out, ref, rtol=1e-3, atol=1e-3), f"mismatch: {err}"

    print("KERNEL_OK")
</pallas_src>

<mosaic_0001>
module attributes {stable_mosaic.version = 11 : i64} {
  func.func @_stage2_kernel(%arg0: i32, %arg1: memref<1x256x128xf32, #tpu.memory_space<vmem>>, %arg2: memref<1x128xf32, #tpu.memory_space<vmem>>, %arg3: memref<1x128xf32, #tpu.memory_space<vmem>>, %arg4: memref<128x128xf32, #tpu.memory_space<vmem>>, %arg5: memref<1x128xf32, #tpu.memory_space<vmem>>, %arg6: memref<1x256x128xf32, #tpu.memory_space<vmem>>, %arg7: memref<1x2x128xf32, #tpu.memory_space<vmem>>) attributes {dimension_semantics = [#tpu.dimension_semantics<parallel>], iteration_bounds = array<i64: 2>, scalar_prefetch = 0 : i64, scratch_operands = 0 : i64, tpu.core_type = #tpu.core_type<tc>, window_params = [{transform_indices = @transform_0, window_bounds = array<i64: 1, 256, 128>}, {pipeline_mode = #tpu.pipeline_mode<synchronous>, transform_indices = @transform_1, window_bounds = array<i64: 1, 128>}, {pipeline_mode = #tpu.pipeline_mode<synchronous>, transform_indices = @transform_2, window_bounds = array<i64: 1, 128>}, {pipeline_mode = #tpu.pipeline_mode<synchronous>, transform_indices = @transform_3, window_bounds = array<i64: 128, 128>}, {pipeline_mode = #tpu.pipeline_mode<synchronous>, transform_indices = @transform_4, window_bounds = array<i64: 1, 128>}, {transform_indices = @transform_5, window_bounds = array<i64: 1, 256, 128>}, {transform_indices = @transform_6, window_bounds = array<i64: 1, 2, 128>}]} {
    %c0 = arith.constant 0 : index
    %c0_0 = arith.constant 0 : index
    %c0_1 = arith.constant 0 : index
    %0 = vector.load %arg1[%c0, %c0_0, %c0_1] : memref<1x256x128xf32, #tpu.memory_space<vmem>>, vector<1x256x128xf32>
    %1 = vector.shape_cast %0 : vector<1x256x128xf32> to vector<256x128xf32>
    %c0_2 = arith.constant 0 : index
    %c0_3 = arith.constant 0 : index
    %2 = vector.load %arg2[%c0_2, %c0_3] : memref<1x128xf32, #tpu.memory_space<vmem>>, vector<1x128xf32>
    %3 = vector.broadcast %2 : vector<1x128xf32> to vector<256x128xf32>
    %4 = arith.mulf %1, %3 : vector<256x128xf32>
    %c0_4 = arith.constant 0 : index
    %c0_5 = arith.constant 0 : index
    %5 = vector.load %arg3[%c0_4, %c0_5] : memref<1x128xf32, #tpu.memory_space<vmem>>, vector<1x128xf32>
    %6 = vector.broadcast %5 : vector<1x128xf32> to vector<256x128xf32>
    %7 = arith.addf %4, %6 : vector<256x128xf32>
    %cst = arith.constant 0.000000e+00 : f32
    %8 = vector.broadcast %cst : f32 to vector<256x128xf32>
    %9 = arith.maximumf %7, %8 : vector<256x128xf32>
    %c0_6 = arith.constant 0 : index
    %c0_7 = arith.constant 0 : index
    %10 = vector.load %arg4[%c0_6, %c0_7] : memref<128x128xf32, #tpu.memory_space<vmem>>, vector<128x128xf32>
    %cst_8 = arith.constant dense<0.000000e+00> : vector<256x128xf32>
    %11 = tpu.matmul %9, %10, %cst_8 {dimension_numbers = #tpu.dot_dimension_numbers<[1], [0], [0], [1], [0, 0, 1, 1], [], []>} : vector<256x128xf32>, vector<128x128xf32>, vector<256x128xf32> -> vector<256x128xf32>
    %c0_9 = arith.constant 0 : index
    %c0_10 = arith.constant 0 : index
    %12 = vector.load %arg5[%c0_9, %c0_10] : memref<1x128xf32, #tpu.memory_space<vmem>>, vector<1x128xf32>
    %13 = vector.broadcast %12 : vector<1x128xf32> to vector<256x128xf32>
    %14 = arith.addf %11, %13 : vector<256x128xf32>
    %c0_11 = arith.constant 0 : index
    %c0_12 = arith.constant 0 : index
    %c0_13 = arith.constant 0 : index
    %15 = vector.load %arg6[%c0_11, %c0_12, %c0_13] : memref<1x256x128xf32, #tpu.memory_space<vmem>>, vector<1x256x128xf32>
    %16 = vector.shape_cast %15 : vector<1x256x128xf32> to vector<256x128xf32>
    %17 = vector.shape_cast %14 : vector<256x128xf32> to vector<1x256x128xf32>
    tpu.vector_store %arg6[%c0_11, %c0_12, %c0_13], %17 {strides = array<i32>} : memref<1x256x128xf32, #tpu.memory_space<vmem>>, vector<1x256x128xf32>,
    %cst_14 = arith.constant dense<0.000000e+00> : vector<128xf32>
    %18 = vector.multi_reduction <add>, %14, %cst_14 [0] : vector<256x128xf32> to vector<128xf32>
    %19 = vector.shape_cast %18 : vector<128xf32> to vector<1x128xf32>
    %c0_15 = arith.constant 0 : index
    %c0_16 = arith.constant 0 : index
    %c0_17 = arith.constant 0 : index
    %20 = vector.load %arg7[%c0_15, %c0_16, %c0_17] : memref<1x2x128xf32, #tpu.memory_space<vmem>>, vector<1x1x128xf32>
    %21 = vector.shape_cast %20 : vector<1x1x128xf32> to vector<1x128xf32>
    %22 = vector.shape_cast %19 : vector<1x128xf32> to vector<1x1x128xf32>
    tpu.vector_store %arg7[%c0_15, %c0_16, %c0_17], %22 {strides = array<i32>} : memref<1x2x128xf32, #tpu.memory_space<vmem>>, vector<1x1x128xf32>,
    %23 = arith.mulf %14, %14 : vector<256x128xf32>
    %cst_18 = arith.constant dense<0.000000e+00> : vector<128xf32>
    %24 = vector.multi_reduction <add>, %23, %cst_18 [0] : vector<256x128xf32> to vector<128xf32>
    %25 = vector.shape_cast %24 : vector<128xf32> to vector<1x128xf32>
    %c0_19 = arith.constant 0 : index
    %c1 = arith.constant 1 : index
    %c0_20 = arith.constant 0 : index
    %26 = vector.load %arg7[%c0_19, %c1, %c0_20] : memref<1x2x128xf32, #tpu.memory_space<vmem>>, vector<1x1x128xf32>
    %27 = vector.shape_cast %26 : vector<1x1x128xf32> to vector<1x128xf32>
    %28 = vector.shape_cast %25 : vector<1x128xf32> to vector<1x1x128xf32>
    tpu.vector_store %arg7[%c0_19, %c1, %c0_20], %28 {strides = array<i32>} : memref<1x2x128xf32, #tpu.memory_space<vmem>>, vector<1x1x128xf32>,
    return
  }
  func.func @transform_0(%arg0: i32) -> (i32, i32, i32) {
    %c0_i32 = arith.constant 0 : i32
    %c0_i32_0 = arith.constant 0 : i32
    %c0_i32_1 = arith.constant 0 : i32
    return %arg0, %c0_i32, %c0_i32_0 : i32, i32, i32
  }
  func.func @transform_1(%arg0: i32) -> (i32, i32) {
    %c0_i32 = arith.constant 0 : i32
    %c0_i32_0 = arith.constant 0 : i32
    %c0_i32_1 = arith.constant 0 : i32
    return %c0_i32, %c0_i32_0 : i32, i32
  }
  func.func @transform_2(%arg0: i32) -> (i32, i32) {
    %c0_i32 = arith.constant 0 : i32
    %c0_i32_0 = arith.constant 0 : i32
    %c0_i32_1 = arith.constant 0 : i32
    return %c0_i32, %c0_i32_0 : i32, i32
  }
  func.func @transform_3(%arg0: i32) -> (i32, i32) {
    %c0_i32 = arith.constant 0 : i32
    %c0_i32_0 = arith.constant 0 : i32
    %c0_i32_1 = arith.constant 0 : i32
    return %c0_i32, %c0_i32_0 : i32, i32
  }
  func.func @transform_4(%arg0: i32) -> (i32, i32) {
    %c0_i32 = arith.constant 0 : i32
    %c0_i32_0 = arith.constant 0 : i32
    %c0_i32_1 = arith.constant 0 : i32
    return %c0_i32, %c0_i32_0 : i32, i32
  }
  func.func @transform_5(%arg0: i32) -> (i32, i32, i32) {
    %c0_i32 = arith.constant 0 : i32
    %c0_i32_0 = arith.constant 0 : i32
    %c0_i32_1 = arith.constant 0 : i32
    return %arg0, %c0_i32, %c0_i32_0 : i32, i32, i32
  }
  func.func @transform_6(%arg0: i32) -> (i32, i32, i32) {
    %c0_i32 = arith.constant 0 : i32
    %c0_i32_0 = arith.constant 0 : i32
    %c0_i32_1 = arith.constant 0 : i32
    return %arg0, %c0_i32, %c0_i32_0 : i32, i32, i32
  }
}

module attributes {stable_mosaic.version = 11 : i64} {
  func.func @_stage1_kernel(%arg0: i32, %arg1: memref<1x16x16x128xf32, #tpu.memory_space<vmem>>, %arg2: memref<3x384x128xf32, #tpu.memory_space<vmem>>, %arg3: memref<1x128xf32, #tpu.memory_space<vmem>>, %arg4: memref<1x256x128xf32, #tpu.memory_space<vmem>>, %arg5: memref<1x2x128xf32, #tpu.memory_space<vmem>>, %arg6: memref<18x32x128xf32, #tpu.memory_space<vmem>>) attributes {dimension_semantics = [#tpu.dimension_semantics<parallel>], iteration_bounds = array<i64: 2>, scalar_prefetch = 0 : i64, scratch_operands = 1 : i64, tpu.core_type = #tpu.core_type<tc>, window_params = [{transform_indices = @transform_0, window_bounds = array<i64: 1, 16, 16, 128>}, {pipeline_mode = #tpu.pipeline_mode<synchronous>, transform_indices = @transform_1, window_bounds = array<i64: 3, 384, 128>}, {pipeline_mode = #tpu.pipeline_mode<synchronous>, transform_indices = @transform_2, window_bounds = array<i64: 1, 128>}, {transform_indices = @transform_3, window_bounds = array<i64: 1, 256, 128>}, {transform_indices = @transform_4, window_bounds = array<i64: 1, 2, 128>}]} {
    %cst = arith.constant 0.000000e+00 : f32
    %0 = vector.broadcast %cst : f32 to vector<18x32x128xf32>
    %c0 = arith.constant 0 : index
    %c0_0 = arith.constant 0 : index
    %c0_1 = arith.constant 0 : index
    %1 = vector.load %arg6[%c0, %c0_0, %c0_1] : memref<18x32x128xf32, #tpu.memory_space<vmem>>, vector<18x32x128xf32>
    tpu.vector_store %arg6[%c0, %c0_0, %c0_1], %0 {strides = array<i32>} : memref<18x32x128xf32, #tpu.memory_space<vmem>>, vector<18x32x128xf32>,
    %c0_2 = arith.constant 0 : index
    %c0_3 = arith.constant 0 : index
    %c0_4 = arith.constant 0 : index
    %c0_5 = arith.constant 0 : index
    %2 = vector.load %arg1[%c0_2, %c0_3, %c0_4, %c0_5] : memref<1x16x16x128xf32, #tpu.memory_space<vmem>>, vector<1x16x16x128xf32>
    %3 = vector.shape_cast %2 : vector<1x16x16x128xf32> to vector<16x16x128xf32>
    %cst_6 = arith.constant 0.000000e+00 : f32
    %4 = vector.broadcast %cst_6 : f32 to vector<16x16x128xf32>
    %5 = arith.maximumf %3, %4 : vector<16x16x128xf32>
    %c1 = arith.constant 1 : index
    %c8 = arith.constant 8 : index
    %c0_7 = arith.constant 0 : index
    %6 = vector.load %arg6[%c1, %c8, %c0_7] : memref<18x32x128xf32, #tpu.memory_space<vmem>>, vector<16x16x128xf32>
    tpu.vector_store %arg6[%c1, %c8, %c0_7], %5 {strides = array<i32>} : memref<18x32x128xf32, #tpu.memory_space<vmem>>, vector<16x16x128xf32>,
    %c0_8 = arith.constant 0 : index
    %c0_9 = arith.constant 0 : index
    %c0_10 = arith.constant 0 : index
    %7 = vector.load %arg6[%c0_8, %c0_9, %c0_10] : memref<18x32x128xf32, #tpu.memory_space<vmem>>, vector<18x32x128xf32>
    %8 = vector.extract_strided_slice %7 {offsets = [0, 7, 0], sizes = [18, 16, 128], strides = [1, 1, 1]} : vector<18x32x128xf32> to vector<18x16x128xf32>
    %9 = vector.extract_strided_slice %7 {offsets = [0, 8, 0], sizes = [18, 16, 128], strides = [1, 1, 1]} : vector<18x32x128xf32> to vector<18x16x128xf32>
    %10 = vector.extract_strided_slice %7 {offsets = [0, 9, 0], sizes = [18, 16, 128], strides = [1, 1, 1]} : vector<18x32x128xf32> to vector<18x16x128xf32>
    %11 = tpu.concatenate %8, %9, %10 in 2 : vector<18x16x128xf32>, vector<18x16x128xf32>, vector<18x16x128xf32> -> vector<18x16x384xf32>
    %12 = vector.shape_cast %11 : vector<18x16x384xf32> to vector<288x384xf32>
    %13 = vector.extract_strided_slice %12 {offsets = [0, 0], sizes = [256, 384], strides = [1, 1]} : vector<288x384xf32> to vector<256x384xf32>
    %c0_11 = arith.constant 0 : index
    %c0_12 = arith.constant 0 : index
    %c0_13 = arith.constant 0 : index
    %14 = vector.load %arg2[%c0_11, %c0_12, %c0_13] : memref<3x384x128xf32, #tpu.memory_space<vmem>>, vector<1x384x128xf32>
    %15 = vector.shape_cast %14 : vector<1x384x128xf32> to vector<384x128xf32>
    %cst_14 = arith.constant dense<0.000000e+00> : vector<256x128xf32>
    %16 = tpu.matmul %13, %15, %cst_14 {dimension_numbers = #tpu.dot_dimension_numbers<[1], [0], [0], [1], [0, 0, 1, 1], [], []>} : vector<256x384xf32>, vector<384x128xf32>, vector<256x128xf32> -> vector<256x128xf32>
    %c0_15 = arith.constant 0 : index
    %c0_16 = arith.constant 0 : index
    %17 = vector.load %arg3[%c0_15, %c0_16] : memref<1x128xf32, #tpu.memory_space<vmem>>, vector<1x128xf32>
    %18 = vector.broadcast %17 : vector<1x128xf32> to vector<256x128xf32>
    %19 = arith.addf %16, %18 : vector<256x128xf32>
    %20 = vector.extract_strided_slice %12 {offsets = [16, 0], sizes = [256, 384], strides = [1, 1]} : vector<288x384xf32> to vector<256x384xf32>
    %c1_17 = arith.constant 1 : index
    %c0_18 = arith.constant 0 : index
    %c0_19 = arith.constant 0 : index
    %21 = vector.load %arg2[%c1_17, %c0_18, %c0_19] : memref<3x384x128xf32, #tpu.memory_space<vmem>>, vector<1x384x128xf32>
    %22 = vector.shape_cast %21 : vector<1x384x128xf32> to vector<384x128xf32>
    %cst_20 = arith.constant dense<0.000000e+00> : vector<256x128xf32>
    %23 = tpu.matmul %20, %22, %cst_20 {dimension_numbers = #tpu.dot_dimension_numbers<[1], [0], [0], [1], [0, 0, 1, 1], [], []>} : vector<256x384xf32>, vector<384x128xf32>, vector<256x128xf32> -> vector<256x128xf32>
    %24 = arith.addf %19, %23 : vector<256x128xf32>
    %25 = vector.extract_strided_slice %12 {offsets = [32, 0], sizes = [256, 384], strides = [1, 1]} : vector<288x384xf32> to vector<256x384xf32>
    %c2 = arith.constant 2 : index
    %c0_21 = arith.constant 0 : index
    %c0_22 = arith.constant 0 : index
    %26 = vector.load %arg2[%c2, %c0_21, %c0_22] : memref<3x384x128xf32, #tpu.memory_space<vmem>>, vector<1x384x128xf32>
    %27 = vector.shape_cast %26 : vector<1x384x128xf32> to vector<384x128xf32>
    %cst_23 = arith.constant dense<0.000000e+00> : vector<256x128xf32>
    %28 = tpu.matmul %25, %27, %cst_23 {dimension_numbers = #tpu.dot_dimension_numbers<[1], [0], [0], [1], [0, 0, 1, 1], [], []>} : vector<256x384xf32>, vector<384x128xf32>, vector<256x128xf32> -> vector<256x128xf32>
    %29 = arith.addf %24, %28 : vector<256x128xf32>
    %c0_24 = arith.constant 0 : index
    %c0_25 = arith.constant 0 : index
    %c0_26 = arith.constant 0 : index
    %30 = vector.load %arg4[%c0_24, %c0_25, %c0_26] : memref<1x256x128xf32, #tpu.memory_space<vmem>>, vector<1x256x128xf32>
    %31 = vector.shape_cast %30 : vector<1x256x128xf32> to vector<256x128xf32>
    %32 = vector.shape_cast %29 : vector<256x128xf32> to vector<1x256x128xf32>
    tpu.vector_store %arg4[%c0_24, %c0_25, %c0_26], %32 {strides = array<i32>} : memref<1x256x128xf32, #tpu.memory_space<vmem>>, vector<1x256x128xf32>,
    %cst_27 = arith.constant dense<0.000000e+00> : vector<128xf32>
    %33 = vector.multi_reduction <add>, %29, %cst_27 [0] : vector<256x128xf32> to vector<128xf32>
    %34 = vector.shape_cast %33 : vector<128xf32> to vector<1x128xf32>
    %c0_28 = arith.constant 0 : index
    %c0_29 = arith.constant 0 : index
    %c0_30 = arith.constant 0 : index
    %35 = vector.load %arg5[%c0_28, %c0_29, %c0_30] : memref<1x2x128xf32, #tpu.memory_space<vmem>>, vector<1x1x128xf32>
    %36 = vector.shape_cast %35 : vector<1x1x128xf32> to vector<1x128xf32>
    %37 = vector.shape_cast %34 : vector<1x128xf32> to vector<1x1x128xf32>
    tpu.vector_store %arg5[%c0_28, %c0_29, %c0_30], %37 {strides = array<i32>} : memref<1x2x128xf32, #tpu.memory_space<vmem>>, vector<1x1x128xf32>,
    %38 = arith.mulf %29, %29 : vector<256x128xf32>
    %cst_31 = arith.constant dense<0.000000e+00> : vector<128xf32>
    %39 = vector.multi_reduction <add>, %38, %cst_31 [0] : vector<256x128xf32> to vector<128xf32>
    %40 = vector.shape_cast %39 : vector<128xf32> to vector<1x128xf32>
    %c0_32 = arith.constant 0 : index
    %c1_33 = arith.constant 1 : index
    %c0_34 = arith.constant 0 : index
    %41 = vector.load %arg5[%c0_32, %c1_33, %c0_34] : memref<1x2x128xf32, #tpu.memory_space<vmem>>, vector<1x1x128xf32>
    %42 = vector.shape_cast %41 : vector<1x1x128xf32> to vector<1x128xf32>
    %43 = vector.shape_cast %40 : vector<1x128xf32> to vector<1x1x128xf32>
    tpu.vector_store %arg5[%c0_32, %c1_33, %c0_34], %43 {strides = array<i32>} : memref<1x2x128xf32, #tpu.memory_space<vmem>>, vector<1x1x128xf32>,
    return
  }
  func.func @transform_0(%arg0: i32) -> (i32, i32, i32, i32) {
    %c0_i32 = arith.constant 0 : i32
    %c0_i32_0 = arith.constant 0 : i32
    %c0_i32_1 = arith.constant 0 : i32
    %c0_i32_2 = arith.constant 0 : i32
    return %arg0, %c0_i32, %c0_i32_0, %c0_i32_1 : i32, i32, i32, i32
  }
  func.func @transform_1(%arg0: i32) -> (i32, i32, i32) {
    %c0_i32 = arith.constant 0 : i32
    %c0_i32_0 = arith.constant 0 : i32
    %c0_i32_1 = arith.constant 0 : i32
    %c0_i32_2 = arith.constant 0 : i32
    return %c0_i32, %c0_i32_0, %c0_i32_1 : i32, i32, i32
  }
  func.func @transform_2(%arg0: i32) -> (i32, i32) {
    %c0_i32 = arith.constant 0 : i32
    %c0_i32_0 = arith.constant 0 : i32
    %c0_i32_1 = arith.constant 0 : i32
    return %c0_i32, %c0_i32_0 : i32, i32
  }
  func.func @transform_3(%arg0: i32) -> (i32, i32, i32) {
    %c0_i32 = arith.constant 0 : i32
    %c0_i32_0 = arith.constant 0 : i32
    %c0_i32_1 = arith.constant 0 : i32
    return %arg0, %c0_i32, %c0_i32_0 : i32, i32, i32
  }
  func.func @transform_4(%arg0: i32) -> (i32, i32, i32) {
    %c0_i32 = arith.constant 0 : i32
    %c0_i32_0 = arith.constant 0 : i32
    %c0_i32_1 = arith.constant 0 : i32
    return %arg0, %c0_i32, %c0_i32_0 : i32, i32, i32
  }
}

module attributes {stable_mosaic.version = 11 : i64} {
  func.func @_stage3_kernel(%arg0: i32, %arg1: memref<1x256x128xf32, #tpu.memory_space<vmem>>, %arg2: memref<1x256x128xf32, #tpu.memory_space<vmem>>, %arg3: memref<1x128xf32, #tpu.memory_space<vmem>>, %arg4: memref<1x128xf32, #tpu.memory_space<vmem>>, %arg5: memref<1x256x128xf32, #tpu.memory_space<vmem>>) attributes {dimension_semantics = [#tpu.dimension_semantics<parallel>], iteration_bounds = array<i64: 2>, scalar_prefetch = 0 : i64, scratch_operands = 0 : i64, tpu.core_type = #tpu.core_type<tc>, window_params = [{transform_indices = @transform_0, window_bounds = array<i64: 1, 256, 128>}, {transform_indices = @transform_1, window_bounds = array<i64: 1, 256, 128>}, {pipeline_mode = #tpu.pipeline_mode<synchronous>, transform_indices = @transform_2, window_bounds = array<i64: 1, 128>}, {pipeline_mode = #tpu.pipeline_mode<synchronous>, transform_indices = @transform_3, window_bounds = array<i64: 1, 128>}, {transform_indices = @transform_4, window_bounds = array<i64: 1, 256, 128>}]} {
    %c0 = arith.constant 0 : index
    %c0_0 = arith.constant 0 : index
    %c0_1 = arith.constant 0 : index
    %0 = vector.load %arg1[%c0, %c0_0, %c0_1] : memref<1x256x128xf32, #tpu.memory_space<vmem>>, vector<1x256x128xf32>
    %1 = vector.shape_cast %0 : vector<1x256x128xf32> to vector<256x128xf32>
    %c0_2 = arith.constant 0 : index
    %c0_3 = arith.constant 0 : index
    %c0_4 = arith.constant 0 : index
    %2 = vector.load %arg2[%c0_2, %c0_3, %c0_4] : memref<1x256x128xf32, #tpu.memory_space<vmem>>, vector<1x256x128xf32>
    %3 = vector.shape_cast %2 : vector<1x256x128xf32> to vector<256x128xf32>
    %c0_5 = arith.constant 0 : index
    %c0_6 = arith.constant 0 : index
    %4 = vector.load %arg3[%c0_5, %c0_6] : memref<1x128xf32, #tpu.memory_space<vmem>>, vector<1x128xf32>
    %5 = vector.broadcast %4 : vector<1x128xf32> to vector<256x128xf32>
    %6 = arith.mulf %3, %5 : vector<256x128xf32>
    %7 = arith.addf %1, %6 : vector<256x128xf32>
    %c0_7 = arith.constant 0 : index
    %c0_8 = arith.constant 0 : index
    %8 = vector.load %arg4[%c0_7, %c0_8] : memref<1x128xf32, #tpu.memory_space<vmem>>, vector<1x128xf32>
    %9 = vector.broadcast %8 : vector<1x128xf32> to vector<256x128xf32>
    %10 = arith.addf %7, %9 : vector<256x128xf32>
    %c0_9 = arith.constant 0 : index
    %c0_10 = arith.constant 0 : index
    %c0_11 = arith.constant 0 : index
    %11 = vector.load %arg5[%c0_9, %c0_10, %c0_11] : memref<1x256x128xf32, #tpu.memory_space<vmem>>, vector<1x256x128xf32>
    %12 = vector.shape_cast %11 : vector<1x256x128xf32> to vector<256x128xf32>
    %13 = vector.shape_cast %10 : vector<256x128xf32> to vector<1x256x128xf32>
    tpu.vector_store %arg5[%c0_9, %c0_10, %c0_11], %13 {strides = array<i32>} : memref<1x256x128xf32, #tpu.memory_space<vmem>>, vector<1x256x128xf32>,
    return
  }
  func.func @transform_0(%arg0: i32) -> (i32, i32, i32) {
    %c0_i32 = arith.constant 0 : i32
    %c0_i32_0 = arith.constant 0 : i32
    %c0_i32_1 = arith.constant 0 : i32
    return %arg0, %c0_i32, %c0_i32_0 : i32, i32, i32
  }
  func.func @transform_1(%arg0: i32) -> (i32, i32, i32) {
    %c0_i32 = arith.constant 0 : i32
    %c0_i32_0 = arith.constant 0 : i32
    %c0_i32_1 = arith.constant 0 : i32
    return %arg0, %c0_i32, %c0_i32_0 : i32, i32, i32
  }
  func.func @transform_2(%arg0: i32) -> (i32, i32) {
    %c0_i32 = arith.constant 0 : i32
    %c0_i32_0 = arith.constant 0 : i32
    %c0_i32_1 = arith.constant 0 : i32
    return %c0_i32, %c0_i32_0 : i32, i32
  }
  func.func @transform_3(%arg0: i32) -> (i32, i32) {
    %c0_i32 = arith.constant 0 : i32
    %c0_i32_0 = arith.constant 0 : i32
    %c0_i32_1 = arith.constant 0 : i32
    return %c0_i32, %c0_i32_0 : i32, i32
  }
  func.func @transform_4(%arg0: i32) -> (i32, i32, i32) {
    %c0_i32 = arith.constant 0 : i32
    %c0_i32_0 = arith.constant 0 : i32
    %c0_i32_1 = arith.constant 0 : i32
    return %arg0, %c0_i32, %c0_i32_0 : i32, i32, i32
  }
}

</mosaic_0001>

<bundles_post_ra>
// kernel: resblock_forward.5
= control target key start
LH: loop header
LB: loop body
LE: loop exit
PB: predicated region body
PF: predicated region fallthrough
CT: control target
= control target key end

     0   :  { %9 = vsyncpa [#allocation3], 0  ;;  %s1050_s0 = inlined_call_operand.hbm [shape: f32[2,256,128], index: 0, kind: input, shape index: {}]   ;;  %s1051_s1 = inlined_call_operand.vmem [shape: f32[2,256,128], index: 1, kind: input, shape index: {}]   ;;  %s1052_s2 = inlined_call_operand.vmem [shape: f32[1,128], index: 2, kind: input, shape index: {}]   ;;  %s1053_s3 = inlined_call_operand.vmem [shape: f32[1,128], index: 3, kind: input, shape index: {}]   ;;  %s1054_s4 = inlined_call_operand.hbm [shape: f32[2,256,128], index: 4, kind: output, shape index: {}]  }
   0x1   :  { %11 = vsyncpa [#allocation3 + $0x1], 0 }
   0x2   :  { %12 = vsyncpa [#allocation4], 0 }
   0x3   :  { %14 = vsyncpa [#allocation4 + $0x1], 0  ;;  %s737_s15 = smov 0   ;;  %s739_s16 = smov 0  }
   0x4   :  { %s741_s17 = smov 0   ;;  %s743_s18 = smov 0  }
   0x5 LB: > { %s758_s19 = sadd.s32 4294967295, %s706_s18   ;;  %s539_s20 = sadd.s32 4294967294, %s706_s18   ;;  %s706_s18 = sphi %s743_s18, %s1064_s18   ;;  %s702_s17 = sphi %s741_s17, %s1063_s17   ;;  %s698_s16 = sphi %s739_s16, %s1062_s16   ;;  %s694_s15 = sphi %s737_s15, %s1061_s15  }
   0x6   : > { %s762_s21 = sadd.s32 1, %s706_s18   ;;  %s27_s22 = sadd.s32 1, %s702_s17 }
   0x7   : > { %s24_s23 = ssub.s32 %s706_s18, %s762_s21  ;;  %p34_p0 = scmp.ne.s32.totalorder %s702_s17, %s698_s16 }
   0x8   : > { %p25_p1 = scmp.eq.s32.totalorder %s24_s23, 0  ;;  %p35_p2 = scmp.eq.s32.totalorder %s706_s18, 0 }
   0x9   : > { %p40_p3 = scmp.ne.s32.totalorder %s698_s16, %s694_s15  ;;  %p41_p4 = scmp.eq.s32.totalorder %s758_s19, 0 }
   0xa   : > { %s774_s24 = scalar_select %p25_p1, %s702_s17, %s27_s22  }
   0xb   : > { %p776_p5 = por %p35_p2, %p34_p0  ;;  %p780_p6 = por %p41_p4, %p40_p3 }
   0xc   : > { %p132_p7 = scmp.eq.s32.totalorder %s758_s19, 1  ;;  %p138_p8 = scmp.eq.s32.totalorder %s539_s20, 1 }
   0xd   : > { %p570_p10 = scmp.lt.s32.totalorder %s706_s18, 2  ;;  %s164_s29 = sand.u32 1, %s702_s17  }
   0xe   : > { %p787_p11 = por %p132_p7, %p34_p0  ;;  %p791_p12 = por %p138_p8, %p40_p3 }
   0xf   : > { %s555_s30 = sshll.u32 %s706_s18, 8  ;;  %s542_s5 = sshll.u32 %s164_s29, 8 }
  0x10   : > { %s173_s8 = scalar_lea.hbm %s1050_s0, %s555_s30  ;;  %s168_s10 = scalar_lea.vmem [#allocation2], %s542_s5 }
  0x11   : > { %s174_s9 = sshll.u32 %s173_s8, 4  ;;  %s176_s11 = sshll.u32 %s168_s10, 4  ;;  %s175_s9 = int_to_ptr.hbm [resolvable:$true] %s174_s9  ;;  %s177_s11 = int_to_ptr.vmem [resolvable:$true] %s176_s11 }
  0x12   : > { %p802_p13 = pnand %p570_p10, %p776_p5  ;;  %p545_p0 = scmp.ge.s32.totalorder %s706_s18, 1 }
  0x13   : > { %p192_p1 = scmp.lt.s32.totalorder %s706_s18, 3  ;;  %s165_s13 = scalar_lea.sflag [#allocation3], %s164_s29 }
  0x14   : > { %s610_s14 = sshra.s32 %s175_s9, 4  ;;  %p614_p3 = pneg %p802_p13  ;;  %s611_s14 = int_to_ptr.hbm [resolvable:$true] %s610_s14 }
  0x15   : > { %s612_s20 = scalar_lea.hbm %s611_s14, 256  ;;  %s617_s25 = scalar_lea.hbm %s1050_s0, 512 }
  0x16   : > { %p613_p2 = scmp.ne.s32.totalorder %s611_s14, %s612_s20  ;;  %p618_p5 = scmp.lt.s32.totalorder %s611_s14, %s1050_s0 }
  0x17   : > { %p619_p8 = scmp.lt.s32.totalorder %s617_s25, %s612_s20 }
  0x18   : > { %p615_p4 = pnand %p614_p3, %p613_p2 }
  0x19   : > { %p620_p10 = por %p619_p8, %p618_p5 }
  0x1a   : > { %p616_p7 = pneg %p615_p4 }
  0x1c   : > { %p621_p9 = pnand %p620_p10, %p616_p7 }
  0x1e   : > { %624 = shalt.err (!%p621_p9)
}
  0x1f   : > { %s708_s29 = smov 128   ;;  %s709_s6 = smov 8  }
  0x20   : > { %565 = dma.hbm_to_vmem [thread:$0]  (!%p802_p13), %s175_s9, 4096, %s177_s11, %s165_s13, %s708_s29, %s708_s29, %s709_s6  }
  0x21   : > { %p193_p2 = pnand %p545_p0, %p192_p1 }
  0x22   : > { %s823_s7 = sand.u32 (!%p193_p2), 1, %s698_s16  }
  0x23   : > { %196 = sbr.rel (%p193_p2) target bundleno = 89 (0x59), region = 36  ;;  %s546_s8 = sshll.u32 (!%p193_p2), %s823_s7, 8 }
  0x24   : > { %s199_s10 = scalar_lea.sflag (!%p193_p2), [#allocation3], %s823_s7  ;;  %s829_s14 = scalar_lea.vmem (!%p193_p2), [#allocation2], %s546_s8 }
  0x28   : > { %685 = dma.done.wait (%p780_p6), %s199_s10, 4096  }
  0x29   : > { %687 = vsyncadd (%p780_p6), %s199_s10, 4294963200  ;;  %p233_p9 = scmp.lt.s32.totalorder %s758_s19, 1  ;;  %v238_v0 = vld [vmem:[%s829_s14] sm:$0xff]  ;;  %v239_v4 = vld [vmem:[%s829_s14 + $0x8] sm:$0xff]  ;;  %s888_s30 = scalar_lea.vmem [#allocation5], %s546_s8 }
  0x2a   : > { %v847_v2 = vld [vmem:[%s1052_s2] ss:$0 sm:$0xff]  ;;  %v240_v6 = vld [vmem:[%s829_s14 + $0x10] sm:$0xff]  ;;  %v241_v10 = vld [vmem:[%s829_s14 + $0x18] sm:$0xff]  ;;  %s557_s5 = sshll.u32 %s758_s19, 8  ;;  %s451_s8 = sshll.u32 %s888_s30, 4  ;;  %s452_s8 = int_to_ptr.vmem [resolvable:$true] %s451_s8 }
  0x2b   : > { %s234_s9 = scalar_select %p233_p9, %s758_s19, 1  ;;  %v852_v3 = vld [vmem:[%s1053_s3] ss:$0 sm:$0xff]  ;;  %v243_v16 = vld [vmem:[%s829_s14 + $0x28] sm:$0xff]  ;;  %v244_v21 = vld [vmem:[%s829_s14 + $0x30] sm:$0xff] }
  0x2c   : > { %v242_v14 = vld [vmem:[%s829_s14 + $0x20] sm:$0xff]  ;;  %v245_v27 = vld [vmem:[%s829_s14 + $0x38] sm:$0xff]  ;;  %v247_v40 = vld [vmem:[%s829_s14 + $0x48] sm:$0xff]  ;;  %s450_s6 = scalar_lea.hbm %s1054_s4, %s557_s5 }
  0x2d   : > { %s556_s11 = sshll.u32 %s234_s9, 8  ;;  %v246_v33 = vld [vmem:[%s829_s14 + $0x40] sm:$0xff]  ;;  %v248_v41 = vld [vmem:[%s829_s14 + $0x50] sm:$0xff]  ;;  %v249_v47 = vld [vmem:[%s829_s14 + $0x58] sm:$0xff]  ;;  %s453_s10 = sshll.u32 %s450_s6, 4  ;;  %s454_s10 = int_to_ptr.hbm [resolvable:$true] %s453_s10 }
  0x2e   : > { %s840_s20 = scalar_lea.vmem %s1051_s1, %s556_s11  ;;  %v250_v54 = vld [vmem:[%s829_s14 + $0x60] sm:$0xff]  ;;  %v251_v60 = vld [vmem:[%s829_s14 + $0x68] sm:$0xff]  ;;  %s654_s9 = sshra.s32 %s454_s10, 4  ;;  %s655_s9 = int_to_ptr.hbm [resolvable:$true] %s654_s9 }
  0x2f   : > { %v270_v1 = vld [vmem:[%s840_s20] sm:$0xff]  ;;  %v271_v5 = vld [vmem:[%s840_s20 + $0x8] sm:$0xff]  ;;  %v272_v9 = vld [vmem:[%s840_s20 + $0x10] sm:$0xff]  ;;  %s656_s11 = scalar_lea.hbm %s655_s9, 256  ;;  %p661_p1 = scmp.lt.s32.totalorder %s655_s9, %s1054_s4 }
  0x30   : > { %v306_v7 = vmul.f32 %v847_v2, %v270_v1  ;;  %v307_v8 = vmul.f32 %v847_v2, %v271_v5  ;;  %v273_v11 = vld [vmem:[%s840_s20 + $0x18] sm:$0xff]  ;;  %v308_v12 = vmul.f32 %v847_v2, %v272_v9  ;;  %v274_v15 = vld [vmem:[%s840_s20 + $0x20] sm:$0xff]  ;;  %v275_v20 = vld [vmem:[%s840_s20 + $0x28] sm:$0xff]  ;;  %p657_p6 = scmp.ne.s32.totalorder %s655_s9, %s656_s11 }
  0x31   : > { %v309_v13 = vmul.f32 %v847_v2, %v273_v11  ;;  %v310_v19 = vmul.f32 %v847_v2, %v274_v15  ;;  %v276_v22 = vld [vmem:[%s840_s20 + $0x30] sm:$0xff]  ;;  %v311_v25 = vmul.f32 %v847_v2, %v275_v20  ;;  %v277_v28 = vld [vmem:[%s840_s20 + $0x38] sm:$0xff]  ;;  %v278_v34 = vld [vmem:[%s840_s20 + $0x40] sm:$0xff] }
  0x32   : > { %v338_v17 = vadd.f32 %v306_v7, %v238_v0  ;;  %v339_v18 = vadd.f32 %v307_v8, %v239_v4  ;;  %v340_v23 = vadd.f32 %v308_v12, %v240_v6  ;;  %v312_v26 = vmul.f32 %v847_v2, %v276_v22  ;;  %v279_v35 = vld [vmem:[%s840_s20 + $0x48] sm:$0xff]  ;;  %v280_v42 = vld [vmem:[%s840_s20 + $0x50] sm:$0xff]  ;;  %v281_v48 = vld [vmem:[%s840_s20 + $0x58] sm:$0xff]  ;;  %p658_p13 = pnand %p657_p6, %p787_p11 }
  0x33   : > { %v341_v24 = vadd.f32 %v309_v13, %v241_v10  ;;  %v342_v31 = vadd.f32 %v310_v19, %v242_v14  ;;  %v313_v32 = vmul.f32 %v847_v2, %v277_v28  ;;  %v343_v38 = vadd.f32 %v311_v25, %v243_v16  ;;  %v282_v49 = vld [vmem:[%s840_s20 + $0x60] sm:$0xff]  ;;  %v283_v55 = vld [vmem:[%s840_s20 + $0x68] sm:$0xff]  ;;  %v284_v61 = vld [vmem:[%s840_s20 + $0x70] sm:$0xff] }
  0x34   : > { %v374_v29 = vadd.f32 %v852_v3, %v338_v17  ;;  %v375_v30 = vadd.f32 %v852_v3, %v339_v18  ;;  %v376_v36 = vadd.f32 %v852_v3, %v340_v23  ;;  %v344_v39 = vadd.f32 %v312_v26, %v244_v21  ;;  %v285_v62 = vld [vmem:[%s840_s20 + $0x78] sm:$0xff]  ;;  %v252_v4 = vld [vmem:[%s829_s14 + $0x70] sm:$0xff]  ;;  %v286_v6 = vld [vmem:[%s840_s20 + $0x80] sm:$0xff]  ;;  %p659_p0 = pneg %p658_p13 }
  0x35   : > { %v377_v37 = vadd.f32 %v852_v3, %v341_v24  ;;  %v378_v43 = vadd.f32 %v852_v3, %v342_v31  ;;  %v345_v44 = vadd.f32 %v313_v32, %v245_v27  ;;  %v314_v45 = vmul.f32 %v847_v2, %v278_v34  ;;  %v253_v9 = vld [vmem:[%s829_s14 + $0x78] sm:$0xff]  ;;  %v287_v11 = vld [vmem:[%s840_s20 + $0x88] sm:$0xff]  ;;  %v288_v12 = vld [vmem:[%s840_s20 + $0x90] sm:$0xff] }
  0x36   : > { %406 = vst [vmem:[%s888_s30] sm:$0xff] %v374_v29  ;;  %v315_v46 = vmul.f32 %v847_v2, %v279_v35  ;;  %v379_v50 = vadd.f32 %v852_v3, %v343_v38  ;;  %v380_v51 = vadd.f32 %v852_v3, %v344_v39  ;;  %v316_v52 = vmul.f32 %v847_v2, %v280_v42  ;;  %v254_v15 = vld [vmem:[%s829_s14 + $0x80] sm:$0xff]  ;;  %v289_v16 = vld [vmem:[%s840_s20 + $0x98] sm:$0xff]  ;;  %v255_v20 = vld [vmem:[%s829_s14 + $0x88] sm:$0xff] }
  0x37   : > { %407 = vst [vmem:[%s888_s30 + $0x8] sm:$0xff] %v375_v30  ;;  %v317_v53 = vmul.f32 %v847_v2, %v281_v48  ;;  %v381_v56 = vadd.f32 %v852_v3, %v345_v44  ;;  %v346_v57 = vadd.f32 %v314_v45, %v246_v33  ;;  %v318_v59 = vmul.f32 %v847_v2, %v282_v49  ;;  %v290_v22 = vld [vmem:[%s840_s20 + $0xa0] sm:$0xff]  ;;  %v291_v23 = vld [vmem:[%s840_s20 + $0xa8] sm:$0xff]  ;;  %v256_v26 = vld [vmem:[%s829_s14 + $0x90] sm:$0xff] }
  0x38   : > { %408 = vst [vmem:[%s888_s30 + $0x10] sm:$0xff] %v376_v36  ;;  %v347_v58 = vadd.f32 %v315_v46, %v247_v40  ;;  %v348_v63 = vadd.f32 %v316_v52, %v248_v41  ;;  %v319_v1 = vmul.f32 %v847_v2, %v283_v55  ;;  %v320_v5 = vmul.f32 %v847_v2, %v284_v61  ;;  %v292_v29 = vld [vmem:[%s840_s20 + $0xb0] sm:$0xff]  ;;  %v257_v32 = vld [vmem:[%s829_s14 + $0x98] sm:$0xff]  ;;  %v294_v39 = vld [vmem:[%s840_s20 + $0xc0] sm:$0xff] }
  0x39   : > { %409 = vst [vmem:[%s888_s30 + $0x18] sm:$0xff] %v377_v37  ;;  %v349_v0 = vadd.f32 %v317_v53, %v249_v47  ;;  %v382_v7 = vadd.f32 %v852_v3, %v346_v57  ;;  %v350_v8 = vadd.f32 %v318_v59, %v250_v54  ;;  %v321_v10 = vmul.f32 %v847_v2, %v285_v62  ;;  %v293_v34 = vld [vmem:[%s840_s20 + $0xb8] sm:$0xff]  ;;  %v258_v37 = vld [vmem:[%s829_s14 + $0xa0] sm:$0xff]  ;;  %v259_v42 = vld [vmem:[%s829_s14 + $0xa8] sm:$0xff] }
  0x3a   : > { %410 = vst [vmem:[%s888_s30 + $0x20] sm:$0xff] %v378_v43  ;;  %v383_v13 = vadd.f32 %v852_v3, %v347_v58  ;;  %v351_v14 = vadd.f32 %v319_v1, %v251_v60  ;;  %v384_v17 = vadd.f32 %v852_v3, %v348_v63  ;;  %v352_v18 = vadd.f32 %v320_v5, %v252_v4  ;;  %v295_v44 = vld [vmem:[%s840_s20 + $0xc8] sm:$0xff]  ;;  %v260_v47 = vld [vmem:[%s829_s14 + $0xb0] sm:$0xff]  ;;  %v261_v52 = vld [vmem:[%s829_s14 + $0xb8] sm:$0xff] }
  0x3b   : > { %411 = vst [vmem:[%s888_s30 + $0x28] sm:$0xff] %v379_v50  ;;  %v322_v19 = vmul.f32 %v847_v2, %v286_v6  ;;  %v323_v21 = vmul.f32 %v847_v2, %v287_v11  ;;  %v385_v24 = vadd.f32 %v852_v3, %v349_v0  ;;  %v353_v25 = vadd.f32 %v321_v10, %v253_v9  ;;  %v296_v49 = vld [vmem:[%s840_s20 + $0xd0] sm:$0xff]  ;;  %v297_v54 = vld [vmem:[%s840_s20 + $0xd8] sm:$0xff]  ;;  %v262_v57 = vld [vmem:[%s829_s14 + $0xc0] sm:$0xff] }
  0x3c   : > { %412 = vst [vmem:[%s888_s30 + $0x30] sm:$0xff] %v380_v51  ;;  %v324_v27 = vmul.f32 %v847_v2, %v288_v12  ;;  %v325_v28 = vmul.f32 %v847_v2, %v289_v16  ;;  %v386_v30 = vadd.f32 %v852_v3, %v350_v8  ;;  %v326_v33 = vmul.f32 %v847_v2, %v290_v22  ;;  %v298_v59 = vld [vmem:[%s840_s20 + $0xe0] sm:$0xff]  ;;  %v263_v62 = vld [vmem:[%s829_s14 + $0xc8] sm:$0xff]  ;;  %v264_v5 = vld [vmem:[%s829_s14 + $0xd0] sm:$0xff] }
  0x3d   : > { %413 = vst [vmem:[%s888_s30 + $0x38] sm:$0xff] %v381_v56  ;;  %v354_v31 = vadd.f32 %v322_v19, %v254_v15  ;;  %v387_v35 = vadd.f32 %v852_v3, %v351_v14  ;;  %v355_v36 = vadd.f32 %v323_v21, %v255_v20  ;;  %v327_v38 = vmul.f32 %v847_v2, %v291_v23  ;;  %v299_v0 = vld [vmem:[%s840_s20 + $0xe8] sm:$0xff]  ;;  %v265_v10 = vld [vmem:[%s829_s14 + $0xd8] sm:$0xff]  ;;  %v266_v15 = vld [vmem:[%s829_s14 + $0xe0] sm:$0xff] }
  0x3e   : > { %414 = vst [vmem:[%s888_s30 + $0x40] sm:$0xff] %v382_v7  ;;  %v388_v40 = vadd.f32 %v852_v3, %v352_v18  ;;  %v356_v41 = vadd.f32 %v324_v27, %v256_v26  ;;  %v328_v43 = vmul.f32 %v847_v2, %v292_v29  ;;  %v389_v45 = vadd.f32 %v852_v3, %v353_v25  ;;  %v300_v7 = vld [vmem:[%s840_s20 + $0xf0] sm:$0xff]  ;;  %v301_v12 = vld [vmem:[%s840_s20 + $0xf8] sm:$0xff]  ;;  %v267_v19 = vld [vmem:[%s829_s14 + $0xe8] sm:$0xff]  ;;  %s660_s20 = scalar_lea.hbm %s1054_s4, 512 }
  0x3f   : > { %415 = vst [vmem:[%s888_s30 + $0x48] sm:$0xff] %v383_v13  ;;  %v357_v46 = vadd.f32 %v325_v28, %v257_v32  ;;  %v329_v48 = vmul.f32 %v847_v2, %v293_v34  ;;  %v390_v50 = vadd.f32 %v852_v3, %v354_v31  ;;  %v358_v51 = vadd.f32 %v326_v33, %v258_v37  ;;  %v268_v23 = vld [vmem:[%s829_s14 + $0xf0] sm:$0xff]  ;;  %v269_v27 = vld [vmem:[%s829_s14 + $0xf8] sm:$0xff]  ;;  %s439_s14 = scalar_lea.sflag [#allocation4], %s823_s7  ;;  %p662_p3 = scmp.lt.s32.totalorder %s660_s20, %s656_s11 }
  0x40   : > { %416 = vst [vmem:[%s888_s30 + $0x50] sm:$0xff] %v384_v17  ;;  %v330_v53 = vmul.f32 %v847_v2, %v294_v39  ;;  %v391_v55 = vadd.f32 %v852_v3, %v355_v36  ;;  %v359_v56 = vadd.f32 %v327_v38, %v259_v42  ;;  %v331_v58 = vmul.f32 %v847_v2, %v295_v44 }
  0x41   : > { %417 = vst [vmem:[%s888_s30 + $0x58] sm:$0xff] %v385_v24  ;;  %v392_v60 = vadd.f32 %v852_v3, %v356_v41  ;;  %v360_v61 = vadd.f32 %v328_v43, %v260_v47  ;;  %v332_v63 = vmul.f32 %v847_v2, %v296_v49  ;;  %v393_v1 = vadd.f32 %v852_v3, %v357_v46  ;;  %p663_p4 = por %p662_p3, %p661_p1 }
  0x42   : > { %418 = vst [vmem:[%s888_s30 + $0x60] sm:$0xff] %v386_v30  ;;  %v361_v4 = vadd.f32 %v329_v48, %v261_v52  ;;  %v333_v6 = vmul.f32 %v847_v2, %v297_v54  ;;  %v394_v8 = vadd.f32 %v852_v3, %v358_v51  ;;  %v362_v9 = vadd.f32 %v330_v53, %v262_v57 }
  0x43   : > { %419 = vst [vmem:[%s888_s30 + $0x68] sm:$0xff] %v387_v35  ;;  %v334_v11 = vmul.f32 %v847_v2, %v298_v59  ;;  %v395_v13 = vadd.f32 %v852_v3, %v359_v56  ;;  %v363_v14 = vadd.f32 %v331_v58, %v263_v62  ;;  %v335_v16 = vmul.f32 %v847_v2, %v299_v0  ;;  %p664_p7 = pnand %p663_p4, %p659_p0 }
  0x44   : > { %420 = vst [vmem:[%s888_s30 + $0x70] sm:$0xff] %v388_v40  ;;  %v396_v17 = vadd.f32 %v852_v3, %v360_v61  ;;  %v364_v18 = vadd.f32 %v332_v63, %v264_v5  ;;  %v336_v20 = vmul.f32 %v847_v2, %v300_v7  ;;  %v397_v21 = vadd.f32 %v852_v3, %v361_v4 }
  0x45   : > { %421 = vst [vmem:[%s888_s30 + $0x78] sm:$0xff] %v389_v45  ;;  %v365_v22 = vadd.f32 %v333_v6, %v265_v10  ;;  %v337_v24 = vmul.f32 %v847_v2, %v301_v12  ;;  %v398_v25 = vadd.f32 %v852_v3, %v362_v9  ;;  %v366_v26 = vadd.f32 %v334_v11, %v266_v15 }
  0x46   : > { %422 = vst [vmem:[%s888_s30 + $0x80] sm:$0xff] %v390_v50  ;;  %v399_v28 = vadd.f32 %v852_v3, %v363_v14  ;;  %v367_v29 = vadd.f32 %v335_v16, %v267_v19  ;;  %v400_v30 = vadd.f32 %v852_v3, %v364_v18  ;;  %v368_v2 = vadd.f32 %v336_v20, %v268_v23 }
  0x47   : > { %423 = vst [vmem:[%s888_s30 + $0x88] sm:$0xff] %v391_v55  ;;  %v401_v31 = vadd.f32 %v852_v3, %v365_v22  ;;  %v369_v32 = vadd.f32 %v337_v24, %v269_v27  ;;  %v402_v33 = vadd.f32 %v852_v3, %v366_v26 }
  0x48   : > { %424 = vst [vmem:[%s888_s30 + $0x90] sm:$0xff] %v392_v60  ;;  %v403_v34 = vadd.f32 %v852_v3, %v367_v29  ;;  %v404_v35 = vadd.f32 %v852_v3, %v368_v2 }
  0x49   : > { %425 = vst [vmem:[%s888_s30 + $0x98] sm:$0xff] %v393_v1  ;;  %v405_v36 = vadd.f32 %v852_v3, %v369_v32 }
  0x4a   : > { %426 = vst [vmem:[%s888_s30 + $0xa0] sm:$0xff] %v394_v8 }
  0x4b   : > { %427 = vst [vmem:[%s888_s30 + $0xa8] sm:$0xff] %v395_v13 }
  0x4c   : > { %428 = vst [vmem:[%s888_s30 + $0xb0] sm:$0xff] %v396_v17 }
  0x4d   : > { %429 = vst [vmem:[%s888_s30 + $0xb8] sm:$0xff] %v397_v21 }
  0x4e   : > { %430 = vst [vmem:[%s888_s30 + $0xc0] sm:$0xff] %v398_v25 }
  0x4f   : > { %431 = vst [vmem:[%s888_s30 + $0xc8] sm:$0xff] %v399_v28 }
  0x50   : > { %432 = vst [vmem:[%s888_s30 + $0xd0] sm:$0xff] %v400_v30 }
  0x51   : > { %433 = vst [vmem:[%s888_s30 + $0xd8] sm:$0xff] %v401_v31 }
  0x52   : > { %434 = vst [vmem:[%s888_s30 + $0xe0] sm:$0xff] %v402_v33 }
  0x53   : > { %435 = vst [vmem:[%s888_s30 + $0xe8] sm:$0xff] %v403_v34 }
  0x54   : > { %436 = vst [vmem:[%s888_s30 + $0xf0] sm:$0xff] %v404_v35 }
  0x55   : > { %437 = vst [vmem:[%s888_s30 + $0xf8] sm:$0xff] %v405_v36 }
  0x56   : > { %667 = shalt.err (!%p664_p7)
}
  0x57   : > { %s710_s7 = smov 128   ;;  %s711_s23 = smov 8  }
  0x58   : > { %560 = dma.vmem_to_hbm [thread:$0]  (%p787_p11), %s452_s8, 4096, %s454_s10, %s439_s14, %s710_s7, %s710_s7, %s711_s23  }
  0x59 PF: > { %s468_s25 = sand.u32 1, %s694_s15   ;;  %p1060_p5 = scmp.ge.s32.totalorder %s706_s18, 2 }
  0x5a   : > { %s469_s30 = scalar_lea.sflag [#allocation4], %s468_s25 }
  0x5b   : > { %p567_p8 = pnand %p1060_p5, %p791_p12 }
  0x5d   : > { %p568_p10 = pneg %p567_p8 }
  0x5f   : > { %689 = dma.done.wait (%p568_p10), %s469_s30, 4096  }
  0x60   : > { %691 = vsyncadd (%p568_p10), %s469_s30, 4294963200  ;;  %p17_p2 = scmp.ge.s32.totalorder %s762_s21, 4   ;;  %s1061_s15 = smov %s698_s16 }
  0x61   : > { %s1062_s16 = smov %s702_s17  ;;  %s1063_s17 = smov %s774_s24 }
  0x62   : > { %s1064_s18 = smov %s762_s21  ;;  %19 = sbr.rel (!%p17_p2) target bundleno = 5 (0x5), region = 84 }
  0x67   :  { %475 = vsyncpa [#allocation3], 1 }
  0x68   :  { %477 = vsyncpa [#allocation3 + $0x1], 1 }
  0x69   :  { %478 = vsyncpa [#allocation4], 1 }
  0x6a   :  { %480 = vsyncpa [#allocation4 + $0x1], 1 }

// kernel: resblock_forward.4
= control target key start
LH: loop header
LB: loop body
LE: loop exit
PB: predicated region body
PF: predicated region fallthrough
CT: control target
= control target key end

     0   :  { %12 = vsyncpa [#allocation3], 0  ;;  %s955_s21 = smov 0   ;;  %s1290_s0 = inlined_call_operand.vmem [shape: f32[2,256,128], index: 0, kind: input, shape index: {}]   ;;  %s1291_s1 = inlined_call_operand.vmem [shape: f32[1,128], index: 1, kind: input, shape index: {}]   ;;  %s1292_s2 = inlined_call_operand.vmem [shape: f32[1,128], index: 2, kind: input, shape index: {}]   ;;  %s1293_s3 = inlined_call_operand.hbm [shape: f32[128,128], index: 3, kind: input, shape index: {}]   ;;  %s1294_s4 = inlined_call_operand.vmem [shape: f32[1,128], index: 4, kind: input, shape index: {}]   ;;  %s1295_s5 = inlined_call_operand.vmem [shape: f32[2,256,128], index: 5, kind: output, shape index: {0}]   ;;  %s1296_s6 = inlined_call_operand.vmem [shape: f32[2,2,128], index: 6, kind: output, shape index: {1}]  }
   0x1 LB: > { %s202_s24 = sshll.u32 %s1293_s3, 4  ;;  %s964_s25 = sadd.s32 4294967295, %s915_s21   ;;  %s915_s21 = sphi %s955_s21, %s18_s21   ;;  %s203_s24 = int_to_ptr.hbm [resolvable:$true] %s202_s24 }
   0x2   : > { %p789_p0 = scmp.ge.s32.totalorder %s915_s21, 1  ;;  %p185_p1 = scmp.lt.s32.totalorder %s915_s21, 3 }
   0x3   : > { %p859_p2 = scmp.eq.s32.totalorder %s964_s25, 0  ;;  %s917_s26 = smov [#allocation2]  }
   0x4   : > { %p186_p3 = pnand %p789_p0, %p185_p1  ;;  %s204_s27 = sshll.u32 %s917_s26, 4  ;;  %s205_s27 = int_to_ptr.vmem [resolvable:$true] %s204_s27 }
   0x5   : > { %s918_s28 = smov 128   ;;  %s919_s29 = smov 8  }
   0x6   : > { %p855_p4 = pneg %p186_p3  ;;  %231 = sbr.rel (%p186_p3) target bundleno = 293 (0x125), region = 40 }
   0x8   : > { %p856_p5 = pnand %p859_p2, %p855_p4 }
   0xa   : > { %858 = dma.hbm_to_vmem [thread:$0]  (!%p856_p5), %s203_s24, 2048, %s205_s27, [#allocation3], %s918_s28, %s918_s28, %s919_s29  }
   0xb   : > { %910 = dma.done.wait (%p859_p2), [#allocation3], 2048  }
   0xc   : > { %912 = vsyncadd (%p859_p2), [#allocation3], 4294965248  ;;  %v431_v0 = vld [vmem:[#allocation2 + $0x78] sm:$0xff]  ;;  %v430_v1 = vld [vmem:[#allocation2 + $0x70] sm:$0xff]  ;;  %p266_p6 = scmp.lt.s32.totalorder %s964_s25, 1 }
   0xd   : > { %436 = vmatpush.msra.mxu0 %v431_v0  ;;  %803 = vmatpush.msra.mxu1 %v431_v0  ;;  %v429_v2 = vld [vmem:[#allocation2 + $0x68] sm:$0xff]  ;;  %v428_v3 = vld [vmem:[#allocation2 + $0x60] sm:$0xff]  ;;  %v427_v4 = vld [vmem:[#allocation2 + $0x58] sm:$0xff] }
   0xe   : > { %804 = vmatpush.msra.mxu2 %v431_v0  ;;  %805 = vmatpush.msra.mxu3 %v431_v0  ;;  %s1298_s25 = smov (!%p266_p6, %s964_s25), 1  ;;  %v426_v5 = vld [vmem:[#allocation2 + $0x50] sm:$0xff]  ;;  %v425_v6 = vld [vmem:[#allocation2 + $0x48] sm:$0xff]  ;;  %v424_v7 = vld [vmem:[#allocation2 + $0x40] sm:$0xff] }
   0xf   : > { %437 = vmatpush.msra.mxu0 %v430_v1  ;;  %806 = vmatpush.msra.mxu1 %v430_v1  ;;  %s801_s30 = sshll.u32 %s1298_s25, 8  ;;  %v423_v8 = vld [vmem:[#allocation2 + $0x38] sm:$0xff]  ;;  %v422_v9 = vld [vmem:[#allocation2 + $0x30] sm:$0xff]  ;;  %v984_v10 = vld [vmem:[%s1291_s1] ss:$0 sm:$0xff]  ;;  %s798_s19 = sshll.u32 %s1298_s25, 1 }
  0x10   : > { %807 = vmatpush.msra.mxu2 %v430_v1  ;;  %808 = vmatpush.msra.mxu3 %v430_v1  ;;  %s979_s9 = scalar_lea.vmem %s1290_s0, %s801_s30  ;;  %v421_v13 = vld [vmem:[#allocation2 + $0x28] sm:$0xff]  ;;  %v420_v15 = vld [vmem:[#allocation2 + $0x20] sm:$0xff]  ;;  %v419_v19 = vld [vmem:[#allocation2 + $0x18] sm:$0xff]  ;;  %s1097_s18 = scalar_lea.vmem %s1295_s5, %s801_s30 }
  0x11   : > { %438 = vmatpush.msra.mxu0 %v429_v2  ;;  %809 = vmatpush.msra.mxu1 %v429_v2  ;;  %v280_v11 = vld [vmem:[%s979_s9] sm:$0xff]  ;;  %v418_v21 = vld [vmem:[#allocation2 + $0x10] sm:$0xff]  ;;  %v281_v24 = vld [vmem:[%s979_s9 + $0x8] sm:$0xff]  ;;  %s279_s23 = scalar_lea.vmem %s1296_s6, %s798_s19 }
  0x12   : > { %810 = vmatpush.msra.mxu2 %v429_v2  ;;  %811 = vmatpush.msra.mxu3 %v429_v2  ;;  %v288_v12 = vld [vmem:[%s979_s9 + $0x40] sm:$0xff]  ;;  %v316_v16 = vmul.f32 %v984_v10, %v280_v11  ;;  %v289_v25 = vld [vmem:[%s979_s9 + $0x48] sm:$0xff]  ;;  %v317_v31 = vmul.f32 %v984_v10, %v281_v24  ;;  %v282_v37 = vld [vmem:[%s979_s9 + $0x10] sm:$0xff] }
  0x13   : > { %439 = vmatpush.msra.mxu0 %v428_v3  ;;  %812 = vmatpush.msra.mxu1 %v428_v3  ;;  %v296_v14 = vld [vmem:[%s979_s9 + $0x80] sm:$0xff]  ;;  %v324_v18 = vmul.f32 %v984_v10, %v288_v12  ;;  %v417_v26 = vld [vmem:[#allocation2 + $0x8] sm:$0xff]  ;;  %v325_v33 = vmul.f32 %v984_v10, %v289_v25  ;;  %v290_v39 = vld [vmem:[%s979_s9 + $0x50] sm:$0xff]  ;;  %v318_v41 = vmul.f32 %v984_v10, %v282_v37 }
  0x14   : > { %813 = vmatpush.msra.mxu2 %v428_v3  ;;  %814 = vmatpush.msra.mxu3 %v428_v3  ;;  %v993_v17 = vld [vmem:[%s1292_s2] ss:$0 sm:$0xff]  ;;  %v332_v20 = vmul.f32 %v984_v10, %v296_v14  ;;  %v297_v28 = vld [vmem:[%s979_s9 + $0x88] sm:$0xff]  ;;  %v298_v42 = vld [vmem:[%s979_s9 + $0x90] sm:$0xff]  ;;  %v326_v46 = vmul.f32 %v984_v10, %v290_v39 }
  0x15   : > { %440 = vmatpush.msra.mxu0 %v427_v4  ;;  %815 = vmatpush.msra.mxu1 %v427_v4  ;;  %v352_v22 = vadd.f32 %v993_v17, %v316_v16  ;;  %v360_v23 = vadd.f32 %v993_v17, %v324_v18  ;;  %v416_v29 = vld [vmem:[#allocation2] sm:$0xff]  ;;  %v333_v35 = vmul.f32 %v984_v10, %v297_v28  ;;  %v283_v52 = vld [vmem:[%s979_s9 + $0x18] sm:$0xff]  ;;  %v305_v59 = vld [vmem:[%s979_s9 + $0xc8] sm:$0xff] }
  0x16   : > { %816 = vmatpush.msra.mxu2 %v427_v4  ;;  %817 = vmatpush.msra.mxu3 %v427_v4  ;;  %v368_v27 = vadd.f32 %v993_v17, %v332_v20  ;;  %v353_v36 = vadd.f32 %v993_v17, %v317_v31  ;;  %v361_v38 = vadd.f32 %v993_v17, %v325_v33  ;;  %v304_v43 = vld [vmem:[%s979_s9 + $0xc0] sm:$0xff]  ;;  %v291_v55 = vld [vmem:[%s979_s9 + $0x58] sm:$0xff]  ;;  %v306_v12 = vld [vmem:[%s979_s9 + $0xd0] sm:$0xff] }
  0x17   : > { %441 = vmatpush.msra.mxu0 %v426_v5  ;;  %818 = vmatpush.msra.mxu1 %v426_v5  ;;  %v384_v30 = vmax.f32 %v352_v22, 0.0  ;;  %v392_v32 = vmax.f32 %v360_v23, 0.0  ;;  %v369_v40 = vadd.f32 %v993_v17, %v333_v35  ;;  %v340_v47 = vmul.f32 %v984_v10, %v304_v43  ;;  %v299_v58 = vld [vmem:[%s979_s9 + $0x98] sm:$0xff]  ;;  %v300_v11 = vld [vmem:[%s979_s9 + $0xa0] sm:$0xff]  ;;  %v285_v25 = vld [vmem:[%s979_s9 + $0x28] sm:$0xff] }
  0x18   : > { %819 = vmatpush.msra.mxu2 %v426_v5  ;;  %820 = vmatpush.msra.mxu3 %v426_v5  ;;  %v400_v34 = vmax.f32 %v368_v27, 0.0  ;;  %v385_v44 = vmax.f32 %v353_v36, 0.0  ;;  %v393_v45 = vmax.f32 %v361_v38, 0.0  ;;  %v334_v49 = vmul.f32 %v984_v10, %v298_v42  ;;  %v307_v24 = vld [vmem:[%s979_s9 + $0xd8] sm:$0xff]  ;;  %v308_v31 = vld [vmem:[%s979_s9 + $0xe0] sm:$0xff] }
  0x19   : > { %442 = vmatpush.msra.mxu0 %v425_v6  ;;  %821 = vmatpush.msra.mxu1 %v425_v6  ;;  %v401_v48 = vmax.f32 %v369_v40, 0.0  ;;  %v376_v50 = vadd.f32 %v993_v17, %v340_v47  ;;  %v354_v51 = vadd.f32 %v993_v17, %v318_v41  ;;  %v362_v53 = vadd.f32 %v993_v17, %v326_v46  ;;  %v311_v36 = vld [vmem:[%s979_s9 + $0xf8] sm:$0xff] }
  0x1a   : > { %822 = vmatpush.msra.mxu2 %v425_v6  ;;  %823 = vmatpush.msra.mxu3 %v425_v6  ;;  %v370_v56 = vadd.f32 %v993_v17, %v334_v49  ;;  %v319_v57 = vmul.f32 %v984_v10, %v283_v52  ;;  %v327_v62 = vmul.f32 %v984_v10, %v291_v55  ;;  %v284_v6 = vld [vmem:[%s979_s9 + $0x20] sm:$0xff]  ;;  %v302_v49 = vld [vmem:[%s979_s9 + $0xb0] sm:$0xff] }
  0x1b   : > { %443 = vmatpush.msra.mxu0 %v424_v7  ;;  %824 = vmatpush.msra.mxu1 %v424_v7  ;;  %v408_v54 = vmax.f32 %v376_v50, 0.0  ;;  %v386_v60 = vmax.f32 %v354_v51, 0.0  ;;  %v394_v61 = vmax.f32 %v362_v53, 0.0  ;;  %v341_v63 = vmul.f32 %v984_v10, %v305_v59  ;;  %v309_v50 = vld [vmem:[%s979_s9 + $0xe8] sm:$0xff] }
  0x1c   : > { %825 = vmatpush.msra.mxu2 %v424_v7  ;;  %826 = vmatpush.msra.mxu3 %v424_v7  ;;  %v402_v0 = vmax.f32 %v370_v56, 0.0  ;;  %v335_v1 = vmul.f32 %v984_v10, %v299_v58  ;;  %v355_v3 = vadd.f32 %v993_v17, %v319_v57  ;;  %v363_v4 = vadd.f32 %v993_v17, %v327_v62  ;;  %v292_v7 = vld [vmem:[%s979_s9 + $0x60] sm:$0xff]  ;;  %v295_v62 = vld [vmem:[%s979_s9 + $0x78] sm:$0xff] }
  0x1d   : > { %444 = vmatpush.msra.mxu0 %v423_v8  ;;  %827 = vmatpush.msra.mxu1 %v423_v8  ;;  %v377_v2 = vadd.f32 %v993_v17, %v341_v63  ;;  %v342_v16 = vmul.f32 %v984_v10, %v306_v12  ;;  %v343_v27 = vmul.f32 %v984_v10, %v307_v24 }
  0x1e   : > { %828 = vmatpush.msra.mxu2 %v423_v8  ;;  %829 = vmatpush.msra.mxu3 %v423_v8  ;;  %v371_v8 = vadd.f32 %v993_v17, %v335_v1  ;;  %v395_v14 = vmax.f32 %v363_v4, 0.0  ;;  %v321_v33 = vmul.f32 %v984_v10, %v285_v25  ;;  %v344_v40 = vmul.f32 %v984_v10, %v308_v31  ;;  %v303_v1 = vld [vmem:[%s979_s9 + $0xb8] sm:$0xff] }
  0x1f   : > { %445 = vmatpush.msra.mxu0 %v422_v9  ;;  %830 = vmatpush.msra.mxu1 %v422_v9  ;;  %v409_v5 = vmax.f32 %v377_v2, 0.0  ;;  %v378_v20 = vadd.f32 %v993_v17, %v342_v16  ;;  %v347_v41 = vmul.f32 %v984_v10, %v311_v36  ;;  %v338_v56 = vmul.f32 %v984_v10, %v302_v49  ;;  %v310_v2 = vld [vmem:[%s979_s9 + $0xf0] sm:$0xff] }
  0x20   : > { %831 = vmatpush.msra.mxu2 %v422_v9  ;;  %832 = vmatpush.msra.mxu3 %v422_v9  ;;  %v387_v9 = vmax.f32 %v355_v3, 0.0  ;;  %v403_v18 = vmax.f32 %v371_v8, 0.0  ;;  %v357_v42 = vadd.f32 %v993_v17, %v321_v33  ;;  %v345_v58 = vmul.f32 %v984_v10, %v309_v50 }
  0x21   : > { %446 = vmatpush.msra.mxu0 %v421_v13  ;;  %833 = vmatpush.msra.mxu1 %v421_v13  ;;  %v410_v23 = vmax.f32 %v378_v20, 0.0  ;;  %v383_v46 = vadd.f32 %v993_v17, %v347_v41  ;;  %v374_v63 = vadd.f32 %v993_v17, %v338_v56  ;;  %v339_v8 = vmul.f32 %v984_v10, %v303_v1 }
  0x22   : > { %834 = vmatpush.msra.mxu2 %v421_v13  ;;  %835 = vmatpush.msra.mxu3 %v421_v13  ;;  %v320_v13 = vmul.f32 %v984_v10, %v284_v6  ;;  %v389_v51 = vmax.f32 %v357_v42, 0.0  ;;  %v331_v6 = vmul.f32 %v984_v10, %v295_v62 }
  0x23   : > { %447 = vmatpush.msra.mxu0 %v420_v15  ;;  %836 = vmatpush.msra.mxu1 %v420_v15 }
  0x24   : > { %837 = vmatpush.msra.mxu2 %v420_v15  ;;  %838 = vmatpush.msra.mxu3 %v420_v15  ;;  %v328_v15 = vmul.f32 %v984_v10, %v292_v7  ;;  %v406_v7 = vmax.f32 %v374_v63, 0.0 }
  0x25   : > { %448 = vmatpush.msra.mxu0 %v419_v19  ;;  %839 = vmatpush.msra.mxu1 %v419_v19 }
  0x26   : > { %840 = vmatpush.msra.mxu2 %v419_v19  ;;  %841 = vmatpush.msra.mxu3 %v419_v19  ;;  %v336_v19 = vmul.f32 %v984_v10, %v300_v11  ;;  %v364_v22 = vadd.f32 %v993_v17, %v328_v15  ;;  %v346_v11 = vmul.f32 %v984_v10, %v310_v2 }
  0x27   : > { %449 = vmatpush.msra.mxu0 %v418_v21  ;;  %842 = vmatpush.msra.mxu1 %v418_v21 }
  0x28   : > { %843 = vmatpush.msra.mxu2 %v418_v21  ;;  %844 = vmatpush.msra.mxu3 %v418_v21  ;;  %v356_v21 = vadd.f32 %v993_v17, %v320_v13  ;;  %v372_v28 = vadd.f32 %v993_v17, %v336_v19  ;;  %v367_v13 = vadd.f32 %v993_v17, %v331_v6 }
  0x29   : > { %450 = vmatpush.msra.mxu0 %v417_v26  ;;  %845 = vmatpush.msra.mxu1 %v417_v26  ;;  %v382_v15 = vadd.f32 %v993_v17, %v346_v11 }
  0x2a   : > { %846 = vmatpush.msra.mxu2 %v417_v26  ;;  %847 = vmatpush.msra.mxu3 %v417_v26  ;;  %v293_v26 = vld [vmem:[%s979_s9 + $0x68] sm:$0xff]  ;;  %v404_v37 = vmax.f32 %v372_v28, 0.0 }
  0x2b   : > { %451 = vmatpush.msra.mxu0 %v416_v29  ;;  %848 = vmatpush.msra.mxu1 %v416_v29  ;;  %v329_v35 = vmul.f32 %v984_v10, %v293_v26  ;;  %v414_v20 = vmax.f32 %v382_v15, 0.0 }
  0x2c   : > { %452 = vmatmul.f32.vlgmr.msra.gmra.mxu0 %v384_v30  ;;  %476 = vmatmul.f32.vlgmr.msra.gmra.mxu1 %v392_v32  ;;  %v379_v30 = vadd.f32 %v993_v17, %v343_v27  ;;  %v388_v32 = vmax.f32 %v356_v21, 0.0  ;;  %v1090_v21 = vld [vmem:[%s1294_s4] ss:$0 sm:$0xff] }
  0x2d   : > { %849 = vmatpush.msra.mxu2 %v416_v29  ;;  %850 = vmatpush.msra.mxu3 %v416_v29  ;;  %v301_v29 = vld [vmem:[%s979_s9 + $0xa8] sm:$0xff]  ;;  %v365_v43 = vadd.f32 %v993_v17, %v329_v35 }
  0x2e   : > { %500 = vmatmul.f32.vlgmr.msra.gmra.mxu2 %v400_v34  ;;  %524 = vmatmul.f32.vlgmr.msra.gmra.mxu3 %v408_v54  ;;  %v396_v34 = vmax.f32 %v364_v22, 0.0  ;;  %v337_v38 = vmul.f32 %v984_v10, %v301_v29  ;;  %v411_v39 = vmax.f32 %v379_v30, 0.0 }
  0x2f   : > { %v397_v53 = vmax.f32 %v365_v43, 0.0 }
  0x30   : > { %v373_v47 = vadd.f32 %v993_v17, %v337_v38 }
  0x32   : > { %v405_v55 = vmax.f32 %v373_v47, 0.0 }
  0x34   : > { %455 = vmatmul.f32.gmra.mxu0 %v385_v44  ;;  %479 = vmatmul.f32.gmra.mxu1 %v393_v45  ;;  %v286_v44 = vld [vmem:[%s979_s9 + $0x30] sm:$0xff] }
  0x35   : > { %v294_v45 = vld [vmem:[%s979_s9 + $0x70] sm:$0xff]  ;;  %v322_v52 = vmul.f32 %v984_v10, %v286_v44 }
  0x36   : > { %503 = vmatmul.f32.gmra.mxu2 %v401_v48  ;;  %527 = vmatmul.f32.gmra.mxu3 %v409_v5  ;;  %v380_v48 = vadd.f32 %v993_v17, %v344_v40  ;;  %v330_v54 = vmul.f32 %v984_v10, %v294_v45 }
  0x37   : > { %v358_v59 = vadd.f32 %v993_v17, %v322_v52 }
  0x38   : > { %v412_v57 = vmax.f32 %v380_v48, 0.0 }
  0x39   : > { %v390_v3 = vmax.f32 %v358_v59, 0.0 }
  0x3c   : > { %458 = vmatmul.f32.gmra.mxu0 %v386_v60  ;;  %482 = vmatmul.f32.gmra.mxu1 %v394_v61  ;;  %v366_v60 = vadd.f32 %v993_v17, %v330_v54  ;;  %v287_v61 = vld [vmem:[%s979_s9 + $0x38] sm:$0xff] }
  0x3d   : > { %v323_v4 = vmul.f32 %v984_v10, %v287_v61  ;;  %v415_v10 = vmax.f32 %v383_v46, 0.0 }
  0x3e   : > { %506 = vmatmul.f32.gmra.mxu2 %v402_v0  ;;  %530 = vmatmul.f32.gmra.mxu3 %v410_v23  ;;  %v381_v0 = vadd.f32 %v993_v17, %v345_v58  ;;  %v398_v5 = vmax.f32 %v366_v60, 0.0 }
  0x3f   : > { %v359_v12 = vadd.f32 %v993_v17, %v323_v4 }
  0x41   : > { %v391_v16 = vmax.f32 %v359_v12, 0.0 }
  0x44   : > { %461 = vmatmul.f32.gmra.mxu0 %v387_v9  ;;  %485 = vmatmul.f32.gmra.mxu1 %v395_v14  ;;  %v413_v9 = vmax.f32 %v381_v0, 0.0  ;;  %v375_v14 = vadd.f32 %v993_v17, %v339_v8 }
  0x46   : > { %509 = vmatmul.f32.gmra.mxu2 %v403_v18  ;;  %533 = vmatmul.f32.gmra.mxu3 %v411_v39  ;;  %v399_v18 = vmax.f32 %v367_v13, 0.0  ;;  %v407_v19 = vmax.f32 %v375_v14, 0.0 }
  0x4c   : > { %464 = vmatmul.f32.gmra.mxu0 %v388_v32  ;;  %488 = vmatmul.f32.gmra.mxu1 %v396_v34 }
  0x4e   : > { %512 = vmatmul.f32.gmra.mxu2 %v404_v37  ;;  %536 = vmatmul.f32.gmra.mxu3 %v412_v57 }
  0x54   : > { %467 = vmatmul.f32.gmra.mxu0 %v389_v51  ;;  %491 = vmatmul.f32.gmra.mxu1 %v397_v53 }
  0x56   : > { %515 = vmatmul.f32.gmra.mxu2 %v405_v55  ;;  %539 = vmatmul.f32.gmra.mxu3 %v413_v9 }
  0x5c   : > { %470 = vmatmul.f32.gmra.mxu0 %v390_v3  ;;  %494 = vmatmul.f32.gmra.mxu1 %v398_v5 }
  0x5e   : > { %518 = vmatmul.f32.gmra.mxu2 %v406_v7  ;;  %542 = vmatmul.f32.gmra.mxu3 %v414_v20 }
  0x64   : > { %473 = vmatmul.f32.gmra.mxu0 %v391_v16  ;;  %497 = vmatmul.f32.gmra.mxu1 %v399_v18 }
  0x66   : > { %521 = vmatmul.f32.gmra.mxu2 %v407_v19  ;;  %545 = vmatmul.f32.gmra.mxu3 %v415_v10 }
  0xa9   : > { %v453_v17 = vpop.f32.mrf.mxu0  ;;  %v477_v22 = vpop.f32.mrf.mxu1 }
  0xaa   : > { %v1100_v23 = vadd.f32 %v1090_v21, %v453_v17  ;;  %v1103_v24 = vadd.f32 %v1090_v21, %v477_v22 }
  0xac   : > { %549 = vst [vmem:[%s1097_s18] sm:$0xff] %v1100_v23  ;;  %v619_v0 = vmul.f32 %v1100_v23, %v1100_v23 }
  0xad   : > { %557 = vst [vmem:[%s1097_s18 + $0x40] sm:$0xff] %v1103_v24 }
  0xb1   : > { %v456_v25 = vpop.f32.mrf.mxu0  ;;  %v480_v26 = vpop.f32.mrf.mxu1 }
  0xb2   : > { %v457_v27 = vadd.f32 %v1090_v21, %v456_v25  ;;  %v1111_v28 = vadd.f32 %v1090_v21, %v480_v26  ;;  %v501_v29 = vpop.f32.mrf.mxu2  ;;  %v525_v36 = vpop.f32.mrf.mxu3 }
  0xb3   : > { %v1114_v30 = vadd.f32 %v1090_v21, %v501_v29  ;;  %v1129_v38 = vadd.f32 %v1090_v21, %v525_v36 }
  0xb4   : > { %550 = vst [vmem:[%s1097_s18 + $0x8] sm:$0xff] %v457_v27  ;;  %v620_v63 = vmul.f32 %v457_v27, %v457_v27  ;;  %v581_v1 = vadd.f32 %v457_v27, %v1100_v23 }
  0xb5   : > { %558 = vst [vmem:[%s1097_s18 + $0x48] sm:$0xff] %v1111_v28 }
  0xb6   : > { %565 = vst [vmem:[%s1097_s18 + $0x80] sm:$0xff] %v1114_v30  ;;  %v651_v3 = vadd.f32 %v620_v63, %v619_v0 }
  0xb7   : > { %573 = vst [vmem:[%s1097_s18 + $0xc0] sm:$0xff] %v1129_v38 }
  0xb9   : > { %v459_v31 = vpop.f32.mrf.mxu0  ;;  %v483_v32 = vpop.f32.mrf.mxu1 }
  0xba   : > { %v460_v33 = vadd.f32 %v1090_v21, %v459_v31  ;;  %v1123_v34 = vadd.f32 %v1090_v21, %v483_v32  ;;  %v504_v35 = vpop.f32.mrf.mxu2  ;;  %v528_v44 = vpop.f32.mrf.mxu3 }
  0xbb   : > { %v1126_v37 = vadd.f32 %v1090_v21, %v504_v35  ;;  %v1146_v46 = vadd.f32 %v1090_v21, %v528_v44  ;;  %v627_v44 = vmul.f32 %v1103_v24, %v1103_v24 }
  0xbc   : > { %551 = vst [vmem:[%s1097_s18 + $0x10] sm:$0xff] %v460_v33  ;;  %v621_v2 = vmul.f32 %v460_v33, %v460_v33  ;;  %v582_v6 = vadd.f32 %v581_v1, %v460_v33 }
  0xbd   : > { %559 = vst [vmem:[%s1097_s18 + $0x50] sm:$0xff] %v1123_v34 }
  0xbe   : > { %566 = vst [vmem:[%s1097_s18 + $0x88] sm:$0xff] %v1126_v37  ;;  %v652_v15 = vadd.f32 %v651_v3, %v621_v2 }
  0xbf   : > { %574 = vst [vmem:[%s1097_s18 + $0xc8] sm:$0xff] %v1146_v46 }
  0xc1   : > { %v462_v39 = vpop.f32.mrf.mxu0  ;;  %v486_v40 = vpop.f32.mrf.mxu1 }
  0xc2   : > { %v463_v41 = vadd.f32 %v1090_v21, %v462_v39  ;;  %v1140_v42 = vadd.f32 %v1090_v21, %v486_v40  ;;  %v507_v43 = vpop.f32.mrf.mxu2  ;;  %v531_v52 = vpop.f32.mrf.mxu3 }
  0xc3   : > { %v1143_v45 = vadd.f32 %v1090_v21, %v507_v43  ;;  %v1163_v54 = vadd.f32 %v1090_v21, %v531_v52 }
  0xc4   : > { %552 = vst [vmem:[%s1097_s18 + $0x18] sm:$0xff] %v463_v41  ;;  %v622_v7 = vmul.f32 %v463_v41, %v463_v41  ;;  %v583_v16 = vadd.f32 %v582_v6, %v463_v41  ;;  %v630_v0 = vmul.f32 %v1140_v42, %v1140_v42 }
  0xc5   : > { %560 = vst [vmem:[%s1097_s18 + $0x58] sm:$0xff] %v1140_v42 }
  0xc6   : > { %567 = vst [vmem:[%s1097_s18 + $0x90] sm:$0xff] %v1143_v45  ;;  %v653_v19 = vadd.f32 %v652_v15, %v622_v7 }
  0xc7   : > { %575 = vst [vmem:[%s1097_s18 + $0xd0] sm:$0xff] %v1163_v54 }
  0xc9   : > { %v465_v47 = vpop.f32.mrf.mxu0  ;;  %v489_v48 = vpop.f32.mrf.mxu1 }
  0xca   : > { %v466_v49 = vadd.f32 %v1090_v21, %v465_v47  ;;  %v1157_v50 = vadd.f32 %v1090_v21, %v489_v48  ;;  %v510_v51 = vpop.f32.mrf.mxu2  ;;  %v534_v60 = vpop.f32.mrf.mxu3 }
  0xcb   : > { %v1160_v53 = vadd.f32 %v1090_v21, %v510_v51  ;;  %v1180_v62 = vadd.f32 %v1090_v21, %v534_v60 }
  0xcc   : > { %553 = vst [vmem:[%s1097_s18 + $0x20] sm:$0xff] %v466_v49  ;;  %v623_v18 = vmul.f32 %v466_v49, %v466_v49  ;;  %v584_v20 = vadd.f32 %v583_v16, %v466_v49  ;;  %v628_v49 = vmul.f32 %v1111_v28, %v1111_v28  ;;  %v631_v2 = vmul.f32 %v1157_v50, %v1157_v50 }
  0xcd   : > { %561 = vst [vmem:[%s1097_s18 + $0x60] sm:$0xff] %v1157_v50 }
  0xce   : > { %568 = vst [vmem:[%s1097_s18 + $0x98] sm:$0xff] %v1160_v53  ;;  %v654_v17 = vadd.f32 %v653_v19, %v623_v18 }
  0xcf   : > { %576 = vst [vmem:[%s1097_s18 + $0xd8] sm:$0xff] %v1180_v62 }
  0xd1   : > { %v468_v55 = vpop.f32.mrf.mxu0  ;;  %v492_v56 = vpop.f32.mrf.mxu1 }
  0xd2   : > { %v469_v57 = vadd.f32 %v1090_v21, %v468_v55  ;;  %v1174_v58 = vadd.f32 %v1090_v21, %v492_v56  ;;  %v513_v59 = vpop.f32.mrf.mxu2  ;;  %v537_v12 = vpop.f32.mrf.mxu3  ;;  %v629_v55 = vmul.f32 %v1123_v34, %v1123_v34 }
  0xd3   : > { %v1177_v61 = vadd.f32 %v1090_v21, %v513_v59  ;;  %v1198_v14 = vadd.f32 %v1090_v21, %v537_v12 }
  0xd4   : > { %554 = vst [vmem:[%s1097_s18 + $0x28] sm:$0xff] %v469_v57  ;;  %v624_v10 = vmul.f32 %v469_v57, %v469_v57  ;;  %v585_v22 = vadd.f32 %v584_v20, %v469_v57 }
  0xd5   : > { %562 = vst [vmem:[%s1097_s18 + $0x68] sm:$0xff] %v1174_v58 }
  0xd6   : > { %569 = vst [vmem:[%s1097_s18 + $0xa0] sm:$0xff] %v1177_v61  ;;  %v655_v27 = vadd.f32 %v654_v17, %v624_v10 }
  0xd7   : > { %577 = vst [vmem:[%s1097_s18 + $0xe0] sm:$0xff] %v1198_v14 }
  0xd9   : > { %v471_v4 = vpop.f32.mrf.mxu0  ;;  %v495_v5 = vpop.f32.mrf.mxu1 }
  0xda   : > { %v472_v8 = vadd.f32 %v1090_v21, %v471_v4  ;;  %v496_v9 = vadd.f32 %v1090_v21, %v495_v5  ;;  %v516_v11 = vpop.f32.mrf.mxu2  ;;  %v540_v35 = vpop.f32.mrf.mxu3  ;;  %v632_v5 = vmul.f32 %v1174_v58, %v1174_v58 }
  0xdb   : > { %v1195_v13 = vadd.f32 %v1090_v21, %v516_v11  ;;  %v1210_v39 = vadd.f32 %v1090_v21, %v540_v35 }
  0xdc   : > { %555 = vst [vmem:[%s1097_s18 + $0x30] sm:$0xff] %v472_v8  ;;  %v625_v23 = vmul.f32 %v472_v8, %v472_v8  ;;  %v586_v29 = vadd.f32 %v585_v22, %v472_v8 }
  0xdd   : > { %563 = vst [vmem:[%s1097_s18 + $0x70] sm:$0xff] %v496_v9 }
  0xde   : > { %570 = vst [vmem:[%s1097_s18 + $0xa8] sm:$0xff] %v1195_v13  ;;  %v656_v40 = vadd.f32 %v655_v27, %v625_v23  ;;  %v638_v23 = vmul.f32 %v1160_v53, %v1160_v53 }
  0xdf   : > { %578 = vst [vmem:[%s1097_s18 + $0xe8] sm:$0xff] %v1210_v39 }
  0xe1   : > { %v474_v25 = vpop.f32.mrf.mxu0  ;;  %v498_v26 = vpop.f32.mrf.mxu1 }
  0xe2   : > { %v475_v31 = vadd.f32 %v1090_v21, %v474_v25  ;;  %v499_v32 = vadd.f32 %v1090_v21, %v498_v26  ;;  %v519_v33 = vpop.f32.mrf.mxu2 }
  0xe3   : > { %v520_v36 = vadd.f32 %v1090_v21, %v519_v33 }
  0xe4   : > { %556 = vst [vmem:[%s1097_s18 + $0x38] sm:$0xff] %v475_v31  ;;  %v587_v41 = vadd.f32 %v586_v29, %v475_v31  ;;  %v626_v43 = vmul.f32 %v475_v31, %v475_v31  ;;  %v634_v11 = vmul.f32 %v499_v32, %v499_v32  ;;  %v640_v31 = vmul.f32 %v1195_v13, %v1195_v13 }
  0xe5   : > { %564 = vst [vmem:[%s1097_s18 + $0x78] sm:$0xff] %v499_v32  ;;  %v641_v35 = vmul.f32 %v520_v36, %v520_v36 }
  0xe6   : > { %v588_v47 = vadd.f32 %v587_v41, %v1103_v24  ;;  %v657_v48 = vadd.f32 %v656_v40, %v626_v43  ;;  %571 = vst [vmem:[%s1097_s18 + $0xb0] sm:$0xff] %v520_v36  ;;  %v543_v24 = vpop.f32.mrf.mxu3 }
  0xe7   : > { %v1228_v63 = vadd.f32 %v1090_v21, %v543_v24  ;;  %v648_v24 = vmul.f32 %v1210_v39, %v1210_v39 }
  0xe8   : > { %v589_v51 = vadd.f32 %v588_v47, %v1111_v28  ;;  %v658_v52 = vadd.f32 %v657_v48, %v627_v44 }
  0xe9   : > { %579 = vst [vmem:[%s1097_s18 + $0xf0] sm:$0xff] %v1228_v63 }
  0xea   : > { %v659_v56 = vadd.f32 %v658_v52, %v628_v49  ;;  %v590_v57 = vadd.f32 %v589_v51, %v1123_v34  ;;  %v522_v59 = vpop.f32.mrf.mxu2  ;;  %v646_v52 = vmul.f32 %v1180_v62, %v1180_v62 }
  0xeb   : > { %v523_v60 = vadd.f32 %v1090_v21, %v522_v59 }
  0xec   : > { %v591_v28 = vadd.f32 %v590_v57, %v1140_v42  ;;  %v660_v1 = vadd.f32 %v659_v56, %v629_v55  ;;  %v633_v42 = vmul.f32 %v496_v9, %v496_v9 }
  0xed   : > { %572 = vst [vmem:[%s1097_s18 + $0xb8] sm:$0xff] %v523_v60  ;;  %v642_v40 = vmul.f32 %v523_v60, %v523_v60 }
  0xee   : > { %v592_v34 = vadd.f32 %v591_v28, %v1157_v50  ;;  %v661_v3 = vadd.f32 %v660_v1, %v630_v0  ;;  %v546_v12 = vpop.f32.mrf.mxu3  ;;  %v635_v50 = vmul.f32 %v1114_v30, %v1114_v30 }
  0xef   : > { %v547_v15 = vadd.f32 %v1090_v21, %v546_v12 }
  0xf0   : > { %v593_v4 = vadd.f32 %v592_v34, %v1174_v58  ;;  %v662_v6 = vadd.f32 %v661_v3, %v631_v2  ;;  %v636_v58 = vmul.f32 %v1126_v37, %v1126_v37 }
  0xf1   : > { %580 = vst [vmem:[%s1097_s18 + $0xf8] sm:$0xff] %v547_v15  ;;  %v650_v28 = vmul.f32 %v547_v15, %v547_v15 }
  0xf2   : > { %v663_v7 = vadd.f32 %v662_v6, %v632_v5  ;;  %v594_v8 = vadd.f32 %v593_v4, %v496_v9  ;;  %v637_v9 = vmul.f32 %v1143_v45, %v1143_v45 }
  0xf4   : > { %v664_v16 = vadd.f32 %v663_v7, %v633_v42  ;;  %v595_v18 = vadd.f32 %v594_v8, %v499_v32 }
  0xf6   : > { %v596_v19 = vadd.f32 %v595_v18, %v1114_v30  ;;  %v665_v20 = vadd.f32 %v664_v16, %v634_v11  ;;  %v639_v30 = vmul.f32 %v1177_v61, %v1177_v61 }
  0xf8   : > { %v597_v10 = vadd.f32 %v596_v19, %v1126_v37  ;;  %v666_v17 = vadd.f32 %v665_v20, %v635_v50 }
  0xfa   : > { %v667_v22 = vadd.f32 %v666_v17, %v636_v58  ;;  %v598_v21 = vadd.f32 %v597_v10, %v1143_v45 }
  0xfc   : > { %v599_v25 = vadd.f32 %v598_v21, %v1160_v53  ;;  %v668_v26 = vadd.f32 %v667_v22, %v637_v9  ;;  %v643_v53 = vmul.f32 %v1129_v38, %v1129_v38 }
  0xfe   : > { %v600_v27 = vadd.f32 %v599_v25, %v1177_v61  ;;  %v669_v29 = vadd.f32 %v668_v26, %v638_v23  ;;  %v644_v61 = vmul.f32 %v1146_v46, %v1146_v46 }
 0x100   : > { %v601_v37 = vadd.f32 %v600_v27, %v1195_v13  ;;  %v670_v32 = vadd.f32 %v669_v29, %v639_v30  ;;  %v645_v13 = vmul.f32 %v1163_v54, %v1163_v54 }
 0x102   : > { %v671_v33 = vadd.f32 %v670_v32, %v640_v31  ;;  %v602_v45 = vadd.f32 %v601_v37, %v520_v36 }
 0x104   : > { %v672_v41 = vadd.f32 %v671_v33, %v641_v35  ;;  %v603_v43 = vadd.f32 %v602_v45, %v523_v60 }
 0x106   : > { %v604_v44 = vadd.f32 %v603_v43, %v1129_v38  ;;  %v673_v47 = vadd.f32 %v672_v41, %v642_v40  ;;  %v647_v38 = vmul.f32 %v1198_v14, %v1198_v14 }
 0x108   : > { %v605_v48 = vadd.f32 %v604_v44, %v1146_v46  ;;  %v674_v49 = vadd.f32 %v673_v47, %v643_v53 }
 0x10a   : > { %v675_v51 = vadd.f32 %v674_v49, %v644_v61  ;;  %v606_v36 = vadd.f32 %v605_v48, %v1163_v54 }
 0x10c   : > { %v607_v55 = vadd.f32 %v606_v36, %v1180_v62  ;;  %v676_v56 = vadd.f32 %v675_v51, %v645_v13  ;;  %v649_v62 = vmul.f32 %v1228_v63, %v1228_v63 }
 0x10e   : > { %v608_v57 = vadd.f32 %v607_v55, %v1198_v14  ;;  %v677_v59 = vadd.f32 %v676_v56, %v646_v52 }
 0x110   : > { %v609_v46 = vadd.f32 %v608_v57, %v1210_v39  ;;  %v678_v60 = vadd.f32 %v677_v59, %v647_v38 }
 0x112   : > { %v679_v54 = vadd.f32 %v678_v60, %v648_v24  ;;  %v610_v0 = vadd.f32 %v609_v46, %v1228_v63 }
 0x114   : > { %v680_v1 = vadd.f32 %v679_v54, %v649_v62  ;;  %v611_v2 = vadd.f32 %v610_v0, %v547_v15 }
 0x116   : > { %v612_v34 = vrot.slane %v611_v2, 4  ;;  %v681_v3 = vadd.f32 %v680_v1, %v650_v28 }
 0x118   : > { %v613_v14 = vadd.f32 %v612_v34, %v611_v2  ;;  %v682_v4 = vrot.slane %v681_v3, 4 }
 0x11a   : > { %v614_v5 = vrot.slane %v613_v14, 2  ;;  %v683_v6 = vadd.f32 %v682_v4, %v681_v3 }
 0x11c   : > { %v615_v7 = vadd.f32 %v614_v5, %v613_v14  ;;  %v684_v8 = vrot.slane %v683_v6, 2 }
 0x11e   : > { %v616_v39 = vrot.slane %v615_v7, 1  ;;  %v685_v42 = vadd.f32 %v684_v8, %v683_v6 }
 0x120   : > { %v617_v11 = vadd.f32 %v616_v39, %v615_v7  ;;  %v686_v63 = vrot.slane %v685_v42, 1 }
 0x122   : > { %618 = vst [vmem:[%s279_s23] sm:$0x1] %v617_v11  ;;  %v687_v12 = vadd.f32 %v686_v63, %v685_v42 }
 0x124   : > { %688 = vst [vmem:[%s279_s23 + $0x1] sm:$0x1] %v687_v12 }
 0x125 PF: > { %s18_s21 = sadd.s32 1, %s915_s21  }
 0x126   : > { %p15_p7 = scmp.ge.s32.totalorder %s18_s21, 4  }
 0x128   :  { %17 = sbr.rel (!%p15_p7) target bundleno = 1 (0x1), region = 87 }
 0x12d   :  { %724 = vsyncpa [#allocation3], 1 }
 0x12e   :  { %726 = vsyncpa [#allocation3 + $0x1], 1 }

// kernel: resblock_forward.3
= control target key start
LH: loop header
LB: loop body
LE: loop exit
PB: predicated region body
PF: predicated region fallthrough
CT: control target
= control target key end

     0   :  { %10 = vsyncpa [#allocation4], 0  ;;  %s4196_s0 = inlined_call_operand.hbm [shape: f32[2,16,16,128], index: 0, kind: input, shape index: {}]   ;;  %s4197_s1 = inlined_call_operand.hbm [shape: f32[3,384,128], index: 1, kind: input, shape index: {}]   ;;  %s4198_s2 = inlined_call_operand.vmem [shape: f32[1,128], index: 2, kind: input, shape index: {}]   ;;  %s4199_s3 = inlined_call_operand.vmem [shape: f32[2,256,128], index: 3, kind: output, shape index: {0}]   ;;  %s4200_s4 = inlined_call_operand.vmem [shape: f32[2,2,128], index: 4, kind: output, shape index: {1}]  }
   0x1   :  { %12 = vsyncpa [#allocation4 + $0x1], 0 }
   0x2   :  { %13 = vsyncpa [#allocation6], 0  ;;  %s2814_s15 = smov 0   ;;  %s2816_s16 = smov 0  }
   0x3   :  { %s2818_s17 = smov 0   ;;  %s2820_s18 = smov 0  }
   0x4 LB: > { %s2833_s19 = sadd.s32 4294967295, %s2783_s18   ;;  %p39_p0 = scmp.ne.s32.totalorder %s2775_s16, %s2771_s15  ;;  %s2783_s18 = sphi %s2820_s18, %s4567_s18   ;;  %s2779_s17 = sphi %s2818_s17, %s4566_s17   ;;  %s2775_s16 = sphi %s2816_s16, %s4565_s16   ;;  %s2771_s15 = sphi %s2814_s15, %s4564_s15  }
   0x5   : > { %p40_p1 = scmp.eq.s32.totalorder %s2833_s19, 0  ;;  %p2566_p2 = scmp.ge.s32.totalorder %s2783_s18, 1 }
   0x6   : > { %p144_p3 = scmp.lt.s32.totalorder %s2783_s18, 3  ;;  %s155_s23 = sshll.u32 %s4197_s1, 4  ;;  %s156_s23 = int_to_ptr.hbm [resolvable:$true] %s155_s23 }
   0x7   : > { %p2841_p4 = por %p40_p1, %p39_p0  ;;  %s2785_s25 = smov [#allocation5]  }
   0x8   : > { %p2848_p5 = pnand %p2566_p2, %p144_p3  ;;  %s157_s26 = sshll.u32 %s2785_s25, 4  ;;  %s158_s26 = int_to_ptr.vmem [resolvable:$true] %s157_s26 }
   0x9   : > { %s2857_s27 = sadd.s32 1, %s2783_s18   ;;  %s2786_s28 = smov 128  }
   0xa   : > { %p2636_p6 = pneg %p2848_p5  ;;  %s2787_s29 = smov 8  }
   0xb   : > { %s23_s30 = ssub.s32 %s2783_s18, %s2857_s27  ;;  %s26_s5 = sadd.s32 1, %s2779_s17 }
   0xc   : > { %p2637_p7 = pnand %p2636_p6, %p40_p1  ;;  %p24_p8 = scmp.eq.s32.totalorder %s23_s30, 0 }
   0xd   : > { %p33_p9 = scmp.ne.s32.totalorder %s2779_s17, %s2775_s16  ;;  %p34_p10 = scmp.eq.s32.totalorder %s2783_s18, 0 }
   0xe   : > { %2639 = dma.hbm_to_vmem [thread:$0]  (!%p2637_p7), %s156_s23, 18432, %s158_s26, [#allocation6], %s2786_s28, %s2786_s28, %s2787_s29  }
   0xf   : > { %p2645_p11 = scmp.lt.s32.totalorder %s2783_s18, 2  ;;  %p35_p12 = por %p34_p10, %p33_p9 }
  0x10   : > { %s2870_s6 = scalar_select %p24_p8, %s2779_s17, %s26_s5  }
  0x11   : > { %s174_s7 = sand.u32 1, %s2779_s17   ;;  %s2580_s9 = sshll.u32 %s2783_s18, 8 }
  0x12   : > { %s2569_s8 = sshll.u32 %s174_s7, 8  ;;  %s183_s12 = scalar_lea.hbm %s4196_s0, %s2580_s9 }
  0x13   : > { %s178_s13 = scalar_lea.vmem [#allocation3], %s2569_s8  ;;  %s184_s15 = sshll.u32 %s183_s12, 4  ;;  %s185_s15 = int_to_ptr.hbm [resolvable:$true] %s184_s15 }
  0x14   : > { %s186_s14 = sshll.u32 %s178_s13, 4  ;;  %p2877_p13 = pnand %p2645_p11, %p35_p12  ;;  %s187_s14 = int_to_ptr.vmem [resolvable:$true] %s186_s14 }
  0x15   : > { %s175_s22 = scalar_lea.sflag [#allocation4], %s174_s7  ;;  %s2715_s23 = sshra.s32 %s185_s15, 4  ;;  %s2716_s23 = int_to_ptr.hbm [resolvable:$true] %s2715_s23 }
  0x16   : > { %s2717_s25 = scalar_lea.hbm %s2716_s23, 256  ;;  %p2719_p2 = pneg %p2877_p13 }
  0x17   : > { %p2718_p0 = scmp.ne.s32.totalorder %s2716_s23, %s2717_s25  ;;  %s2722_s30 = scalar_lea.hbm %s4196_s0, 512 }
  0x18   : > { %p2723_p7 = scmp.lt.s32.totalorder %s2716_s23, %s4196_s0  ;;  %p2724_p8 = scmp.lt.s32.totalorder %s2722_s30, %s2717_s25 }
  0x19   : > { %p2720_p3 = pnand %p2719_p2, %p2718_p0 }
  0x1a   : > { %p2725_p9 = por %p2724_p8, %p2723_p7 }
  0x1b   : > { %p2721_p6 = pneg %p2720_p3 }
  0x1d   : > { %p2726_p10 = pnand %p2725_p9, %p2721_p6 }
  0x1f   : > { %2729 = shalt.err (!%p2726_p10)
}
  0x20   : > { %2643 = dma.hbm_to_vmem [thread:$0]  (!%p2877_p13), %s185_s15, 4096, %s187_s14, %s175_s22, %s2786_s28, %s2786_s28, %s2787_s29  }
  0x21   : > { %198 = sbr.rel (%p2848_p5) target bundleno = 800 (0x320), region = 32 }
  0x26   : > { %s200_s7 = sand.u32 1, %s2775_s16  }
  0x27   : > { %s2573_s9 = sshll.u32 %s200_s7, 8  ;;  %s201_s10 = scalar_lea.sflag [#allocation4], %s200_s7 }
  0x28   : > { %s2897_s11 = scalar_lea.vmem [#allocation3], %s2573_s9 }
  0x29   : > { %2762 = dma.done.wait (%p2841_p4), %s201_s10, 4096  }
  0x2a   : > { %2764 = vsyncadd (%p2841_p4), %s201_s10, 4294963200 }
  0x2b   : > { %2766 = dma.done.wait (%p40_p1), [#allocation6], 18432  }
  0x2c   : > { %2768 = vsyncadd (%p40_p1), [#allocation6], 4294948864  ;;  %v1101_v0 = vld [vmem:[#allocation5 + $0x78] sm:$0xff]  ;;  %v1100_v1 = vld [vmem:[#allocation5 + $0x70] sm:$0xff]  ;;  %v4201_v20 = vmov 0.0   ;;  %vm707_vm0 = vcmask 1040384  }
  0x2d   : > { %2582 = vmatpush.msra.mxu1 %v1101_v0  ;;  %2583 = vmatpush.msra.mxu2 %v1101_v0  ;;  %v1099_v2 = vld [vmem:[#allocation5 + $0x68] sm:$0xff]  ;;  %v1098_v3 = vld [vmem:[#allocation5 + $0x60] sm:$0xff]  ;;  %v1097_v4 = vld [vmem:[#allocation5 + $0x58] sm:$0xff]  ;;  %v2917_v21 = vrot.slane %v4201_v20, 7  ;;  %vm525_vm1 = vcmask 1046528   ;;  %vm598_vm2 = vcmask 1045504  }
  0x2e   : > { %2584 = vmatpush.msra.mxu3 %v1101_v0  ;;  %1138 = vmatpush.msra.mxu0 %v1101_v0  ;;  %v1096_v5 = vld [vmem:[#allocation5 + $0x50] sm:$0xff]  ;;  %v1095_v6 = vld [vmem:[#allocation5 + $0x48] sm:$0xff]  ;;  %v1094_v7 = vld [vmem:[#allocation5 + $0x40] sm:$0xff]  ;;  %p239_p1 = scmp.lt.s32.totalorder %s2833_s19, 1 }
  0x2f   : > { %2585 = vmatpush.msra.mxu1 %v1100_v1  ;;  %2586 = vmatpush.msra.mxu2 %v1100_v1  ;;  %v1093_v8 = vld [vmem:[#allocation5 + $0x38] sm:$0xff]  ;;  %v1092_v9 = vld [vmem:[#allocation5 + $0x30] sm:$0xff]  ;;  %v1091_v10 = vld [vmem:[#allocation5 + $0x28] sm:$0xff]  ;;  %4301 = vst [vmem:[#allocation9_spill] sm:$0xff] %v2917_v21 }
  0x30   : > { %2587 = vmatpush.msra.mxu3 %v1100_v1  ;;  %1139 = vmatpush.msra.mxu0 %v1100_v1  ;;  %v326_v11 = vld [vmem:[%s2897_s11 + $0x30] sm:$0xff]  ;;  %v1090_v14 = vld [vmem:[#allocation5 + $0x20] sm:$0xff]  ;;  %v1089_v16 = vld [vmem:[#allocation5 + $0x18] sm:$0xff]  ;;  %s4569_s19 = smov (!%p239_p1, %s2833_s19), 1 }
  0x31   : > { %2588 = vmatpush.msra.mxu1 %v1099_v2  ;;  %2589 = vmatpush.msra.mxu2 %v1099_v2  ;;  %v334_v12 = vld [vmem:[%s2897_s11 + $0x70] sm:$0xff]  ;;  %v2910_v15 = vmax.f32 %v326_v11, 0.0  ;;  %v1087_v23 = vld [vmem:[#allocation5 + $0x8] sm:$0xff]  ;;  %v327_v26 = vld [vmem:[%s2897_s11 + $0x38] sm:$0xff]  ;;  %s2581_s12 = sshll.u32 %s4569_s19, 8  ;;  %s2577_s21 = sshll.u32 %s4569_s19, 1 }
  0x32   : > { %2590 = vmatpush.msra.mxu3 %v1099_v2  ;;  %1140 = vmatpush.msra.mxu0 %v1099_v2  ;;  %v342_v13 = vld [vmem:[%s2897_s11 + $0xb0] sm:$0xff]  ;;  %v2912_v17 = vmax.f32 %v334_v12, 0.0  ;;  %v335_v27 = vld [vmem:[%s2897_s11 + $0x78] sm:$0xff]  ;;  %v1086_v29 = vld [vmem:[#allocation5] sm:$0xff]  ;;  %v2929_v31 = vmax.f32 %v327_v26, 0.0  ;;  %s4004_s15 = scalar_lea.vmem %s4199_s3, %s2581_s12  ;;  %s247_s25 = scalar_lea.vmem %s4200_s4, %s2577_s21 }
  0x33   : > { %2591 = vmatpush.msra.mxu1 %v1098_v3  ;;  %2592 = vmatpush.msra.mxu2 %v1098_v3  ;;  %v2914_v18 = vmax.f32 %v342_v13, 0.0  ;;  %v1088_v19 = vld [vmem:[#allocation5 + $0x10] sm:$0xff]  ;;  %v769_v22 = vrot.slane %v2910_v15, 7  ;;  %v343_v28 = vld [vmem:[%s2897_s11 + $0xb8] sm:$0xff]  ;;  %v2939_v34 = vmax.f32 %v335_v27, 0.0  ;;  %v328_v45 = vld [vmem:[%s2897_s11 + $0x40] sm:$0xff] }
  0x34   : > { %2593 = vmatpush.msra.mxu3 %v1098_v3  ;;  %1141 = vmatpush.msra.mxu0 %v1098_v3  ;;  %v829_v24 = vrot.slane %v2912_v17, 7  ;;  %v2941_v35 = vmax.f32 %v343_v28, 0.0  ;;  %v1133_v36 = vld [vmem:[#allocation5 + $0x178] sm:$0xff]  ;;  %v1132_v39 = vld [vmem:[#allocation5 + $0x170] sm:$0xff]  ;;  %v777_v41 = vrot.slane %v2929_v31, 7  ;;  %v336_v46 = vld [vmem:[%s2897_s11 + $0x80] sm:$0xff] }
  0x35   : > { %2594 = vmatpush.msra.mxu1 %v1097_v4  ;;  %2595 = vmatpush.msra.mxu2 %v1097_v4  ;;  %v889_v25 = vrot.slane %v2914_v18, 7  ;;  %v2927_v30 = vsel %vm707_vm0, %v2917_v21, %v769_v22  ;;  %v1493_v37 = vld [vmem:[#allocation5 + $0x1f8] sm:$0xff]  ;;  %v1492_v40 = vld [vmem:[#allocation5 + $0x1f0] sm:$0xff]  ;;  %v837_v42 = vrot.slane %v2939_v34, 7  ;;  %v1131_v47 = vld [vmem:[#allocation5 + $0x168] sm:$0xff]  ;;  %v2956_v54 = vmax.f32 %v328_v45, 0.0 }
  0x36   : > { %2596 = vmatpush.msra.mxu3 %v1097_v4  ;;  %1142 = vmatpush.msra.mxu0 %v1097_v4  ;;  %4302 = vst [vmem:[#allocation10_spill] sm:$0xff] %v2927_v30  ;;  %v2933_v32 = vsel %vm707_vm0, %v2917_v21, %v829_v24  ;;  %v1117_v38 = vld [vmem:[#allocation5 + $0xf8] sm:$0xff]  ;;  %v897_v43 = vrot.slane %v2941_v35, 7  ;;  %v1116_v44 = vld [vmem:[#allocation5 + $0xf0] sm:$0xff]  ;;  %v1491_v48 = vld [vmem:[#allocation5 + $0x1e8] sm:$0xff]  ;;  %v2954_v52 = vsel %vm707_vm0, %v769_v22, %v777_v41  ;;  %v2958_v55 = vmax.f32 %v336_v46, 0.0 }
  0x37   : > { %2597 = vmatpush.msra.mxu1 %v1096_v5  ;;  %2598 = vmatpush.msra.mxu2 %v1096_v5  ;;  %4303 = vst [vmem:[#allocation11_spill] sm:$0xff] %v2933_v32  ;;  %v2937_v33 = vsel %vm707_vm0, %v2917_v21, %v889_v25  ;;  %v344_v49 = vld [vmem:[%s2897_s11 + $0xc0] sm:$0xff]  ;;  %v1509_v50 = vld [vmem:[#allocation5 + $0x278] sm:$0xff]  ;;  %v1115_v51 = vld [vmem:[#allocation5 + $0xe8] sm:$0xff]  ;;  %v2961_v56 = vsel %vm707_vm0, %v829_v24, %v837_v42  ;;  %v784_v0 = vrot.slane %v2956_v54, 7 }
  0x38   : > { %2599 = vmatpush.msra.mxu3 %v1096_v5  ;;  %1143 = vmatpush.msra.mxu0 %v1096_v5  ;;  %4304 = vst [vmem:[#allocation12_spill] sm:$0xff] %v2937_v33  ;;  %v1130_v53 = vld [vmem:[#allocation5 + $0x160] sm:$0xff]  ;;  %v2964_v57 = vsel %vm707_vm0, %v889_v25, %v897_v43  ;;  %v2966_v58 = vmax.f32 %v344_v49, 0.0  ;;  %v1508_v60 = vld [vmem:[#allocation5 + $0x270] sm:$0xff]  ;;  %v1129_v62 = vld [vmem:[#allocation5 + $0x158] sm:$0xff]  ;;  %v844_v1 = vrot.slane %v2958_v55, 7 }
  0x39   : > { %2600 = vmatpush.msra.mxu1 %v1095_v6  ;;  %2601 = vmatpush.msra.mxu2 %v1095_v6  ;;  %4305 = vst [vmem:[#allocation13_spill] sm:$0xff] %v2954_v52  ;;  %v1490_v59 = vld [vmem:[#allocation5 + $0x1e0] sm:$0xff]  ;;  %v1489_v2 = vld [vmem:[#allocation5 + $0x1d8] sm:$0xff]  ;;  %v1507_v3 = vld [vmem:[#allocation5 + $0x268] sm:$0xff] }
  0x3a   : > { %2602 = vmatpush.msra.mxu3 %v1095_v6  ;;  %1144 = vmatpush.msra.mxu0 %v1095_v6  ;;  %4306 = vst [vmem:[#allocation14_spill] sm:$0xff] %v2961_v56  ;;  %v320_v61 = vld [vmem:[%s2897_s11] sm:$0xff]  ;;  %v904_v4 = vrot.slane %v2966_v58, 7  ;;  %v1128_v5 = vld [vmem:[#allocation5 + $0x150] sm:$0xff]  ;;  %v345_v11 = vld [vmem:[%s2897_s11 + $0xc8] sm:$0xff] }
  0x3b   : > { %2603 = vmatpush.msra.mxu1 %v1094_v7  ;;  %2604 = vmatpush.msra.mxu2 %v1094_v7  ;;  %4307 = vst [vmem:[#allocation15_spill] sm:$0xff] %v2964_v57  ;;  %v1114_v63 = vld [vmem:[#allocation5 + $0xe0] sm:$0xff]  ;;  %v1488_v6 = vld [vmem:[#allocation5 + $0x1d0] sm:$0xff]  ;;  %v1113_v12 = vld [vmem:[#allocation5 + $0xd8] sm:$0xff]  ;;  %v3004_v26 = vmax.f32 %v345_v11, 0.0 }
  0x3c   : > { %2605 = vmatpush.msra.mxu3 %v1094_v7  ;;  %1145 = vmatpush.msra.mxu0 %v1094_v7  ;;  %v2975_v7 = vmax.f32 %v320_v61, 0.0  ;;  %v1127_v13 = vld [vmem:[#allocation5 + $0x148] sm:$0xff]  ;;  %v1505_v27 = vld [vmem:[#allocation5 + $0x258] sm:$0xff]  ;;  %v1112_v28 = vld [vmem:[#allocation5 + $0xd0] sm:$0xff] }
  0x3d   : > { %2606 = vmatpush.msra.mxu1 %v1093_v8  ;;  %2607 = vmatpush.msra.mxu2 %v1093_v8  ;;  %v1487_v22 = vld [vmem:[#allocation5 + $0x1c8] sm:$0xff]  ;;  %4311 = vst [vmem:[#allocation19_spill] sm:$0xff] %v3004_v26  ;;  %v912_v43 = vrot.slane %v3004_v26, 7  ;;  %v330_v45 = vld [vmem:[%s2897_s11 + $0x50] sm:$0xff]  ;;  %v1485_v49 = vld [vmem:[#allocation5 + $0x1b8] sm:$0xff] }
  0x3e   : > { %2608 = vmatpush.msra.mxu3 %v1093_v8  ;;  %1146 = vmatpush.msra.mxu0 %v1093_v8  ;;  %v329_v8 = vld [vmem:[%s2897_s11 + $0x48] sm:$0xff]  ;;  %v724_v24 = vrot.slane %v2975_v7, 7  ;;  %v338_v46 = vld [vmem:[%s2897_s11 + $0x90] sm:$0xff]  ;;  %v1501_v11 = vld [vmem:[#allocation5 + $0x238] sm:$0xff] }
  0x3f   : > { %2609 = vmatpush.msra.mxu1 %v1092_v9  ;;  %2610 = vmatpush.msra.mxu2 %v1092_v9  ;;  %v3032_v61 = vmax.f32 %v338_v46, 0.0  ;;  %v1481_v46 = vld [vmem:[#allocation5 + $0x198] sm:$0xff]  ;;  %v341_v20 = vld [vmem:[%s2897_s11 + $0xa8] sm:$0xff] }
  0x40   : > { %2611 = vmatpush.msra.mxu3 %v1092_v9  ;;  %1147 = vmatpush.msra.mxu0 %v1092_v9  ;;  %v1506_v9 = vld [vmem:[#allocation5 + $0x260] sm:$0xff]  ;;  %v3015_v41 = vsel %vm707_vm0, %v2917_v21, %v724_v24 }
  0x41   : > { %2612 = vmatpush.msra.mxu1 %v1091_v10  ;;  %2613 = vmatpush.msra.mxu2 %v1091_v10 }
  0x42   : > { %2614 = vmatpush.msra.mxu3 %v1091_v10  ;;  %1148 = vmatpush.msra.mxu0 %v1091_v10  ;;  %v337_v10 = vld [vmem:[%s2897_s11 + $0x88] sm:$0xff] }
  0x43   : > { %2615 = vmatpush.msra.mxu1 %v1090_v14  ;;  %2616 = vmatpush.msra.mxu2 %v1090_v14  ;;  %v3002_v25 = vmax.f32 %v337_v10, 0.0  ;;  %v859_v10 = vrot.slane %v3032_v61, 7 }
  0x44   : > { %2617 = vmatpush.msra.mxu3 %v1090_v14  ;;  %1149 = vmatpush.msra.mxu0 %v1090_v14  ;;  %v2985_v14 = vsel %vm707_vm0, %v2917_v21, %v784_v0 }
  0x45   : > { %2618 = vmatpush.msra.mxu1 %v1089_v16  ;;  %2619 = vmatpush.msra.mxu2 %v1089_v16  ;;  %4308 = vst [vmem:[#allocation16_spill] sm:$0xff] %v2985_v14  ;;  %v852_v42 = vrot.slane %v3002_v25, 7 }
  0x46   : > { %2620 = vmatpush.msra.mxu3 %v1089_v16  ;;  %1150 = vmatpush.msra.mxu0 %v1089_v16  ;;  %v2991_v16 = vsel %vm707_vm0, %v2917_v21, %v844_v1 }
  0x47   : > { %2621 = vmatpush.msra.mxu1 %v1088_v19  ;;  %2622 = vmatpush.msra.mxu2 %v1088_v19  ;;  %4309 = vst [vmem:[#allocation17_spill] sm:$0xff] %v2991_v16 }
  0x48   : > { %2623 = vmatpush.msra.mxu3 %v1088_v19  ;;  %1151 = vmatpush.msra.mxu0 %v1088_v19  ;;  %v2993_v19 = vmax.f32 %v329_v8, 0.0  ;;  %v1109_v8 = vld [vmem:[#allocation5 + $0xb8] sm:$0xff] }
  0x49   : > { %2624 = vmatpush.msra.mxu1 %v1087_v23  ;;  %2625 = vmatpush.msra.mxu2 %v1087_v23 }
  0x4a   : > { %2626 = vmatpush.msra.mxu3 %v1087_v23  ;;  %1152 = vmatpush.msra.mxu0 %v1087_v23  ;;  %v2999_v23 = vsel %vm707_vm0, %v2917_v21, %v904_v4 }
  0x4b   : > { %2627 = vmatpush.msra.mxu1 %v1086_v29  ;;  %2628 = vmatpush.msra.mxu2 %v1086_v29  ;;  %4310 = vst [vmem:[#allocation18_spill] sm:$0xff] %v2999_v23 }
  0x4c   : > { %2629 = vmatpush.msra.mxu3 %v1086_v29  ;;  %1178 = vmatmul.f32.vlgmr.msra.gmra.mxu1 %v2927_v30 }
  0x4d   : > { %1202 = vmatmul.f32.vlgmr.msra.gmra.mxu2 %v2933_v32  ;;  %1226 = vmatmul.f32.vlgmr.msra.gmra.mxu3 %v2937_v33 }
  0x4e   : > { %1364 = vmatpush.msrb.mxu2 %v1133_v36  ;;  %1526 = vmatpush.msrb.mxu3 %v1493_v37  ;;  %v1126_v36 = vld [vmem:[#allocation5 + $0x140] sm:$0xff] }
  0x4f   : > { %1153 = vmatpush.msra.mxu0 %v1086_v29  ;;  %1251 = vmatpush.msrb.mxu1 %v1117_v38  ;;  %v321_v29 = vld [vmem:[%s2897_s11 + $0x8] sm:$0xff]  ;;  %v1486_v37 = vld [vmem:[#allocation5 + $0x1c0] sm:$0xff]  ;;  %v792_v38 = vrot.slane %v2993_v19, 7 }
  0x50   : > { %1365 = vmatpush.msrb.mxu2 %v1132_v39  ;;  %1527 = vmatpush.msrb.mxu3 %v1492_v40  ;;  %v1504_v39 = vld [vmem:[#allocation5 + $0x250] sm:$0xff]  ;;  %v1111_v40 = vld [vmem:[#allocation5 + $0xc8] sm:$0xff] }
  0x51   : > { %1154 = vmatmul.f32.vlgmr.msra.gmra.mxu0 %v2917_v21  ;;  %1252 = vmatpush.msrb.mxu1 %v1116_v44  ;;  %v3019_v44 = vmax.f32 %v321_v29, 0.0  ;;  %v339_v29 = vld [vmem:[%s2897_s11 + $0x98] sm:$0xff] }
  0x52   : > { %1366 = vmatpush.msrb.mxu2 %v1131_v47  ;;  %1528 = vmatpush.msrb.mxu3 %v1491_v48  ;;  %v1125_v47 = vld [vmem:[#allocation5 + $0x138] sm:$0xff]  ;;  %v346_v48 = vld [vmem:[%s2897_s11 + $0xd0] sm:$0xff] }
  0x53   : > { %1639 = vmatpush.msrb.mxu0 %v1509_v50  ;;  %1253 = vmatpush.msrb.mxu1 %v1115_v51  ;;  %v1503_v50 = vld [vmem:[#allocation5 + $0x248] sm:$0xff]  ;;  %v1110_v51 = vld [vmem:[#allocation5 + $0xc0] sm:$0xff] }
  0x54   : > { %1181 = vmatmul.f32.gmra.mxu1 %v2954_v52  ;;  %1367 = vmatpush.msrb.mxu2 %v1130_v53  ;;  %v1124_v53 = vld [vmem:[#allocation5 + $0x130] sm:$0xff] }
  0x55   : > { %1205 = vmatmul.f32.gmra.mxu2 %v2961_v56  ;;  %1229 = vmatmul.f32.gmra.mxu3 %v2964_v57 }
  0x56   : > { %1529 = vmatpush.msrb.mxu3 %v1490_v59  ;;  %1640 = vmatpush.msrb.mxu0 %v1508_v60  ;;  %v3028_v59 = vsel %vm707_vm0, %v784_v0, %v792_v38  ;;  %v3030_v60 = vmax.f32 %v330_v45, 0.0  ;;  %v3045_v0 = vmax.f32 %v346_v48, 0.0  ;;  %v1482_v38 = vld [vmem:[#allocation5 + $0x1a0] sm:$0xff] }
  0x57   : > { %1368 = vmatpush.msrb.mxu2 %v1129_v62  ;;  %1254 = vmatpush.msrb.mxu1 %v1114_v63  ;;  %4312 = vst [vmem:[#allocation20_spill] sm:$0xff] %v3028_v59  ;;  %v1484_v62 = vld [vmem:[#allocation5 + $0x1b0] sm:$0xff]  ;;  %v3037_v63 = vsel %vm707_vm0, %v844_v1, %v852_v42  ;;  %v1123_v1 = vld [vmem:[#allocation5 + $0x128] sm:$0xff] }
  0x58   : > { %1530 = vmatpush.msrb.mxu3 %v1489_v2  ;;  %1641 = vmatpush.msrb.mxu0 %v1507_v3  ;;  %4313 = vst [vmem:[#allocation21_spill] sm:$0xff] %v3037_v63  ;;  %v3042_v2 = vsel %vm707_vm0, %v904_v4, %v912_v43  ;;  %v732_v3 = vrot.slane %v3019_v44, 7  ;;  %v1483_v4 = vld [vmem:[#allocation5 + $0x1a8] sm:$0xff]  ;;  %v3075_v43 = vsel %vm707_vm0, %v2917_v21, %v859_v10 }
  0x59   : > { %1157 = vmatmul.f32.gmra.mxu0 %v2917_v21  ;;  %1369 = vmatpush.msrb.mxu2 %v1128_v5  ;;  %4314 = vst [vmem:[#allocation22_spill] sm:$0xff] %v3042_v2  ;;  %v1502_v5 = vld [vmem:[#allocation5 + $0x240] sm:$0xff] }
  0x5a   : > { %1531 = vmatpush.msrb.mxu3 %v1488_v6  ;;  %1642 = vmatpush.msrb.mxu0 %v1506_v9  ;;  %4315 = vst [vmem:[#allocation23_spill] sm:$0xff] %v3045_v0  ;;  %v322_v6 = vld [vmem:[%s2897_s11 + $0x10] sm:$0xff]  ;;  %v799_v9 = vrot.slane %v3030_v60, 7 }
  0x5b   : > { %1255 = vmatpush.msrb.mxu1 %v1113_v12  ;;  %1370 = vmatpush.msrb.mxu2 %v1127_v13  ;;  %v1108_v12 = vld [vmem:[#allocation5 + $0xb0] sm:$0xff]  ;;  %v3056_v13 = vsel %vm707_vm0, %v724_v24, %v732_v3  ;;  %v1121_v24 = vld [vmem:[#allocation5 + $0x118] sm:$0xff]  ;;  %4317 = vst [vmem:[#allocation25_spill] sm:$0xff] %v3075_v43 }
  0x5c   : > { %1184 = vmatmul.f32.gmra.mxu1 %v2985_v14  ;;  %1532 = vmatpush.msrb.mxu3 %v1487_v22  ;;  %v919_v22 = vrot.slane %v3045_v0, 7  ;;  %v3069_v42 = vsel %vm707_vm0, %v2917_v21, %v799_v9  ;;  %v1120_v3 = vld [vmem:[#allocation5 + $0x110] sm:$0xff] }
  0x5d   : > { %1208 = vmatmul.f32.gmra.mxu2 %v2991_v16  ;;  %1232 = vmatmul.f32.gmra.mxu3 %v2999_v23  ;;  %4316 = vst [vmem:[#allocation24_spill] sm:$0xff] %v3069_v42 }
  0x5e   : > { %1643 = vmatpush.msrb.mxu0 %v1505_v27  ;;  %1256 = vmatpush.msrb.mxu1 %v1112_v28  ;;  %v3059_v27 = vmax.f32 %v322_v6, 0.0  ;;  %v331_v28 = vld [vmem:[%s2897_s11 + $0x58] sm:$0xff] }
  0x5f   : > { %1371 = vmatpush.msrb.mxu2 %v1126_v36  ;;  %1533 = vmatpush.msrb.mxu3 %v1486_v37  ;;  %v1122_v36 = vld [vmem:[#allocation5 + $0x120] sm:$0xff]  ;;  %v347_v37 = vld [vmem:[%s2897_s11 + $0xd8] sm:$0xff]  ;;  %v3077_v45 = vmax.f32 %v331_v28, 0.0 }
  0x60   : > { %1644 = vmatpush.msrb.mxu0 %v1504_v39  ;;  %1257 = vmatpush.msrb.mxu1 %v1111_v40  ;;  %v1500_v39 = vld [vmem:[#allocation5 + $0x230] sm:$0xff]  ;;  %v1107_v40 = vld [vmem:[#allocation5 + $0xa8] sm:$0xff]  ;;  %v739_v48 = vrot.slane %v3059_v27, 7  ;;  %v532_v57 = vrot.slane %v3059_v27, 1 }
  0x61   : > { %1160 = vmatmul.f32.gmra.mxu0 %v3015_v41  ;;  %1372 = vmatpush.msrb.mxu2 %v1125_v47  ;;  %v3083_v47 = vsel %vm707_vm0, %v2917_v21, %v919_v22  ;;  %v807_v6 = vrot.slane %v3077_v45, 7 }
  0x62   : > { %1534 = vmatpush.msrb.mxu3 %v1485_v49  ;;  %1645 = vmatpush.msrb.mxu0 %v1503_v50  ;;  %4318 = vst [vmem:[#allocation26_spill] sm:$0xff] %v3083_v47  ;;  %v3086_v49 = vmax.f32 %v339_v29, 0.0  ;;  %v3088_v50 = vmax.f32 %v347_v37, 0.0  ;;  %v332_v29 = vld [vmem:[%s2897_s11 + $0x60] sm:$0xff]  ;;  %v1119_v37 = vld [vmem:[#allocation5 + $0x108] sm:$0xff] }
  0x63   : > { %1258 = vmatpush.msrb.mxu1 %v1110_v51  ;;  %1373 = vmatpush.msrb.mxu2 %v1124_v53  ;;  %v323_v51 = vld [vmem:[%s2897_s11 + $0x18] sm:$0xff]  ;;  %v1499_v53 = vld [vmem:[#allocation5 + $0x228] sm:$0xff] }
  0x64   : > { %1187 = vmatmul.f32.gmra.mxu1 %v3028_v59  ;;  %1535 = vmatpush.msrb.mxu3 %v1484_v62  ;;  %4319 = vst [vmem:[#allocation27_spill] sm:$0xff] %v3088_v50  ;;  %v1106_v62 = vld [vmem:[#allocation5 + $0xa0] sm:$0xff]  ;;  %v3103_v28 = vmax.f32 %v323_v51, 0.0  ;;  %v3112_v51 = vsel %vm707_vm0, %v799_v9, %v807_v6 }
  0x65   : > { %1211 = vmatmul.f32.gmra.mxu2 %v3037_v63  ;;  %1235 = vmatmul.f32.gmra.mxu3 %v3042_v2  ;;  %4320 = vst [vmem:[#allocation28_spill] sm:$0xff] %v3112_v51  ;;  %v324_v6 = vld [vmem:[%s2897_s11 + $0x20] sm:$0xff]  ;;  %v1945_v2 = vld [vmem:[#allocation5 + $0x478] sm:$0xff] }
  0x66   : > { %1646 = vmatpush.msrb.mxu0 %v1502_v5  ;;  %1259 = vmatpush.msrb.mxu1 %v1109_v8  ;;  %v1480_v5 = vld [vmem:[#allocation5 + $0x190] sm:$0xff]  ;;  %v1498_v8 = vld [vmem:[#allocation5 + $0x220] sm:$0xff] }
  0x67   : > { %1374 = vmatpush.msrb.mxu2 %v1123_v1  ;;  %1536 = vmatpush.msrb.mxu3 %v1483_v4  ;;  %v1105_v1 = vld [vmem:[#allocation5 + $0x98] sm:$0xff]  ;;  %v3099_v4 = vsel %vm707_vm0, %v2917_v21, %v739_v48 }
  0x68   : > { %1647 = vmatpush.msrb.mxu0 %v1501_v11  ;;  %1260 = vmatpush.msrb.mxu1 %v1108_v12  ;;  %v867_v11 = vrot.slane %v3086_v49, 7  ;;  %v927_v12 = vrot.slane %v3088_v50, 7 }
  0x69   : > { %1163 = vmatmul.f32.gmra.mxu0 %v3056_v13  ;;  %1375 = vmatpush.msrb.mxu2 %v1122_v36  ;;  %v340_v36 = vld [vmem:[%s2897_s11 + $0xa0] sm:$0xff] }
  0x6a   : > { %1537 = vmatpush.msrb.mxu3 %v1482_v38  ;;  %1648 = vmatpush.msrb.mxu0 %v1500_v39  ;;  %v348_v38 = vld [vmem:[%s2897_s11 + $0xe0] sm:$0xff]  ;;  %v1479_v39 = vld [vmem:[#allocation5 + $0x188] sm:$0xff] }
  0x6b   : > { %1261 = vmatpush.msrb.mxu1 %v1107_v40  ;;  %1376 = vmatpush.msrb.mxu2 %v1121_v24  ;;  %v1497_v40 = vld [vmem:[#allocation5 + $0x218] sm:$0xff]  ;;  %v1104_v24 = vld [vmem:[#allocation5 + $0x90] sm:$0xff]  ;;  %v3129_v9 = vmax.f32 %v348_v38, 0.0  ;;  %v1495_v38 = vld [vmem:[#allocation5 + $0x208] sm:$0xff] }
  0x6c   : > { %1190 = vmatmul.f32.gmra.mxu1 %v3069_v42  ;;  %1538 = vmatpush.msrb.mxu3 %v1481_v46  ;;  %v1118_v46 = vld [vmem:[#allocation5 + $0x100] sm:$0xff] }
  0x6d   : > { %1214 = vmatmul.f32.gmra.mxu2 %v3075_v43  ;;  %1238 = vmatmul.f32.gmra.mxu3 %v3083_v47  ;;  %4323 = vst [vmem:[#allocation31_spill] sm:$0xff] %v3129_v9  ;;  %v1494_v47 = vld [vmem:[#allocation5 + $0x200] sm:$0xff] }
  0x6e   : > { %1649 = vmatpush.msrb.mxu0 %v1499_v53  ;;  %1262 = vmatpush.msrb.mxu1 %v1106_v62  ;;  %v3114_v53 = vmax.f32 %v332_v29, 0.0  ;;  %v3116_v62 = vmax.f32 %v340_v36, 0.0  ;;  %v1496_v29 = vld [vmem:[#allocation5 + $0x210] sm:$0xff]  ;;  %v1103_v36 = vld [vmem:[#allocation5 + $0x88] sm:$0xff] }
  0x6f   : > { %1377 = vmatpush.msrb.mxu2 %v1120_v3  ;;  %1539 = vmatpush.msrb.mxu3 %v1480_v5  ;;  %v1478_v3 = vld [vmem:[#allocation5 + $0x180] sm:$0xff]  ;;  %v3121_v5 = vsel %vm707_vm0, %v859_v10, %v867_v11  ;;  %v1913_v10 = vld [vmem:[#allocation5 + $0x378] sm:$0xff] }
  0x70   : > { %1650 = vmatpush.msrb.mxu0 %v1498_v8  ;;  %1263 = vmatpush.msrb.mxu1 %v1105_v1  ;;  %4321 = vst [vmem:[#allocation29_spill] sm:$0xff] %v3121_v5  ;;  %v3126_v8 = vsel %vm707_vm0, %v919_v22, %v927_v12  ;;  %v747_v1 = vrot.slane %v3103_v28, 7  ;;  %v1929_v22 = vld [vmem:[#allocation5 + $0x3f8] sm:$0xff]  ;;  %v814_v11 = vrot.slane %v3114_v53, 7  ;;  %v874_v12 = vrot.slane %v3116_v62, 7 }
  0x71   : > { %1166 = vmatmul.f32.gmra.mxu0 %v3099_v4  ;;  %1378 = vmatpush.msrb.mxu2 %v1119_v37  ;;  %4322 = vst [vmem:[#allocation30_spill] sm:$0xff] %v3126_v8  ;;  %v1102_v37 = vld [vmem:[#allocation5 + $0x80] sm:$0xff] }
  0x72   : > { %1540 = vmatpush.msrb.mxu3 %v1479_v39  ;;  %1651 = vmatpush.msrb.mxu0 %v1497_v40  ;;  %v3140_v39 = vsel %vm707_vm0, %v739_v48, %v747_v1  ;;  %v934_v40 = vrot.slane %v3129_v9, 7  ;;  %v3151_v48 = vsel %vm707_vm0, %v2917_v21, %v814_v11  ;;  %v3155_v1 = vsel %vm707_vm0, %v2917_v21, %v874_v12 }
  0x73   : > { %1264 = vmatpush.msrb.mxu1 %v1104_v24  ;;  %1379 = vmatpush.msrb.mxu2 %v1118_v46  ;;  %v3143_v24 = vmax.f32 %v324_v6, 0.0  ;;  %v333_v46 = vld [vmem:[%s2897_s11 + $0x68] sm:$0xff]  ;;  %4324 = vst [vmem:[#allocation32_spill] sm:$0xff] %v3151_v48 }
  0x74   : > { %1193 = vmatmul.f32.gmra.mxu1 %v3112_v51  ;;  %1541 = vmatpush.msrb.mxu3 %v1478_v3  ;;  %v1525_v3 = vld [vmem:[#allocation5 + $0x2f8] sm:$0xff]  ;;  %4325 = vst [vmem:[#allocation33_spill] sm:$0xff] %v3155_v1  ;;  %v3157_v6 = vmax.f32 %v333_v46, 0.0  ;;  %v1912_v46 = vld [vmem:[#allocation5 + $0x370] sm:$0xff] }
  0x75   : > { %1217 = vmatmul.f32.gmra.mxu2 %v3121_v5  ;;  %1241 = vmatmul.f32.gmra.mxu3 %v3126_v8  ;;  %v349_v8 = vld [vmem:[%s2897_s11 + $0xe8] sm:$0xff] }
  0x76   : > { %1652 = vmatpush.msrb.mxu0 %v1496_v29  ;;  %1265 = vmatpush.msrb.mxu1 %v1103_v36  ;;  %v3161_v29 = vsel %vm707_vm0, %v2917_v21, %v934_v40  ;;  %v754_v36 = vrot.slane %v3143_v24, 7 }
  0x77   : > { %1946 = vmatpush.msra.mxu2 %v1913_v10  ;;  %2059 = vmatpush.msra.mxu3 %v1929_v22  ;;  %4326 = vst [vmem:[#allocation34_spill] sm:$0xff] %v3161_v29  ;;  %v3164_v10 = vmax.f32 %v341_v20, 0.0  ;;  %v3166_v22 = vmax.f32 %v349_v8, 0.0 }
  0x78   : > { %1266 = vmatpush.msrb.mxu1 %v1102_v37  ;;  %1653 = vmatpush.msrb.mxu0 %v1495_v38  ;;  %v325_v37 = vld [vmem:[%s2897_s11 + $0x28] sm:$0xff]  ;;  %v822_v38 = vrot.slane %v3157_v6, 7  ;;  %v3175_v9 = vsel %vm707_vm0, %v2917_v21, %v754_v36 }
  0x79   : > { %1169 = vmatmul.f32.gmra.mxu0 %v3140_v39  ;;  %4327 = vst [vmem:[#allocation35_spill] sm:$0xff] %v3166_v22  ;;  %v882_v20 = vrot.slane %v3164_v10, 7  ;;  %v3179_v8 = vmax.f32 %v325_v37, 0.0  ;;  %1947 = vmatpush.msra.mxu2 %v1912_v46  ;;  %v529_v37 = vrot.slane %v2975_v7, 1  ;;  %v530_v46 = vrot.slane %v3019_v44, 1 }
  0x7a   : > { %1752 = vmatpush.msra.mxu1 %v1525_v3  ;;  %1654 = vmatpush.msrb.mxu0 %v1494_v47  ;;  %v1928_v3 = vld [vmem:[#allocation5 + $0x3f0] sm:$0xff]  ;;  %v942_v47 = vrot.slane %v3166_v22, 7 }
  0x7b   : > { %2060 = vmatpush.msra.mxu3 %v1928_v3  ;;  %v3186_v50 = vsel %vm707_vm0, %v874_v12, %v882_v20  ;;  %v762_v0 = vrot.slane %v3179_v8, 7  ;;  %v4331_v3 = vmov 0.0   ;;  %v1944_v12 = vld [vmem:[#allocation5 + $0x470] sm:$0xff] }
  0x7c   : > { %2172 = vmatpush.msra.mxu0 %v1945_v2  ;;  %1196 = vmatmul.f32.gmra.mxu1 %v3151_v48  ;;  %v3183_v2 = vsel %vm707_vm0, %v814_v11, %v822_v38  ;;  %4329 = vst [vmem:[#allocation37_spill] sm:$0xff] %v3186_v50  ;;  %v3189_v21 = vsel %vm707_vm0, %v934_v40, %v942_v47  ;;  %v526_v22 = vrot.slane %v4331_v3, 1  ;;  %v3199_v11 = vrot.slane %v4331_v3, 2 }
  0x7d   : > { %1220 = vmatmul.f32.gmra.mxu2 %v3155_v1  ;;  %1244 = vmatmul.f32.gmra.mxu3 %v3161_v29  ;;  %4328 = vst [vmem:[#allocation36_spill] sm:$0xff] %v3183_v2  ;;  %v1524_v29 = vld [vmem:[#allocation5 + $0x2f0] sm:$0xff]  ;;  %v3202_v40 = vsel %vm707_vm0, %v754_v36, %v762_v0  ;;  %v726_v47 = vrot.slane %v529_v37, 7  ;;  %v1911_v0 = vld [vmem:[#allocation5 + $0x368] sm:$0xff] }
  0x7e   : > { %4330 = vst [vmem:[#allocation38_spill] sm:$0xff] %v3189_v21  ;;  %1753 = vmatpush.msra.mxu1 %v1524_v29  ;;  %2173 = vmatpush.msra.mxu0 %v1944_v12  ;;  %v531_v29 = vsel %vm525_vm1, %v529_v37, %v530_v46  ;;  %v3205_v38 = vrot.slane %v526_v22, 7  ;;  %v3209_v20 = vrot.slane %v3199_v11, 7  ;;  %v1927_v36 = vld [vmem:[#allocation5 + $0x3e8] sm:$0xff]  ;;  %v604_v22 = vrot.slane %v2975_v7, 2 }
  0x7f   : > { %4332 = vst [vmem:[#allocation39_spill] sm:$0xff] %v3202_v40  ;;  %v727_v23 = vrot.slane %v531_v29, 7  ;;  %1948 = vmatpush.msra.mxu2 %v1911_v0  ;;  %2061 = vmatpush.msra.mxu3 %v1927_v36  ;;  %v605_v12 = vrot.slane %v3019_v44, 2  ;;  %v1523_v37 = vld [vmem:[#allocation5 + $0x2e8] sm:$0xff]  ;;  %v734_v29 = vrot.slane %v530_v46, 7 }
  0x80   : > { %4333 = vst [vmem:[#allocation40_spill] sm:$0xff] %v3205_v38  ;;  %1754 = vmatpush.msra.mxu1 %v1523_v37  ;;  %v1943_v7 = vld [vmem:[#allocation5 + $0x468] sm:$0xff]  ;;  %v741_v37 = vrot.slane %v532_v57, 7 }
  0x81   : > { %1172 = vmatmul.f32.gmra.mxu0 %v3175_v9  ;;  %4334 = vst [vmem:[#allocation41_spill] sm:$0xff] %v3209_v20  ;;  %v728_v3 = vsel %vm707_vm0, %v726_v47, %v727_v23  ;;  %v735_v44 = vsel %vm707_vm0, %v727_v23, %v734_v29  ;;  %v729_v47 = vrot.slane %v604_v22, 7  ;;  %v1910_v23 = vld [vmem:[#allocation5 + $0x360] sm:$0xff]  ;;  %v609_v29 = vrot.slane %v3059_v27, 2 }
  0x82   : > { %2174 = vmatpush.msra.mxu0 %v1943_v7  ;;  %1949 = vmatpush.msra.mxu2 %v1910_v23  ;;  %v1942_v27 = vld [vmem:[#allocation5 + $0x460] sm:$0xff] }
  0x84   : > { %1199 = vmatmul.f32.gmra.mxu1 %v3183_v2  ;;  %2175 = vmatpush.msra.mxu0 %v1942_v27 }
  0x85   : > { %1223 = vmatmul.f32.gmra.mxu2 %v3186_v50  ;;  %1247 = vmatmul.f32.gmra.mxu3 %v3189_v21  ;;  %v606_v21 = vsel %vm598_vm2, %v604_v22, %v605_v12 }
  0x86   : > { %v730_v0 = vrot.slane %v606_v21, 7 }
  0x88   : > { %v3226_v36 = vsel %vm707_vm0, %v729_v47, %v730_v0 }
  0x89   : > { %1175 = vmatmul.f32.gmra.mxu0 %v3202_v40 }
  0x8c   : > { %1267 = vmatmul.f32.vlgmr.msrb.gmra.mxu1 %v3205_v38 }
  0x8d   : > { %1380 = vmatmul.f32.vlgmr.msrb.gmra.mxu2 %v3209_v20  ;;  %1542 = vmatmul.f32.vlgmr.msrb.gmra.mxu3 %v3015_v41  ;;  %v533_v41 = vrot.slane %v3103_v28, 1 }
  0x8f   : > { %v534_v46 = vsel %vm525_vm1, %v532_v57, %v533_v41  ;;  %v610_v57 = vrot.slane %v3103_v28, 2  ;;  %v749_v7 = vrot.slane %v533_v41, 7 }
  0x90   : > { %v742_v26 = vrot.slane %v534_v46, 7  ;;  %v535_v46 = vrot.slane %v3143_v24, 1 }
  0x91   : > { %1655 = vmatmul.f32.vlgmr.msrb.gmra.mxu0 %v728_v3  ;;  %v611_v47 = vsel %vm598_vm2, %v609_v29, %v610_v57 }
  0x92   : > { %v3233_v21 = vsel %vm707_vm0, %v741_v37, %v742_v26  ;;  %v3247_v28 = vsel %vm707_vm0, %v742_v26, %v749_v7  ;;  %v744_v37 = vrot.slane %v609_v29, 7  ;;  %v1909_v26 = vld [vmem:[#allocation5 + $0x358] sm:$0xff] }
  0x93   : > { %v1925_v29 = vld [vmem:[#allocation5 + $0x3d8] sm:$0xff]  ;;  %1950 = vmatpush.msra.mxu2 %v1909_v26 }
  0x94   : > { %1270 = vmatmul.f32.gmra.mxu1 %v3205_v38  ;;  %v608_v38 = vsel %vm598_vm2, %v605_v12, %v3199_v11  ;;  %v1522_v12 = vld [vmem:[#allocation5 + $0x2e0] sm:$0xff] }
  0x95   : > { %1383 = vmatmul.f32.gmra.mxu2 %v3209_v20  ;;  %1545 = vmatmul.f32.gmra.mxu3 %v3056_v13  ;;  %v1926_v13 = vld [vmem:[#allocation5 + $0x3e0] sm:$0xff]  ;;  %v736_v22 = vrot.slane %v608_v38, 7  ;;  %v536_v38 = vrot.slane %v3179_v8, 1  ;;  %v538_v20 = vrot.slane %v2910_v15, 1 }
  0x96   : > { %2062 = vmatpush.msra.mxu3 %v1926_v13  ;;  %1755 = vmatpush.msra.mxu1 %v1522_v12  ;;  %v756_v13 = vrot.slane %v535_v46, 7 }
  0x97   : > { %v537_v41 = vsel %vm525_vm1, %v535_v46, %v536_v38  ;;  %v615_v46 = vrot.slane %v3179_v8, 2  ;;  %v764_v27 = vrot.slane %v536_v38, 7 }
  0x98   : > { %2063 = vmatpush.msra.mxu3 %v1925_v29  ;;  %v771_v29 = vrot.slane %v538_v20, 7 }
  0x99   : > { %1658 = vmatmul.f32.gmra.mxu0 %v735_v44 }
  0x9c   : > { %1273 = vmatmul.f32.gmra.mxu1 %v728_v3  ;;  %v3239_v3 = vsel %vm707_vm0, %v730_v0, %v736_v22  ;;  %v745_v0 = vrot.slane %v611_v47, 7  ;;  %v613_v22 = vsel %vm598_vm2, %v610_v57, %v3199_v11  ;;  %v614_v47 = vrot.slane %v3143_v24, 2  ;;  %v1941_v24 = vld [vmem:[#allocation5 + $0x458] sm:$0xff] }
  0x9d   : > { %1386 = vmatmul.f32.gmra.mxu2 %v3226_v36  ;;  %1548 = vmatmul.f32.gmra.mxu3 %v3099_v4  ;;  %v751_v7 = vrot.slane %v613_v22, 7 }
  0x9e   : > { %v3252_v23 = vsel %vm707_vm0, %v744_v37, %v745_v0  ;;  %v1521_v37 = vld [vmem:[#allocation5 + $0x2d8] sm:$0xff]  ;;  %2176 = vmatpush.msra.mxu0 %v1941_v24  ;;  %v620_v24 = vrot.slane %v2929_v31, 2 }
  0x9f   : > { %v3266_v57 = vsel %vm707_vm0, %v745_v0, %v751_v7  ;;  %1756 = vmatpush.msra.mxu1 %v1521_v37  ;;  %v759_v0 = vrot.slane %v614_v47, 7  ;;  %v618_v37 = vsel %vm598_vm2, %v615_v46, %v3199_v11 }
  0xa1   : > { %1661 = vmatmul.f32.gmra.mxu0 %v3233_v21 }
  0xa4   : > { %1276 = vmatmul.f32.gmra.mxu1 %v735_v44  ;;  %v757_v44 = vrot.slane %v537_v41, 7  ;;  %v616_v41 = vsel %vm598_vm2, %v614_v47, %v615_v46  ;;  %v1924_v47 = vld [vmem:[#allocation5 + $0x3d0] sm:$0xff] }
  0xa5   : > { %1389 = vmatmul.f32.gmra.mxu2 %v3239_v3  ;;  %1551 = vmatmul.f32.gmra.mxu3 %v3140_v39  ;;  %v760_v38 = vrot.slane %v616_v41, 7  ;;  %v766_v41 = vrot.slane %v618_v37, 7 }
  0xa6   : > { %v3260_v12 = vsel %vm707_vm0, %v756_v13, %v757_v44  ;;  %v539_v13 = vrot.slane %v2929_v31, 1  ;;  %v3275_v8 = vsel %vm707_vm0, %v757_v44, %v764_v27  ;;  %v1908_v44 = vld [vmem:[#allocation5 + $0x350] sm:$0xff]  ;;  %2064 = vmatpush.msra.mxu3 %v1924_v47 }
  0xa7   : > { %4335 = vst [vmem:[#allocation42_spill] sm:$0xff] %v3275_v8  ;;  %v3280_v26 = vsel %vm707_vm0, %v759_v0, %v760_v38  ;;  %1951 = vmatpush.msra.mxu2 %v1908_v44  ;;  %v3294_v46 = vsel %vm707_vm0, %v760_v38, %v766_v41 }
  0xa8   : > { %v540_v22 = vsel %vm525_vm1, %v538_v20, %v539_v13  ;;  %v619_v20 = vrot.slane %v2910_v15, 2  ;;  %4337 = vst [vmem:[#allocation44_spill] sm:$0xff] %v3294_v46  ;;  %v779_v0 = vrot.slane %v539_v13, 7  ;;  %v1940_v15 = vld [vmem:[#allocation5 + $0x450] sm:$0xff] }
  0xa9   : > { %1664 = vmatmul.f32.gmra.mxu0 %v3247_v28  ;;  %v772_v7 = vrot.slane %v540_v22, 7  ;;  %v1520_v22 = vld [vmem:[#allocation5 + $0x2d0] sm:$0xff] }
  0xaa   : > { %1757 = vmatpush.msra.mxu1 %v1520_v22  ;;  %v774_v38 = vrot.slane %v619_v20, 7  ;;  %2177 = vmatpush.msra.mxu0 %v1940_v15 }
  0xab   : > { %v3288_v27 = vsel %vm707_vm0, %v771_v29, %v772_v7  ;;  %v542_v29 = vrot.slane %v2993_v19, 1  ;;  %v3303_v31 = vsel %vm707_vm0, %v772_v7, %v779_v0  ;;  %v1907_v7 = vld [vmem:[#allocation5 + $0x348] sm:$0xff] }
  0xac   : > { %1279 = vmatmul.f32.gmra.mxu1 %v3233_v21  ;;  %4336 = vst [vmem:[#allocation43_spill] sm:$0xff] %v3288_v27  ;;  %1952 = vmatpush.msra.mxu2 %v1907_v7  ;;  %v1519_v7 = vld [vmem:[#allocation5 + $0x2c8] sm:$0xff] }
  0xad   : > { %1392 = vmatmul.f32.gmra.mxu2 %v3252_v23  ;;  %1554 = vmatmul.f32.gmra.mxu3 %v3175_v9  ;;  %4338 = vst [vmem:[#allocation45_spill] sm:$0xff] %v3303_v31 }
  0xae   : > { %1758 = vmatpush.msra.mxu1 %v1519_v7 }
  0xb1   : > { %1667 = vmatmul.f32.gmra.mxu0 %v3260_v12 }
  0xb4   : > { %1282 = vmatmul.f32.gmra.mxu1 %v3247_v28 }
  0xb5   : > { %1395 = vmatmul.f32.gmra.mxu2 %v3266_v57  ;;  %1557 = vmatmul.f32.gmra.mxu3 %v3202_v40  ;;  %v541_v40 = vrot.slane %v2956_v54, 1 }
  0xb7   : > { %v543_v37 = vsel %vm525_vm1, %v541_v40, %v542_v29  ;;  %v786_v41 = vrot.slane %v541_v40, 7 }
  0xb8   : > { %v787_v22 = vrot.slane %v543_v37, 7 }
  0xb9   : > { %1670 = vmatmul.f32.gmra.mxu0 %v3275_v8 }
  0xba   : > { %v3325_v40 = vsel %vm707_vm0, %v786_v41, %v787_v22  ;;  %v794_v41 = vrot.slane %v542_v29, 7 }
  0xbb   : > { %4341 = vst [vmem:[#allocation48_spill] sm:$0xff] %v3325_v40 }
  0xbc   : > { %1285 = vmatmul.f32.gmra.mxu1 %v3260_v12 }
  0xbd   : > { %1398 = vmatmul.f32.gmra.mxu2 %v3280_v26  ;;  %1560 = vmatmul.f32.gmra.mxu3 %v2927_v30  ;;  %v621_v30 = vsel %vm598_vm2, %v619_v20, %v620_v24  ;;  %v1923_v20 = vld [vmem:[#allocation5 + $0x3c8] sm:$0xff] }
  0xbe   : > { %v775_v13 = vrot.slane %v621_v30, 7  ;;  %v3318_v30 = vld [vmem:[%s4198_s2] ss:$0 sm:$0xff]  ;;  %2065 = vmatpush.msra.mxu3 %v1923_v20  ;;  %v545_v20 = vrot.slane %v3077_v45, 1 }
  0xc0   : > { %v3310_v47 = vsel %vm707_vm0, %v774_v38, %v775_v13  ;;  %v625_v38 = vrot.slane %v2993_v19, 2  ;;  %v544_v19 = vrot.slane %v3030_v60, 1 }
  0xc1   : > { %1673 = vmatmul.f32.gmra.mxu0 %v3288_v27  ;;  %4339 = vst [vmem:[#allocation46_spill] sm:$0xff] %v3310_v47 }
  0xc4   : > { %1288 = vmatmul.f32.gmra.mxu1 %v3275_v8 }
  0xc5   : > { %1401 = vmatmul.f32.gmra.mxu2 %v3294_v46  ;;  %1563 = vmatmul.f32.gmra.mxu3 %v2954_v52  ;;  %v623_v52 = vsel %vm598_vm2, %v620_v24, %v3199_v11  ;;  %v624_v24 = vrot.slane %v2956_v54, 2 }
  0xc6   : > { %v781_v15 = vrot.slane %v623_v52, 7 }
  0xc7   : > { %v626_v54 = vsel %vm598_vm2, %v624_v24, %v625_v38  ;;  %v789_v29 = vrot.slane %v624_v24, 7  ;;  %v801_v24 = vrot.slane %v544_v19, 7 }
  0xc8   : > { %v3339_v52 = vsel %vm707_vm0, %v775_v13, %v781_v15  ;;  %v3350_v13 = vsel %vm707_vm0, %v787_v22, %v794_v41  ;;  %v790_v15 = vrot.slane %v626_v54, 7  ;;  %v628_v54 = vsel %vm598_vm2, %v625_v38, %v3199_v11 }
  0xc9   : > { %v3306_v44 = vpop.f32.mrf.mxu1  ;;  %1676 = vmatmul.f32.gmra.mxu0 %v3303_v31  ;;  %4343 = vst [vmem:[#allocation50_spill] sm:$0xff] %v3339_v52  ;;  %v630_v38 = vrot.slane %v3077_v45, 2  ;;  %v547_v45 = vrot.slane %v3114_v53, 1 }
  0xca   : > { %4345 = vst [vmem:[#allocation52_spill] sm:$0xff] %v3350_v13  ;;  %v3363_v22 = vsel %vm707_vm0, %v789_v29, %v790_v15  ;;  %v796_v29 = vrot.slane %v628_v54, 7  ;;  %v809_v54 = vrot.slane %v545_v20, 7 }
  0xcb   : > { %4347 = vst [vmem:[#allocation54_spill] sm:$0xff] %v3363_v22 }
  0xcc   : > { %1291 = vmatmul.f32.gmra.mxu1 %v3288_v27 }
  0xcd   : > { %1404 = vmatmul.f32.gmra.mxu2 %v3310_v47  ;;  %1566 = vmatmul.f32.gmra.mxu3 %v2985_v14 }
  0xce   : > { %v3322_v0 = vpop.f32.mrf.mxu0 }
  0xcf   : > { %4340 = vst [vmem:[#allocation47_spill] sm:$0xff] %v3322_v0  ;;  %v546_v0 = vsel %vm525_vm1, %v544_v19, %v545_v20 }
  0xd0   : > { %v1203_v37 = vpop.f32.mrf.mxu2  ;;  %v1227_v27 = vpop.f32.mrf.mxu3  ;;  %v802_v41 = vrot.slane %v546_v0, 7  ;;  %v629_v0 = vrot.slane %v3030_v60, 2 }
  0xd1   : > { %v3330_v47 = vadd.f32 %v3318_v30, %v1203_v37  ;;  %v3333_v14 = vadd.f32 %v3318_v30, %v1227_v27  ;;  %v3335_v46 = vpop.f32.mrf.mxu1  ;;  %1679 = vmatmul.f32.gmra.mxu0 %v3325_v40  ;;  %v1939_v27 = vld [vmem:[#allocation5 + $0x448] sm:$0xff] }
  0xd2   : > { %2178 = vmatpush.msra.mxu0 %v1939_v27  ;;  %v631_v60 = vsel %vm598_vm2, %v629_v0, %v630_v38  ;;  %v804_v20 = vrot.slane %v629_v0, 7  ;;  %v816_v0 = vrot.slane %v547_v45, 7 }
  0xd3   : > { %4342 = vst [vmem:[#allocation49_spill] sm:$0xff] %v3333_v14 }
  0xd4   : > { %1294 = vmatmul.f32.gmra.mxu1 %v3303_v31 }
  0xd5   : > { %1407 = vmatmul.f32.gmra.mxu2 %v3339_v52  ;;  %1569 = vmatmul.f32.gmra.mxu3 %v3028_v59 }
  0xd6   : > { %v3347_v37 = vpop.f32.mrf.mxu0 }
  0xd7   : > { %4344 = vst [vmem:[#allocation51_spill] sm:$0xff] %v3347_v37  ;;  %v3373_v37 = vsel %vm707_vm0, %v801_v24, %v802_v41  ;;  %v3387_v24 = vsel %vm707_vm0, %v790_v15, %v796_v29  ;;  %v3398_v15 = vsel %vm707_vm0, %v802_v41, %v809_v54  ;;  %v805_v29 = vrot.slane %v631_v60, 7 }
  0xd8   : > { %v1206_v14 = vpop.f32.mrf.mxu2  ;;  %v1230_v8 = vpop.f32.mrf.mxu3  ;;  %4349 = vst [vmem:[#allocation56_spill] sm:$0xff] %v3373_v37  ;;  %v633_v60 = vsel %vm598_vm2, %v630_v38, %v3199_v11  ;;  %v635_v38 = vrot.slane %v3157_v6, 2 }
  0xd9   : > { %v3354_v7 = vadd.f32 %v3318_v30, %v1206_v14  ;;  %v3357_v52 = vadd.f32 %v3318_v30, %v1230_v8  ;;  %v3359_v59 = vpop.f32.mrf.mxu1  ;;  %1682 = vmatmul.f32.gmra.mxu0 %v3350_v13  ;;  %v1906_v14 = vld [vmem:[#allocation5 + $0x340] sm:$0xff]  ;;  %4351 = vst [vmem:[#allocation58_spill] sm:$0xff] %v3387_v24  ;;  %v3411_v41 = vsel %vm707_vm0, %v804_v20, %v805_v29  ;;  %v811_v20 = vrot.slane %v633_v60, 7 }
  0xda   : > { %v1922_v8 = vld [vmem:[#allocation5 + $0x3c0] sm:$0xff]  ;;  %1953 = vmatpush.msra.mxu2 %v1906_v14  ;;  %4353 = vst [vmem:[#allocation60_spill] sm:$0xff] %v3398_v15 }
  0xdb   : > { %4346 = vst [vmem:[#allocation53_spill] sm:$0xff] %v3357_v52  ;;  %2066 = vmatpush.msra.mxu3 %v1922_v8  ;;  %v1518_v14 = vld [vmem:[#allocation5 + $0x2c0] sm:$0xff]  ;;  %v548_v8 = vrot.slane %v3157_v6, 1  ;;  %v550_v6 = vrot.slane %v2912_v17, 1 }
  0xdc   : > { %1297 = vmatmul.f32.gmra.mxu1 %v3325_v40  ;;  %4355 = vst [vmem:[#allocation62_spill] sm:$0xff] %v3411_v41 }
  0xdd   : > { %1410 = vmatmul.f32.gmra.mxu2 %v3363_v22  ;;  %1572 = vmatmul.f32.gmra.mxu3 %v3069_v42  ;;  %v824_v60 = vrot.slane %v548_v8, 7 }
  0xde   : > { %v3370_v27 = vpop.f32.mrf.mxu0  ;;  %1759 = vmatpush.msra.mxu1 %v1518_v14 }
  0xdf   : > { %4348 = vst [vmem:[#allocation55_spill] sm:$0xff] %v3370_v27  ;;  %v549_v27 = vsel %vm525_vm1, %v547_v45, %v548_v8 }
  0xe0   : > { %v1209_v19 = vpop.f32.mrf.mxu2  ;;  %v1233_v52 = vpop.f32.mrf.mxu3  ;;  %v817_v54 = vrot.slane %v549_v27, 7  ;;  %v634_v27 = vrot.slane %v3114_v53, 2 }
  0xe1   : > { %v3378_v22 = vadd.f32 %v3318_v30, %v1209_v19  ;;  %v3381_v42 = vadd.f32 %v3318_v30, %v1233_v52  ;;  %v3383_v40 = vpop.f32.mrf.mxu1  ;;  %1685 = vmatmul.f32.gmra.mxu0 %v3373_v37  ;;  %v1938_v52 = vld [vmem:[#allocation5 + $0x440] sm:$0xff] }
  0xe2   : > { %2179 = vmatpush.msra.mxu0 %v1938_v52  ;;  %v636_v53 = vsel %vm598_vm2, %v634_v27, %v635_v38  ;;  %v819_v8 = vrot.slane %v634_v27, 7  ;;  %v831_v27 = vrot.slane %v550_v6, 7 }
  0xe3   : > { %4350 = vst [vmem:[#allocation57_spill] sm:$0xff] %v3381_v42 }
  0xe4   : > { %1300 = vmatmul.f32.gmra.mxu1 %v3350_v13 }
  0xe5   : > { %1413 = vmatmul.f32.gmra.mxu2 %v3387_v24  ;;  %1575 = vmatmul.f32.gmra.mxu3 %v3112_v51 }
  0xe6   : > { %v3395_v19 = vpop.f32.mrf.mxu0 }
  0xe7   : > { %4352 = vst [vmem:[#allocation59_spill] sm:$0xff] %v3395_v19  ;;  %v3421_v19 = vsel %vm707_vm0, %v816_v0, %v817_v54  ;;  %v3435_v0 = vsel %vm707_vm0, %v805_v29, %v811_v20  ;;  %v3446_v29 = vsel %vm707_vm0, %v817_v54, %v824_v60  ;;  %v820_v20 = vrot.slane %v636_v53, 7 }
  0xe8   : > { %v1212_v42 = vpop.f32.mrf.mxu2  ;;  %v1236_v31 = vpop.f32.mrf.mxu3  ;;  %4357 = vst [vmem:[#allocation64_spill] sm:$0xff] %v3421_v19  ;;  %v638_v53 = vsel %vm598_vm2, %v635_v38, %v3199_v11  ;;  %v640_v38 = vrot.slane %v2939_v34, 2 }
  0xe9   : > { %v3402_v14 = vadd.f32 %v3318_v30, %v1212_v42  ;;  %v3405_v24 = vadd.f32 %v3318_v30, %v1236_v31  ;;  %v3407_v51 = vpop.f32.mrf.mxu1  ;;  %1688 = vmatmul.f32.gmra.mxu0 %v3398_v15  ;;  %v1905_v42 = vld [vmem:[#allocation5 + $0x338] sm:$0xff]  ;;  %4359 = vst [vmem:[#allocation66_spill] sm:$0xff] %v3435_v0  ;;  %v3459_v54 = vsel %vm707_vm0, %v819_v8, %v820_v20  ;;  %v826_v8 = vrot.slane %v638_v53, 7 }
  0xea   : > { %v1921_v31 = vld [vmem:[#allocation5 + $0x3b8] sm:$0xff]  ;;  %1954 = vmatpush.msra.mxu2 %v1905_v42  ;;  %4362 = vst [vmem:[#allocation69_spill] sm:$0xff] %v3459_v54 }
  0xeb   : > { %4354 = vst [vmem:[#allocation61_spill] sm:$0xff] %v3405_v24  ;;  %2067 = vmatpush.msra.mxu3 %v1921_v31  ;;  %v1517_v42 = vld [vmem:[#allocation5 + $0x2b8] sm:$0xff]  ;;  %v551_v31 = vrot.slane %v2939_v34, 1  ;;  %v553_v34 = vrot.slane %v2958_v55, 1 }
  0xec   : > { %1303 = vmatmul.f32.gmra.mxu1 %v3373_v37 }
  0xed   : > { %1416 = vmatmul.f32.gmra.mxu2 %v3411_v41  ;;  %1578 = vmatmul.f32.gmra.mxu3 %v3151_v48  ;;  %v839_v53 = vrot.slane %v551_v31, 7 }
  0xee   : > { %v3418_v52 = vpop.f32.mrf.mxu0  ;;  %1760 = vmatpush.msra.mxu1 %v1517_v42 }
  0xef   : > { %4356 = vst [vmem:[#allocation63_spill] sm:$0xff] %v3418_v52  ;;  %v552_v52 = vsel %vm525_vm1, %v550_v6, %v551_v31 }
  0xf0   : > { %v1215_v45 = vpop.f32.mrf.mxu2  ;;  %v1239_v24 = vpop.f32.mrf.mxu3  ;;  %v832_v60 = vrot.slane %v552_v52, 7  ;;  %v639_v52 = vrot.slane %v2912_v17, 2 }
  0xf1   : > { %v3426_v41 = vadd.f32 %v3318_v30, %v1215_v45  ;;  %v3429_v48 = vadd.f32 %v3318_v30, %v1239_v24  ;;  %v3431_v37 = vpop.f32.mrf.mxu1  ;;  %1691 = vmatmul.f32.gmra.mxu0 %v3421_v19  ;;  %v1937_v24 = vld [vmem:[#allocation5 + $0x438] sm:$0xff] }
  0xf2   : > { %2180 = vmatpush.msra.mxu0 %v1937_v24  ;;  %v641_v17 = vsel %vm598_vm2, %v639_v52, %v640_v38  ;;  %v834_v31 = vrot.slane %v639_v52, 7  ;;  %v846_v52 = vrot.slane %v553_v34, 7 }
  0xf3   : > { %4358 = vst [vmem:[#allocation65_spill] sm:$0xff] %v3429_v48 }
  0xf4   : > { %1306 = vmatmul.f32.gmra.mxu1 %v3398_v15 }
  0xf5   : > { %1419 = vmatmul.f32.gmra.mxu2 %v3435_v0  ;;  %1581 = vmatmul.f32.gmra.mxu3 %v3183_v2 }
  0xf6   : > { %v3443_v45 = vpop.f32.mrf.mxu0 }
  0xf7   : > { %4360 = vst [vmem:[#allocation67_spill] sm:$0xff] %v3443_v45  ;;  %v3469_v45 = vsel %vm707_vm0, %v831_v27, %v832_v60  ;;  %v3483_v27 = vsel %vm707_vm0, %v820_v20, %v826_v8  ;;  %v3494_v20 = vsel %vm707_vm0, %v832_v60, %v839_v53  ;;  %v835_v8 = vrot.slane %v641_v17, 7 }
  0xf8   : > { %v1218_v48 = vpop.f32.mrf.mxu2  ;;  %v1242_v13 = vpop.f32.mrf.mxu3  ;;  %4365 = vst [vmem:[#allocation72_spill] sm:$0xff] %v3483_v27  ;;  %v643_v17 = vsel %vm598_vm2, %v640_v38, %v3199_v11 }
  0xf9   : > { %v3450_v42 = vadd.f32 %v3318_v30, %v1218_v48  ;;  %v3453_v0 = vadd.f32 %v3318_v30, %v1242_v13  ;;  %v3455_v2 = vpop.f32.mrf.mxu1  ;;  %1694 = vmatmul.f32.gmra.mxu0 %v3446_v29  ;;  %v1904_v48 = vld [vmem:[#allocation5 + $0x330] sm:$0xff]  ;;  %v3507_v60 = vsel %vm707_vm0, %v834_v31, %v835_v8 }
  0xfa   : > { %v1920_v13 = vld [vmem:[#allocation5 + $0x3b0] sm:$0xff]  ;;  %1955 = vmatpush.msra.mxu2 %v1904_v48  ;;  %4369 = vst [vmem:[#allocation76_spill] sm:$0xff] %v3507_v60 }
  0xfb   : > { %4361 = vst [vmem:[#allocation68_spill] sm:$0xff] %v3453_v0  ;;  %2068 = vmatpush.msra.mxu3 %v1920_v13  ;;  %v1516_v48 = vld [vmem:[#allocation5 + $0x2b0] sm:$0xff]  ;;  %v554_v13 = vrot.slane %v3002_v25, 1 }
  0xfc   : > { %1309 = vmatmul.f32.gmra.mxu1 %v3421_v19 }
  0xfd   : > { %1422 = vmatmul.f32.gmra.mxu2 %v3459_v54  ;;  %1584 = vmatmul.f32.gmra.mxu3 %v2933_v32 }
  0xfe   : > { %v3466_v24 = vpop.f32.mrf.mxu0  ;;  %1761 = vmatpush.msra.mxu1 %v1516_v48 }
  0xff   : > { %4363 = vst [vmem:[#allocation70_spill] sm:$0xff] %v3466_v24  ;;  %v555_v24 = vsel %vm525_vm1, %v553_v34, %v554_v13  ;;  %v645_v34 = vrot.slane %v3002_v25, 2  ;;  %v557_v25 = vrot.slane %v3086_v49, 1 }
 0x100   : > { %v1221_v6 = vpop.f32.mrf.mxu2  ;;  %v1245_v0 = vpop.f32.mrf.mxu3  ;;  %v847_v53 = vrot.slane %v555_v24, 7  ;;  %v644_v24 = vrot.slane %v2958_v55, 2  ;;  %v556_v55 = vrot.slane %v3032_v61, 1 }
 0x101   : > { %v3474_v54 = vadd.f32 %v3318_v30, %v1221_v6  ;;  %v3477_v32 = vadd.f32 %v3318_v30, %v1245_v0  ;;  %v3479_v19 = vpop.f32.mrf.mxu1  ;;  %1697 = vmatmul.f32.gmra.mxu0 %v3469_v45  ;;  %v1936_v0 = vld [vmem:[#allocation5 + $0x430] sm:$0xff] }
 0x102   : > { %2181 = vmatpush.msra.mxu0 %v1936_v0 }
 0x103   : > { %4364 = vst [vmem:[#allocation71_spill] sm:$0xff] %v3477_v32 }
 0x104   : > { %1312 = vmatmul.f32.gmra.mxu1 %v3446_v29 }
 0x105   : > { %1425 = vmatmul.f32.gmra.mxu2 %v3483_v27  ;;  %1587 = vmatmul.f32.gmra.mxu3 %v2961_v56 }
 0x106   : > { %v3491_v6 = vpop.f32.mrf.mxu0 }
 0x107   : > { %4366 = vst [vmem:[#allocation73_spill] sm:$0xff] %v3491_v6  ;;  %v3515_v6 = vsel %vm707_vm0, %v846_v52, %v847_v53  ;;  %v854_v52 = vrot.slane %v554_v13, 7  ;;  %v849_v13 = vrot.slane %v644_v24, 7 }
 0x108   : > { %v1224_v32 = vpop.f32.mrf.mxu2  ;;  %v1248_v15 = vpop.f32.mrf.mxu3 }
 0x109   : > { %v3498_v48 = vadd.f32 %v3318_v30, %v1224_v32  ;;  %v3501_v27 = vadd.f32 %v3318_v30, %v1248_v15  ;;  %v3503_v56 = vpop.f32.mrf.mxu1  ;;  %1700 = vmatmul.f32.gmra.mxu0 %v3494_v20  ;;  %v1903_v32 = vld [vmem:[#allocation5 + $0x328] sm:$0xff] }
 0x10a   : > { %4368 = vst [vmem:[#allocation75_spill] sm:$0xff] %v3503_v56  ;;  %v1919_v15 = vld [vmem:[#allocation5 + $0x3a8] sm:$0xff]  ;;  %v841_v56 = vrot.slane %v643_v17, 7  ;;  %1956 = vmatpush.msra.mxu2 %v1903_v32  ;;  %v646_v32 = vsel %vm598_vm2, %v644_v24, %v645_v34  ;;  %v648_v24 = vsel %vm598_vm2, %v645_v34, %v3199_v11 }
 0x10b   : > { %4367 = vst [vmem:[#allocation74_spill] sm:$0xff] %v3501_v27  ;;  %2069 = vmatpush.msra.mxu3 %v1919_v15  ;;  %v1515_v17 = vld [vmem:[#allocation5 + $0x2a8] sm:$0xff] }
 0x10c   : > { %1315 = vmatmul.f32.gmra.mxu1 %v3469_v45  ;;  %v1935_v15 = vld [vmem:[#allocation5 + $0x428] sm:$0xff] }
 0x10d   : > { %1428 = vmatmul.f32.gmra.mxu2 %v3507_v60  ;;  %1590 = vmatmul.f32.gmra.mxu3 %v2991_v16  ;;  %v3527_v16 = vsel %vm707_vm0, %v835_v8, %v841_v56  ;;  %v3536_v56 = vsel %vm707_vm0, %v847_v53, %v854_v52  ;;  %v850_v8 = vrot.slane %v646_v32, 7  ;;  %v1918_v52 = vld [vmem:[#allocation5 + $0x3a0] sm:$0xff] }
 0x10e   : > { %v1656_v0 = vpop.f32.mrf.mxu0  ;;  %4373 = vst [vmem:[#allocation80_spill] sm:$0xff] %v3527_v16  ;;  %1762 = vmatpush.msra.mxu1 %v1515_v17  ;;  %2182 = vmatpush.msra.mxu0 %v1935_v15 }
 0x10f   : > { %2070 = vmatpush.msra.mxu3 %v1918_v52  ;;  %v1934_v52 = vld [vmem:[#allocation5 + $0x420] sm:$0xff] }
 0x110   : > { %v3519_v38 = vpop.f32.mrf.mxu2  ;;  %v1543_v31 = vpop.f32.mrf.mxu3  ;;  %2183 = vmatpush.msra.mxu0 %v1934_v52 }
 0x111   : > { %4370 = vst [vmem:[#allocation77_spill] sm:$0xff] %v3519_v38  ;;  %v3521_v27 = vadd.f32 %v1656_v0, %v1543_v31  ;;  %v3523_v60 = vpop.f32.mrf.mxu1  ;;  %1703 = vmatmul.f32.gmra.mxu0 %v3515_v6  ;;  %v558_v31 = vsel %vm525_vm1, %v556_v55, %v557_v25 }
 0x112   : > { %4372 = vst [vmem:[#allocation79_spill] sm:$0xff] %v3523_v60  ;;  %v862_v53 = vrot.slane %v558_v31, 7 }
 0x113   : > { %4371 = vst [vmem:[#allocation78_spill] sm:$0xff] %v3521_v27 }
 0x114   : > { %1318 = vmatmul.f32.gmra.mxu1 %v3494_v20 }
 0x115   : > { %1431 = vmatmul.f32.gmra.mxu2 %v3527_v16  ;;  %1593 = vmatmul.f32.gmra.mxu3 %v3037_v63  ;;  %v3547_v63 = vsel %vm707_vm0, %v849_v13, %v850_v8  ;;  %v861_v16 = vrot.slane %v556_v55, 7  ;;  %v649_v55 = vrot.slane %v3032_v61, 2  ;;  %v650_v13 = vrot.slane %v3086_v49, 2 }
 0x116   : > { %v1659_v0 = vpop.f32.mrf.mxu0  ;;  %v559_v61 = vrot.slane %v3116_v62, 1  ;;  %v560_v49 = vrot.slane %v3164_v10, 1 }
 0x117   : > { %v3555_v15 = vsel %vm707_vm0, %v861_v16, %v862_v53  ;;  %v869_v16 = vrot.slane %v557_v25, 7  ;;  %v864_v25 = vrot.slane %v649_v55, 7 }
 0x118   : > { %v3539_v60 = vpop.f32.mrf.mxu2  ;;  %v1546_v27 = vpop.f32.mrf.mxu3 }
 0x119   : > { %4374 = vst [vmem:[#allocation81_spill] sm:$0xff] %v3539_v60  ;;  %v3541_v17 = vadd.f32 %v1659_v0, %v1546_v27  ;;  %v3543_v38 = vpop.f32.mrf.mxu1  ;;  %1706 = vmatmul.f32.gmra.mxu0 %v3536_v56  ;;  %v1902_v27 = vld [vmem:[#allocation5 + $0x320] sm:$0xff]  ;;  %v856_v0 = vrot.slane %v648_v24, 7 }
 0x11a   : > { %4376 = vst [vmem:[#allocation83_spill] sm:$0xff] %v3543_v38  ;;  %1957 = vmatpush.msra.mxu2 %v1902_v27  ;;  %v1514_v24 = vld [vmem:[#allocation5 + $0x2a0] sm:$0xff]  ;;  %v651_v27 = vsel %vm598_vm2, %v649_v55, %v650_v13  ;;  %v653_v55 = vsel %vm598_vm2, %v650_v13, %v3199_v11 }
 0x11b   : > { %4375 = vst [vmem:[#allocation82_spill] sm:$0xff] %v3541_v17  ;;  %v3567_v60 = vsel %vm707_vm0, %v850_v8, %v856_v0  ;;  %1763 = vmatpush.msra.mxu1 %v1514_v24  ;;  %v3576_v8 = vsel %vm707_vm0, %v862_v53, %v869_v16  ;;  %v865_v0 = vrot.slane %v651_v27, 7  ;;  %v1917_v16 = vld [vmem:[#allocation5 + $0x398] sm:$0xff] }
 0x11c   : > { %1321 = vmatmul.f32.gmra.mxu1 %v3515_v6  ;;  %2071 = vmatpush.msra.mxu3 %v1917_v16  ;;  %v1933_v16 = vld [vmem:[#allocation5 + $0x418] sm:$0xff] }
 0x11d   : > { %1434 = vmatmul.f32.gmra.mxu2 %v3547_v63  ;;  %1596 = vmatmul.f32.gmra.mxu3 %v3075_v43  ;;  %v876_v43 = vrot.slane %v559_v61, 7 }
 0x11e   : > { %v1662_v32 = vpop.f32.mrf.mxu0  ;;  %2184 = vmatpush.msra.mxu0 %v1933_v16 }
 0x120   : > { %v3559_v34 = vpop.f32.mrf.mxu2  ;;  %v1549_v31 = vpop.f32.mrf.mxu3 }
 0x121   : > { %4377 = vst [vmem:[#allocation84_spill] sm:$0xff] %v3559_v34  ;;  %v3561_v38 = vadd.f32 %v1662_v32, %v1549_v31  ;;  %v3563_v17 = vpop.f32.mrf.mxu1  ;;  %1709 = vmatmul.f32.gmra.mxu0 %v3555_v15  ;;  %v561_v31 = vsel %vm525_vm1, %v559_v61, %v560_v49  ;;  %v654_v61 = vrot.slane %v3116_v62, 2  ;;  %v562_v62 = vrot.slane %v2914_v18, 1 }
 0x122   : > { %4379 = vst [vmem:[#allocation86_spill] sm:$0xff] %v3563_v17  ;;  %v877_v53 = vrot.slane %v561_v31, 7 }
 0x123   : > { %4378 = vst [vmem:[#allocation85_spill] sm:$0xff] %v3561_v38 }
 0x124   : > { %1324 = vmatmul.f32.gmra.mxu1 %v3536_v56  ;;  %v3595_v52 = vsel %vm707_vm0, %v876_v43, %v877_v53  ;;  %v884_v43 = vrot.slane %v560_v49, 7  ;;  %v879_v49 = vrot.slane %v654_v61, 7 }
 0x125   : > { %1437 = vmatmul.f32.gmra.mxu2 %v3567_v60  ;;  %1599 = vmatmul.f32.gmra.mxu3 %v3121_v5  ;;  %v3587_v5 = vsel %vm707_vm0, %v864_v25, %v865_v0  ;;  %v655_v25 = vrot.slane %v3164_v10, 2  ;;  %v563_v10 = vrot.slane %v2941_v35, 1 }
 0x126   : > { %v1665_v32 = vpop.f32.mrf.mxu0 }
 0x128   : > { %v3579_v17 = vpop.f32.mrf.mxu2  ;;  %v1552_v38 = vpop.f32.mrf.mxu3 }
 0x129   : > { %4380 = vst [vmem:[#allocation87_spill] sm:$0xff] %v3579_v17  ;;  %v3581_v24 = vadd.f32 %v1665_v32, %v1552_v38  ;;  %v3583_v34 = vpop.f32.mrf.mxu1  ;;  %1712 = vmatmul.f32.gmra.mxu0 %v3576_v8  ;;  %v1901_v38 = vld [vmem:[#allocation5 + $0x318] sm:$0xff]  ;;  %v871_v32 = vrot.slane %v653_v55, 7 }
 0x12a   : > { %4382 = vst [vmem:[#allocation89_spill] sm:$0xff] %v3583_v34  ;;  %1958 = vmatpush.msra.mxu2 %v1901_v38  ;;  %v1513_v55 = vld [vmem:[#allocation5 + $0x298] sm:$0xff]  ;;  %v656_v38 = vsel %vm598_vm2, %v654_v61, %v655_v25  ;;  %v658_v61 = vsel %vm598_vm2, %v655_v25, %v3199_v11 }
 0x12b   : > { %4381 = vst [vmem:[#allocation88_spill] sm:$0xff] %v3581_v24  ;;  %v3607_v17 = vsel %vm707_vm0, %v865_v0, %v871_v32  ;;  %1764 = vmatpush.msra.mxu1 %v1513_v55  ;;  %v3616_v0 = vsel %vm707_vm0, %v877_v53, %v884_v43  ;;  %v880_v32 = vrot.slane %v656_v38, 7  ;;  %v1916_v43 = vld [vmem:[#allocation5 + $0x390] sm:$0xff] }
 0x12c   : > { %1327 = vmatmul.f32.gmra.mxu1 %v3555_v15  ;;  %4386 = vst [vmem:[#allocation93_spill] sm:$0xff] %v3616_v0  ;;  %2072 = vmatpush.msra.mxu3 %v1916_v43  ;;  %v4396_v43 = vld [vmem:[#allocation19_spill] sm:$0xff] }
 0x12d   : > { %1440 = vmatmul.f32.gmra.mxu2 %v3587_v5  ;;  %1602 = vmatmul.f32.gmra.mxu3 %v3155_v1  ;;  %v891_v1 = vrot.slane %v562_v62, 7 }
 0x12e   : > { %v1668_v27 = vpop.f32.mrf.mxu0 }
 0x130   : > { %v3599_v13 = vpop.f32.mrf.mxu2  ;;  %v1555_v31 = vpop.f32.mrf.mxu3 }
 0x131   : > { %4383 = vst [vmem:[#allocation90_spill] sm:$0xff] %v3599_v13  ;;  %v3601_v34 = vadd.f32 %v1668_v27, %v1555_v31  ;;  %v3603_v24 = vpop.f32.mrf.mxu1  ;;  %1715 = vmatmul.f32.gmra.mxu0 %v3595_v52  ;;  %v564_v31 = vsel %vm525_vm1, %v562_v62, %v563_v10  ;;  %v659_v62 = vrot.slane %v2914_v18, 2  ;;  %v565_v18 = vrot.slane %v2966_v58, 1 }
 0x132   : > { %4385 = vst [vmem:[#allocation92_spill] sm:$0xff] %v3603_v24  ;;  %v892_v53 = vrot.slane %v564_v31, 7 }
 0x133   : > { %4384 = vst [vmem:[#allocation91_spill] sm:$0xff] %v3601_v34 }
 0x134   : > { %1330 = vmatmul.f32.gmra.mxu1 %v3576_v8  ;;  %v3635_v16 = vsel %vm707_vm0, %v891_v1, %v892_v53  ;;  %v899_v1 = vrot.slane %v563_v10, 7  ;;  %v894_v10 = vrot.slane %v659_v62, 7 }
 0x135   : > { %1443 = vmatmul.f32.gmra.mxu2 %v3607_v17  ;;  %1605 = vmatmul.f32.gmra.mxu3 %v3186_v50  ;;  %v3627_v50 = vsel %vm707_vm0, %v879_v49, %v880_v32  ;;  %4391 = vst [vmem:[#allocation98_spill] sm:$0xff] %v3635_v16  ;;  %v660_v49 = vrot.slane %v2941_v35, 2  ;;  %v566_v35 = vrot.slane %v4396_v43, 1 }
 0x136   : > { %v1671_v27 = vpop.f32.mrf.mxu0  ;;  %4390 = vst [vmem:[#allocation97_spill] sm:$0xff] %v3627_v50 }
 0x138   : > { %v3619_v24 = vpop.f32.mrf.mxu2  ;;  %v1558_v34 = vpop.f32.mrf.mxu3 }
 0x139   : > { %4387 = vst [vmem:[#allocation94_spill] sm:$0xff] %v3619_v24  ;;  %v3621_v55 = vadd.f32 %v1671_v27, %v1558_v34  ;;  %v3623_v13 = vpop.f32.mrf.mxu1  ;;  %1718 = vmatmul.f32.gmra.mxu0 %v3616_v0  ;;  %v1900_v34 = vld [vmem:[#allocation5 + $0x310] sm:$0xff]  ;;  %v886_v27 = vrot.slane %v658_v61, 7 }
 0x13a   : > { %4389 = vst [vmem:[#allocation96_spill] sm:$0xff] %v3623_v13  ;;  %1959 = vmatpush.msra.mxu2 %v1900_v34  ;;  %v1512_v61 = vld [vmem:[#allocation5 + $0x290] sm:$0xff]  ;;  %v661_v34 = vsel %vm598_vm2, %v659_v62, %v660_v49  ;;  %v1180_v62 = vadd.f32 %v3318_v30, %v3306_v44 }
 0x13b   : > { %4388 = vst [vmem:[#allocation95_spill] sm:$0xff] %v3621_v55  ;;  %v3647_v24 = vsel %vm707_vm0, %v880_v32, %v886_v27  ;;  %1765 = vmatpush.msra.mxu1 %v1512_v61  ;;  %v3656_v32 = vsel %vm707_vm0, %v892_v53, %v899_v1  ;;  %v895_v27 = vrot.slane %v661_v34, 7  ;;  %v663_v53 = vsel %vm598_vm2, %v660_v49, %v3199_v11  ;;  %v1915_v1 = vld [vmem:[#allocation5 + $0x388] sm:$0xff] }
 0x13c   : > { %1333 = vmatmul.f32.gmra.mxu1 %v3595_v52  ;;  %4395 = vst [vmem:[#allocation102_spill] sm:$0xff] %v3647_v24  ;;  %2073 = vmatpush.msra.mxu3 %v1915_v1  ;;  %v664_v49 = vrot.slane %v2966_v58, 2  ;;  %v4407_v1 = vld [vmem:[#allocation27_spill] sm:$0xff] }
 0x13d   : > { %1446 = vmatmul.f32.gmra.mxu2 %v3627_v50  ;;  %1608 = vmatmul.f32.gmra.mxu3 %v2937_v33  ;;  %4398 = vst [vmem:[#allocation19_spill] sm:$0xff] %v3656_v32 }
 0x13e   : > { %v1674_v38 = vpop.f32.mrf.mxu0 }
 0x140   : > { %v3639_v25 = vpop.f32.mrf.mxu2  ;;  %v1561_v31 = vpop.f32.mrf.mxu3 }
 0x141   : > { %4392 = vst [vmem:[#allocation99_spill] sm:$0xff] %v3639_v25  ;;  %v3641_v13 = vadd.f32 %v1674_v38, %v1561_v31  ;;  %v3643_v55 = vpop.f32.mrf.mxu1  ;;  %1721 = vmatmul.f32.gmra.mxu0 %v3635_v16  ;;  %v4397_v38 = vld [vmem:[#allocation15_spill] sm:$0xff] }
 0x142   : > { %4394 = vst [vmem:[#allocation101_spill] sm:$0xff] %v3643_v55  ;;  %v1932_v31 = vld [vmem:[#allocation5 + $0x410] sm:$0xff] }
 0x143   : > { %4393 = vst [vmem:[#allocation100_spill] sm:$0xff] %v3641_v13  ;;  %2185 = vmatpush.msra.mxu0 %v1932_v31  ;;  %v567_v13 = vsel %vm525_vm1, %v565_v18, %v566_v35 }
 0x144   : > { %1336 = vmatmul.f32.gmra.mxu1 %v3616_v0  ;;  %v907_v50 = vrot.slane %v567_v13, 7 }
 0x145   : > { %1449 = vmatmul.f32.gmra.mxu2 %v3647_v24  ;;  %1611 = vmatmul.f32.gmra.mxu3 %v4397_v38  ;;  %v3665_v38 = vsel %vm707_vm0, %v894_v10, %v895_v27  ;;  %v906_v24 = vrot.slane %v565_v18, 7  ;;  %v901_v18 = vrot.slane %v663_v53, 7  ;;  %v665_v10 = vrot.slane %v4396_v43, 2 }
 0x146   : > { %v1677_v55 = vpop.f32.mrf.mxu0  ;;  %4401 = vst [vmem:[#allocation105_spill] sm:$0xff] %v3665_v38  ;;  %v914_v53 = vrot.slane %v566_v35, 7  ;;  %v569_v43 = vrot.slane %v4407_v1, 1 }
 0x147   : > { %v3675_v31 = vsel %vm707_vm0, %v906_v24, %v907_v50  ;;  %v3685_v24 = vsel %vm707_vm0, %v895_v27, %v901_v18  ;;  %v1931_v27 = vld [vmem:[#allocation5 + $0x408] sm:$0xff] }
 0x148   : > { %v3659_v25 = vpop.f32.mrf.mxu2  ;;  %v1564_v33 = vpop.f32.mrf.mxu3  ;;  %4405 = vst [vmem:[#allocation108_spill] sm:$0xff] %v3685_v24  ;;  %v3696_v35 = vsel %vm707_vm0, %v907_v50, %v914_v53  ;;  %2186 = vmatpush.msra.mxu0 %v1931_v27 }
 0x149   : > { %4399 = vst [vmem:[#allocation103_spill] sm:$0xff] %v3659_v25  ;;  %v3661_v61 = vadd.f32 %v1677_v55, %v1564_v33  ;;  %v1292_v0 = vpop.f32.mrf.mxu1  ;;  %1724 = vmatmul.f32.gmra.mxu0 %v3656_v32  ;;  %v4402_v33 = vld [vmem:[#allocation18_spill] sm:$0xff] }
 0x14a   : > { %v1899_v55 = vld [vmem:[#allocation5 + $0x308] sm:$0xff]  ;;  %v1293_v13 = vadd.f32 %v1292_v0, %v1180_v62  ;;  %v666_v0 = vsel %vm598_vm2, %v664_v49, %v665_v10  ;;  %v4406_v62 = vld [vmem:[#allocation23_spill] sm:$0xff] }
 0x14b   : > { %4400 = vst [vmem:[#allocation104_spill] sm:$0xff] %v3661_v61  ;;  %1960 = vmatpush.msra.mxu2 %v1899_v55  ;;  %v1511_v55 = vld [vmem:[#allocation5 + $0x288] sm:$0xff]  ;;  %v568_v58 = vrot.slane %v4406_v62, 1 }
 0x14c   : > { %1339 = vmatmul.f32.gmra.mxu1 %v3635_v16  ;;  %4409 = vst [vmem:[#allocation23_spill] sm:$0xff] %v3696_v35 }
 0x14d   : > { %1452 = vmatmul.f32.gmra.mxu2 %v3665_v38  ;;  %1614 = vmatmul.f32.gmra.mxu3 %v4402_v33  ;;  %v921_v50 = vrot.slane %v568_v58, 7 }
 0x14e   : > { %v1680_v34 = vpop.f32.mrf.mxu0  ;;  %1766 = vmatpush.msra.mxu1 %v1511_v55  ;;  %v570_v55 = vsel %vm525_vm1, %v568_v58, %v569_v43 }
 0x14f   : > { %v922_v53 = vrot.slane %v570_v55, 7 }
 0x150   : > { %v1405_v61 = vpop.f32.mrf.mxu2  ;;  %v1567_v44 = vpop.f32.mrf.mxu3 }
 0x151   : > { %v3679_v25 = vadd.f32 %v1405_v61, %v1293_v13  ;;  %v3681_v38 = vadd.f32 %v1680_v34, %v1567_v44  ;;  %v1295_v33 = vpop.f32.mrf.mxu1  ;;  %1727 = vmatmul.f32.gmra.mxu0 %v3675_v31  ;;  %v1183_v61 = vadd.f32 %v3318_v30, %v3335_v46  ;;  %v4408_v34 = vld [vmem:[#allocation22_spill] sm:$0xff]  ;;  %v909_v13 = vrot.slane %v664_v49, 7 }
 0x152   : > { %v910_v44 = vrot.slane %v666_v0, 7  ;;  %v668_v49 = vsel %vm598_vm2, %v665_v10, %v3199_v11  ;;  %v669_v10 = vrot.slane %v4406_v62, 2 }
 0x153   : > { %4403 = vst [vmem:[#allocation106_spill] sm:$0xff] %v3679_v25  ;;  %v1296_v25 = vadd.f32 %v1295_v33, %v1183_v61  ;;  %v1186_v33 = vadd.f32 %v3318_v30, %v3359_v59  ;;  %v3715_v61 = vsel %vm707_vm0, %v921_v50, %v922_v53  ;;  %v916_v58 = vrot.slane %v668_v49, 7 }
 0x154   : > { %4404 = vst [vmem:[#allocation107_spill] sm:$0xff] %v3681_v38  ;;  %1342 = vmatmul.f32.gmra.mxu1 %v3656_v32  ;;  %v929_v49 = vrot.slane %v569_v43, 7 }
 0x155   : > { %1455 = vmatmul.f32.gmra.mxu2 %v3685_v24  ;;  %1617 = vmatmul.f32.gmra.mxu3 %v4408_v34  ;;  %v3705_v34 = vsel %vm707_vm0, %v909_v13, %v910_v44  ;;  %v3725_v50 = vsel %vm707_vm0, %v910_v44, %v916_v58  ;;  %v1930_v44 = vld [vmem:[#allocation5 + $0x400] sm:$0xff] }
 0x156   : > { %v1683_v18 = vpop.f32.mrf.mxu0  ;;  %v3736_v43 = vsel %vm707_vm0, %v922_v53, %v929_v49  ;;  %2187 = vmatpush.msra.mxu0 %v1930_v44 }
 0x158   : > { %v1408_v38 = vpop.f32.mrf.mxu2  ;;  %v1570_v32 = vpop.f32.mrf.mxu3 }
 0x159   : > { %v3699_v16 = vadd.f32 %v1408_v38, %v1296_v25  ;;  %v3701_v46 = vadd.f32 %v1683_v18, %v1570_v32  ;;  %v1298_v24 = vpop.f32.mrf.mxu1  ;;  %1730 = vmatmul.f32.gmra.mxu0 %v3696_v35  ;;  %v4412_v25 = vld [vmem:[#allocation26_spill] sm:$0xff]  ;;  %v1898_v38 = vld [vmem:[#allocation5 + $0x300] sm:$0xff]  ;;  %v670_v18 = vrot.slane %v4407_v1, 2 }
 0x15a   : > { %v1914_v32 = vld [vmem:[#allocation5 + $0x380] sm:$0xff]  ;;  %1961 = vmatpush.msra.mxu2 %v1898_v38  ;;  %v1299_v27 = vadd.f32 %v1298_v24, %v1186_v33  ;;  %v4415_v33 = vld [vmem:[#allocation31_spill] sm:$0xff] }
 0x15b   : > { %4410 = vst [vmem:[#allocation27_spill] sm:$0xff] %v3699_v16  ;;  %2074 = vmatpush.msra.mxu3 %v1914_v32  ;;  %v1510_v38 = vld [vmem:[#allocation5 + $0x280] sm:$0xff]  ;;  %v671_v24 = vsel %vm598_vm2, %v669_v10, %v670_v18  ;;  %v571_v62 = vrot.slane %v4415_v33, 1  ;;  %v4416_v32 = vld [vmem:[#allocation35_spill] sm:$0xff] }
 0x15c   : > { %4411 = vst [vmem:[#allocation109_spill] sm:$0xff] %v3701_v46  ;;  %1345 = vmatmul.f32.gmra.mxu1 %v3675_v31  ;;  %v572_v1 = vrot.slane %v4416_v32, 1 }
 0x15d   : > { %1458 = vmatmul.f32.gmra.mxu2 %v3705_v34  ;;  %1620 = vmatmul.f32.gmra.mxu3 %v4412_v25  ;;  %4418 = vst [vmem:[#allocation31_spill] sm:$0xff] %v3736_v43 }
 0x15e   : > { %v1686_v0 = vpop.f32.mrf.mxu0  ;;  %1767 = vmatpush.msra.mxu1 %v1510_v38  ;;  %v573_v38 = vsel %vm525_vm1, %v571_v62, %v572_v1 }
 0x15f   : > { %v937_v49 = vrot.slane %v573_v38, 7 }
 0x160   : > { %v1411_v13 = vpop.f32.mrf.mxu2  ;;  %v1573_v59 = vpop.f32.mrf.mxu3 }
 0x161   : > { %v3719_v55 = vadd.f32 %v1411_v13, %v1299_v27  ;;  %v3721_v16 = vadd.f32 %v1686_v0, %v1573_v59  ;;  %v1301_v46 = vpop.f32.mrf.mxu1  ;;  %1733 = vmatmul.f32.gmra.mxu0 %v3715_v61  ;;  %v1189_v0 = vadd.f32 %v3318_v30, %v3383_v40  ;;  %v4417_v27 = vld [vmem:[#allocation30_spill] sm:$0xff]  ;;  %v924_v13 = vrot.slane %v669_v10, 7 }
 0x162   : > { %v925_v59 = vrot.slane %v671_v24, 7  ;;  %v936_v10 = vrot.slane %v571_v62, 7  ;;  %v351_v24 = vld [vmem:[%s2897_s11 + $0xf8] sm:$0xff]  ;;  %v350_v62 = vld [vmem:[%s2897_s11 + $0xf0] sm:$0xff] }
 0x163   : > { %4413 = vst [vmem:[#allocation110_spill] sm:$0xff] %v3719_v55  ;;  %v1302_v55 = vadd.f32 %v1301_v46, %v1189_v0  ;;  %v673_v46 = vsel %vm598_vm2, %v670_v18, %v3199_v11  ;;  %v675_v18 = vrot.slane %v4416_v32, 2  ;;  %v3761_v38 = vmax.f32 %v351_v24, 0.0 }
 0x164   : > { %4414 = vst [vmem:[#allocation111_spill] sm:$0xff] %v3721_v16  ;;  %1348 = vmatmul.f32.gmra.mxu1 %v3696_v35  ;;  %v3745_v53 = vsel %vm707_vm0, %v924_v13, %v925_v59  ;;  %v3756_v0 = vsel %vm707_vm0, %v936_v10, %v937_v49  ;;  %v931_v44 = vrot.slane %v673_v46, 7  ;;  %v674_v13 = vrot.slane %v4415_v33, 2 }
 0x165   : > { %1461 = vmatmul.f32.gmra.mxu2 %v3725_v50  ;;  %1623 = vmatmul.f32.gmra.mxu3 %v4417_v27  ;;  %4421 = vst [vmem:[#allocation113_spill] sm:$0xff] %v3745_v53  ;;  %v3768_v10 = vmax.f32 %v350_v62, 0.0  ;;  %v575_v24 = vrot.slane %v3761_v38, 1 }
 0x166   : > { %v1689_v58 = vpop.f32.mrf.mxu0  ;;  %v3771_v46 = vsel %vm707_vm0, %v925_v59, %v931_v44  ;;  %v676_v33 = vsel %vm598_vm2, %v674_v13, %v675_v18 }
 0x167   : > { %4425 = vst [vmem:[#allocation116_spill] sm:$0xff] %v3771_v46  ;;  %v574_v32 = vrot.slane %v3768_v10, 1  ;;  %v949_v44 = vrot.slane %v3768_v10, 7 }
 0x168   : > { %v1414_v16 = vpop.f32.mrf.mxu2  ;;  %v1576_v25 = vpop.f32.mrf.mxu3 }
 0x169   : > { %v3739_v35 = vadd.f32 %v1414_v16, %v1302_v55  ;;  %v3741_v40 = vadd.f32 %v1689_v58, %v1576_v25  ;;  %v1304_v27 = vpop.f32.mrf.mxu1  ;;  %1736 = vmatmul.f32.gmra.mxu0 %v3736_v43  ;;  %v1192_v16 = vadd.f32 %v3318_v30, %v3407_v51  ;;  %v4422_v25 = vld [vmem:[#allocation34_spill] sm:$0xff] }
 0x16b   : > { %4419 = vst [vmem:[#allocation35_spill] sm:$0xff] %v3739_v35  ;;  %v1305_v58 = vadd.f32 %v1304_v27, %v1192_v16  ;;  %v944_v27 = vrot.slane %v572_v1, 7  ;;  %v939_v1 = vrot.slane %v674_v13, 7 }
 0x16c   : > { %4420 = vst [vmem:[#allocation112_spill] sm:$0xff] %v3741_v40  ;;  %1351 = vmatmul.f32.gmra.mxu1 %v3715_v61 }
 0x16d   : > { %1464 = vmatmul.f32.gmra.mxu2 %v3745_v53  ;;  %1626 = vmatmul.f32.gmra.mxu3 %v4422_v25  ;;  %v3782_v59 = vsel %vm707_vm0, %v937_v49, %v944_v27  ;;  %v4428_v49 = vld [vmem:[#allocation9_spill] sm:$0xff]  ;;  %v951_v27 = vrot.slane %v574_v32, 7 }
 0x16e   : > { %v1692_v55 = vpop.f32.mrf.mxu0  ;;  %v3796_v13 = vsel %vm707_vm0, %v4428_v49, %v949_v44 }
 0x170   : > { %v1417_v35 = vpop.f32.mrf.mxu2  ;;  %v1579_v40 = vpop.f32.mrf.mxu3 }
 0x171   : > { %v3763_v51 = vadd.f32 %v1417_v35, %v1305_v58  ;;  %v3765_v53 = vadd.f32 %v1692_v55, %v1579_v40  ;;  %v1307_v25 = vpop.f32.mrf.mxu1  ;;  %1739 = vmatmul.f32.gmra.mxu0 %v3756_v0  ;;  %v1195_v35 = vadd.f32 %v3318_v30, %v3431_v37  ;;  %v4426_v40 = vld [vmem:[#allocation38_spill] sm:$0xff]  ;;  %v940_v55 = vrot.slane %v676_v33, 7 }
 0x172   : > { %v576_v58 = vsel %vm525_vm1, %v574_v32, %v575_v24  ;;  %v678_v33 = vsel %vm598_vm2, %v675_v18, %v3199_v11  ;;  %v957_v32 = vrot.slane %v3761_v38, 7 }
 0x173   : > { %4423 = vst [vmem:[#allocation114_spill] sm:$0xff] %v3763_v51  ;;  %v1308_v62 = vadd.f32 %v1307_v25, %v1195_v35  ;;  %v952_v25 = vrot.slane %v576_v58, 7 }
 0x174   : > { %4424 = vst [vmem:[#allocation115_spill] sm:$0xff] %v3765_v53  ;;  %1354 = vmatmul.f32.gmra.mxu1 %v3736_v43 }
 0x175   : > { %1467 = vmatmul.f32.gmra.mxu2 %v3771_v46  ;;  %1629 = vmatmul.f32.gmra.mxu3 %v4426_v40  ;;  %v3792_v40 = vsel %vm707_vm0, %v939_v1, %v940_v55  ;;  %v3806_v35 = vsel %vm707_vm0, %v951_v27, %v952_v25  ;;  %v959_v27 = vrot.slane %v575_v24, 7 }
 0x176   : > { %v1695_v16 = vpop.f32.mrf.mxu0 }
 0x178   : > { %v1420_v51 = vpop.f32.mrf.mxu2  ;;  %v1582_v53 = vpop.f32.mrf.mxu3 }
 0x179   : > { %v3786_v43 = vadd.f32 %v1420_v51, %v1308_v62  ;;  %v3788_v37 = vadd.f32 %v1695_v16, %v1582_v53  ;;  %v1310_v46 = vpop.f32.mrf.mxu1  ;;  %1742 = vmatmul.f32.gmra.mxu0 %v3782_v59  ;;  %v1198_v53 = vadd.f32 %v3318_v30, %v3455_v2  ;;  %v946_v16 = vrot.slane %v678_v33, 7 }
 0x17a   : > { %v3818_v30 = vsel %vm707_vm0, %v949_v44, %v957_v32 }
 0x17b   : > { %4427 = vst [vmem:[#allocation117_spill] sm:$0xff] %v3786_v43  ;;  %v1311_v1 = vadd.f32 %v1310_v46, %v1198_v53  ;;  %v3815_v2 = vsel %vm707_vm0, %v940_v55, %v946_v16  ;;  %v3824_v46 = vld [vmem:[%s4198_s2] ss:$0 sm:$0xff]  ;;  %v3831_v53 = vsel %vm707_vm0, %v952_v25, %v959_v27 }
 0x17c   : > { %1357 = vmatmul.f32.gmra.mxu1 %v3756_v0  ;;  %v1201_v33 = vadd.f32 %v3824_v46, %v3479_v19 }
 0x17d   : > { %1470 = vmatmul.f32.gmra.mxu2 %v3792_v40  ;;  %1632 = vmatmul.f32.gmra.mxu3 %v3796_v13 }
 0x17e   : > { %v1698_v51 = vpop.f32.mrf.mxu0 }
 0x180   : > { %v1423_v62 = vpop.f32.mrf.mxu2  ;;  %v1585_v58 = vpop.f32.mrf.mxu3 }
 0x181   : > { %v3809_v18 = vadd.f32 %v1423_v62, %v1311_v1  ;;  %v3811_v49 = vadd.f32 %v1698_v51, %v1585_v58  ;;  %v1313_v43 = vpop.f32.mrf.mxu1  ;;  %1745 = vmatmul.f32.gmra.mxu0 %v3806_v35 }
 0x182   : > { %v1314_v44 = vadd.f32 %v1313_v43, %v1201_v33 }
 0x184   : > { %1360 = vmatmul.f32.gmra.mxu1 %v3782_v59 }
 0x185   : > { %1473 = vmatmul.f32.gmra.mxu2 %v3815_v2  ;;  %1635 = vmatmul.f32.gmra.mxu3 %v3818_v30 }
 0x186   : > { %v1701_v55 = vpop.f32.mrf.mxu0 }
 0x188   : > { %v1426_v24 = vpop.f32.mrf.mxu2  ;;  %v1588_v51 = vpop.f32.mrf.mxu3 }
 0x189   : > { %v3833_v16 = vadd.f32 %v1426_v24, %v1314_v44  ;;  %v3835_v32 = vadd.f32 %v1701_v55, %v1588_v51  ;;  %v1316_v1 = vpop.f32.mrf.mxu1  ;;  %1748 = vmatmul.f32.gmra.mxu0 %v3831_v53 }
 0x18a   : > { %v1317_v25 = vadd.f32 %v1316_v1, %v3330_v47 }
 0x18c   : > { %1768 = vmatmul.f32.vlgmr.msra.gmra.mxu1 %v3226_v36 }
 0x18d   : > { %1962 = vmatmul.f32.vlgmr.msra.gmra.mxu2 %v3099_v4  ;;  %2075 = vmatmul.f32.vlgmr.msra.gmra.mxu3 %v3233_v21 }
 0x18e   : > { %v1704_v19 = vpop.f32.mrf.mxu0 }
 0x190   : > { %v1429_v62 = vpop.f32.mrf.mxu2  ;;  %v1591_v43 = vpop.f32.mrf.mxu3 }
 0x191   : > { %v3842_v58 = vadd.f32 %v1429_v62, %v1317_v25  ;;  %v3844_v27 = vadd.f32 %v1704_v19, %v1591_v43  ;;  %v1319_v33 = vpop.f32.mrf.mxu1  ;;  %2188 = vmatmul.f32.vlgmr.msra.gmra.mxu0 %v3252_v23  ;;  %v4429_v25 = vld [vmem:[#allocation39_spill] sm:$0xff] }
 0x192   : > { %v1320_v36 = vadd.f32 %v1319_v33, %v3354_v7 }
 0x194   : > { %1771 = vmatmul.f32.gmra.mxu1 %v3239_v3 }
 0x195   : > { %1965 = vmatmul.f32.gmra.mxu2 %v3140_v39  ;;  %2078 = vmatmul.f32.gmra.mxu3 %v3247_v28 }
 0x196   : > { %v1707_v4 = vpop.f32.mrf.mxu0 }
 0x198   : > { %v1432_v21 = vpop.f32.mrf.mxu2  ;;  %v1594_v47 = vpop.f32.mrf.mxu3 }
 0x199   : > { %v3851_v55 = vadd.f32 %v1432_v21, %v1320_v36  ;;  %v3853_v44 = vadd.f32 %v1707_v4, %v1594_v47  ;;  %v1322_v24 = vpop.f32.mrf.mxu1  ;;  %2191 = vmatmul.f32.gmra.mxu0 %v3266_v57  ;;  %v4431_v36 = vld [vmem:[#allocation44_spill] sm:$0xff]  ;;  %v4432_v21 = vld [vmem:[#allocation10_spill] sm:$0xff] }
 0x19a   : > { %v1323_v3 = vadd.f32 %v1322_v24, %v3378_v22 }
 0x19c   : > { %1774 = vmatmul.f32.gmra.mxu1 %v3252_v23  ;;  %v4430_v23 = vld [vmem:[#allocation42_spill] sm:$0xff] }
 0x19d   : > { %1968 = vmatmul.f32.gmra.mxu2 %v3175_v9  ;;  %2081 = vmatmul.f32.gmra.mxu3 %v3260_v12 }
 0x19e   : > { %v1710_v39 = vpop.f32.mrf.mxu0 }
 0x1a0   : > { %v1435_v28 = vpop.f32.mrf.mxu2  ;;  %v1597_v7 = vpop.f32.mrf.mxu3 }
 0x1a1   : > { %v3860_v51 = vadd.f32 %v1435_v28, %v1323_v3  ;;  %v3862_v1 = vadd.f32 %v1710_v39, %v1597_v7  ;;  %v1325_v19 = vpop.f32.mrf.mxu1  ;;  %2194 = vmatmul.f32.gmra.mxu0 %v3280_v26 }
 0x1a2   : > { %v1326_v12 = vadd.f32 %v1325_v19, %v3402_v14  ;;  %v4434_v19 = vld [vmem:[#allocation46_spill] sm:$0xff] }
 0x1a4   : > { %1777 = vmatmul.f32.gmra.mxu1 %v3266_v57  ;;  %v4433_v57 = vld [vmem:[#allocation43_spill] sm:$0xff] }
 0x1a5   : > { %1971 = vmatmul.f32.gmra.mxu2 %v4429_v25  ;;  %2084 = vmatmul.f32.gmra.mxu3 %v4430_v23  ;;  %v4435_v25 = vld [vmem:[#allocation13_spill] sm:$0xff] }
 0x1a6   : > { %v1713_v9 = vpop.f32.mrf.mxu0 }
 0x1a8   : > { %v1438_v62 = vpop.f32.mrf.mxu2  ;;  %v1600_v22 = vpop.f32.mrf.mxu3 }
 0x1a9   : > { %v3869_v43 = vadd.f32 %v1438_v62, %v1326_v12  ;;  %v3871_v33 = vadd.f32 %v1713_v9, %v1600_v22  ;;  %v1328_v4 = vpop.f32.mrf.mxu1  ;;  %2197 = vmatmul.f32.gmra.mxu0 %v4431_v36 }
 0x1aa   : > { %v1329_v24 = vadd.f32 %v1328_v4, %v3426_v41 }
 0x1ac   : > { %1780 = vmatmul.f32.gmra.mxu1 %v3280_v26  ;;  %v4436_v26 = vld [vmem:[#allocation45_spill] sm:$0xff] }
 0x1ad   : > { %1974 = vmatmul.f32.gmra.mxu2 %v4432_v21  ;;  %2087 = vmatmul.f32.gmra.mxu3 %v4433_v57  ;;  %v4437_v21 = vld [vmem:[#allocation50_spill] sm:$0xff]  ;;  %v4438_v57 = vld [vmem:[#allocation16_spill] sm:$0xff] }
 0x1ae   : > { %v1716_v47 = vpop.f32.mrf.mxu0 }
 0x1b0   : > { %v1441_v39 = vpop.f32.mrf.mxu2  ;;  %v1603_v14 = vpop.f32.mrf.mxu3 }
 0x1b1   : > { %v3878_v3 = vadd.f32 %v1441_v39, %v1329_v24  ;;  %v3880_v28 = vadd.f32 %v1716_v47, %v1603_v14  ;;  %v1331_v7 = vpop.f32.mrf.mxu1  ;;  %2200 = vmatmul.f32.gmra.mxu0 %v4434_v19 }
 0x1b2   : > { %v1332_v9 = vadd.f32 %v1331_v7, %v3450_v42 }
 0x1b4   : > { %1783 = vmatmul.f32.gmra.mxu1 %v4431_v36  ;;  %v4439_v36 = vld [vmem:[#allocation48_spill] sm:$0xff] }
 0x1b5   : > { %1977 = vmatmul.f32.gmra.mxu2 %v4435_v25  ;;  %2090 = vmatmul.f32.gmra.mxu3 %v4436_v26  ;;  %v4440_v26 = vld [vmem:[#allocation54_spill] sm:$0xff] }
 0x1b6   : > { %v1719_v23 = vpop.f32.mrf.mxu0 }
 0x1b8   : > { %v1444_v12 = vpop.f32.mrf.mxu2  ;;  %v1606_v41 = vpop.f32.mrf.mxu3 }
 0x1b9   : > { %v3887_v62 = vadd.f32 %v1444_v12, %v1332_v9  ;;  %v3889_v22 = vadd.f32 %v1719_v23, %v1606_v41  ;;  %v1334_v4 = vpop.f32.mrf.mxu1  ;;  %2203 = vmatmul.f32.gmra.mxu0 %v4437_v21  ;;  %v4441_v23 = vld [vmem:[#allocation20_spill] sm:$0xff] }
 0x1ba   : > { %v1335_v24 = vadd.f32 %v1334_v4, %v3474_v54 }
 0x1bc   : > { %1786 = vmatmul.f32.gmra.mxu1 %v4434_v19  ;;  %v4442_v19 = vld [vmem:[#allocation52_spill] sm:$0xff] }
 0x1bd   : > { %1980 = vmatmul.f32.gmra.mxu2 %v4438_v57  ;;  %2093 = vmatmul.f32.gmra.mxu3 %v4439_v36 }
 0x1be   : > { %v1722_v47 = vpop.f32.mrf.mxu0 }
 0x1c0   : > { %v1447_v39 = vpop.f32.mrf.mxu2  ;;  %v1609_v42 = vpop.f32.mrf.mxu3 }
 0x1c1   : > { %v3896_v14 = vadd.f32 %v1447_v39, %v1335_v24  ;;  %v3898_v7 = vadd.f32 %v1722_v47, %v1609_v42  ;;  %v1337_v25 = vpop.f32.mrf.mxu1  ;;  %2206 = vmatmul.f32.gmra.mxu0 %v4440_v26  ;;  %v4445_v47 = vld [vmem:[#allocation58_spill] sm:$0xff]  ;;  %v4446_v24 = vld [vmem:[#allocation24_spill] sm:$0xff]  ;;  %v4448_v42 = vld [vmem:[#allocation49_spill] sm:$0xff] }
 0x1c2   : > { %v1338_v12 = vadd.f32 %v1337_v25, %v3498_v48 }
 0x1c4   : > { %1789 = vmatmul.f32.gmra.mxu1 %v4437_v21  ;;  %v4447_v21 = vld [vmem:[#allocation56_spill] sm:$0xff] }
 0x1c5   : > { %1983 = vmatmul.f32.gmra.mxu2 %v4441_v23  ;;  %2096 = vmatmul.f32.gmra.mxu3 %v4442_v19 }
 0x1c6   : > { %v1725_v9 = vpop.f32.mrf.mxu0 }
 0x1c8   : > { %v1450_v41 = vpop.f32.mrf.mxu2  ;;  %v1612_v54 = vpop.f32.mrf.mxu3 }
 0x1c9   : > { %v3905_v4 = vadd.f32 %v1450_v41, %v1338_v12  ;;  %v3907_v57 = vadd.f32 %v1725_v9, %v1612_v54  ;;  %v1340_v36 = vpop.f32.mrf.mxu1  ;;  %2209 = vmatmul.f32.gmra.mxu0 %v4445_v47  ;;  %v4451_v41 = vld [vmem:[#allocation62_spill] sm:$0xff]  ;;  %v4452_v54 = vld [vmem:[#allocation28_spill] sm:$0xff] }
 0x1ca   : > { %v1341_v23 = vadd.f32 %v1340_v36, %v4448_v42 }
 0x1cb   : > { %4443 = vst [vmem:[#allocation39_spill] sm:$0xff] %v3905_v4 }
 0x1cc   : > { %4444 = vst [vmem:[#allocation42_spill] sm:$0xff] %v3907_v57  ;;  %1792 = vmatmul.f32.gmra.mxu1 %v4440_v26  ;;  %v4453_v26 = vld [vmem:[#allocation60_spill] sm:$0xff] }
 0x1cd   : > { %1986 = vmatmul.f32.gmra.mxu2 %v4446_v24  ;;  %2099 = vmatmul.f32.gmra.mxu3 %v4447_v21  ;;  %v4454_v21 = vld [vmem:[#allocation53_spill] sm:$0xff] }
 0x1ce   : > { %v1728_v39 = vpop.f32.mrf.mxu0 }
 0x1d0   : > { %v1453_v19 = vpop.f32.mrf.mxu2  ;;  %v1615_v48 = vpop.f32.mrf.mxu3 }
 0x1d1   : > { %v3914_v25 = vadd.f32 %v1453_v19, %v1341_v23  ;;  %v3916_v12 = vadd.f32 %v1728_v39, %v1615_v48  ;;  %v1343_v9 = vpop.f32.mrf.mxu1  ;;  %2212 = vmatmul.f32.gmra.mxu0 %v4451_v41  ;;  %v4456_v19 = vld [vmem:[#allocation66_spill] sm:$0xff]  ;;  %v4457_v48 = vld [vmem:[#allocation32_spill] sm:$0xff] }
 0x1d2   : > { %v1344_v4 = vadd.f32 %v1343_v9, %v4454_v21 }
 0x1d3   : > { %4449 = vst [vmem:[#allocation44_spill] sm:$0xff] %v3914_v25 }
 0x1d4   : > { %4450 = vst [vmem:[#allocation10_spill] sm:$0xff] %v3916_v12  ;;  %1795 = vmatmul.f32.gmra.mxu1 %v4445_v47  ;;  %v4458_v47 = vld [vmem:[#allocation64_spill] sm:$0xff] }
 0x1d5   : > { %1989 = vmatmul.f32.gmra.mxu2 %v4452_v54  ;;  %2102 = vmatmul.f32.gmra.mxu3 %v4453_v26  ;;  %v4459_v26 = vld [vmem:[#allocation57_spill] sm:$0xff] }
 0x1d6   : > { %v1731_v24 = vpop.f32.mrf.mxu0 }
 0x1d8   : > { %v1456_v57 = vpop.f32.mrf.mxu2  ;;  %v1618_v36 = vpop.f32.mrf.mxu3 }
 0x1d9   : > { %v3923_v42 = vadd.f32 %v1456_v57, %v1344_v4  ;;  %v3925_v23 = vadd.f32 %v1731_v24, %v1618_v36  ;;  %v1346_v39 = vpop.f32.mrf.mxu1  ;;  %2215 = vmatmul.f32.gmra.mxu0 %v4456_v19  ;;  %v4461_v24 = vld [vmem:[#allocation69_spill] sm:$0xff]  ;;  %v4462_v36 = vld [vmem:[#allocation36_spill] sm:$0xff] }
 0x1da   : > { %v1347_v25 = vadd.f32 %v1346_v39, %v4459_v26 }
 0x1db   : > { %4455 = vst [vmem:[#allocation43_spill] sm:$0xff] %v3923_v42 }
 0x1dc   : > { %1798 = vmatmul.f32.gmra.mxu1 %v4451_v41 }
 0x1dd   : > { %1992 = vmatmul.f32.gmra.mxu2 %v4457_v48  ;;  %2105 = vmatmul.f32.gmra.mxu3 %v4458_v47  ;;  %v4463_v48 = vld [vmem:[#allocation61_spill] sm:$0xff] }
 0x1de   : > { %v1734_v54 = vpop.f32.mrf.mxu0 }
 0x1e0   : > { %v1459_v12 = vpop.f32.mrf.mxu2  ;;  %v1621_v9 = vpop.f32.mrf.mxu3 }
 0x1e1   : > { %v3932_v21 = vadd.f32 %v1459_v12, %v1347_v25  ;;  %v3934_v4 = vadd.f32 %v1734_v54, %v1621_v9  ;;  %v1349_v57 = vpop.f32.mrf.mxu1  ;;  %2218 = vmatmul.f32.gmra.mxu0 %v4461_v24  ;;  %v4465_v54 = vld [vmem:[#allocation72_spill] sm:$0xff]  ;;  %v4466_v9 = vld [vmem:[#allocation11_spill] sm:$0xff] }
 0x1e2   : > { %v1350_v47 = vadd.f32 %v1349_v57, %v4463_v48 }
 0x1e3   : > { %4460 = vst [vmem:[#allocation46_spill] sm:$0xff] %v3932_v21 }
 0x1e4   : > { %1801 = vmatmul.f32.gmra.mxu1 %v4456_v19 }
 0x1e5   : > { %1995 = vmatmul.f32.gmra.mxu2 %v4462_v36  ;;  %2108 = vmatmul.f32.gmra.mxu3 %v3446_v29  ;;  %v4467_v29 = vld [vmem:[#allocation65_spill] sm:$0xff] }
 0x1e6   : > { %v1737_v41 = vpop.f32.mrf.mxu0 }
 0x1e8   : > { %v1462_v42 = vpop.f32.mrf.mxu2  ;;  %v1624_v39 = vpop.f32.mrf.mxu3 }
 0x1e9   : > { %v3941_v26 = vadd.f32 %v1462_v42, %v1350_v47  ;;  %v3943_v25 = vadd.f32 %v1737_v41, %v1624_v39  ;;  %v1352_v12 = vpop.f32.mrf.mxu1  ;;  %2221 = vmatmul.f32.gmra.mxu0 %v4465_v54  ;;  %v4469_v47 = vld [vmem:[#allocation76_spill] sm:$0xff]  ;;  %v4470_v39 = vld [vmem:[#allocation14_spill] sm:$0xff] }
 0x1ea   : > { %v1353_v36 = vadd.f32 %v1352_v12, %v4467_v29 }
 0x1eb   : > { %4464 = vst [vmem:[#allocation13_spill] sm:$0xff] %v3941_v26 }
 0x1ec   : > { %1804 = vmatmul.f32.gmra.mxu1 %v4461_v24 }
 0x1ed   : > { %1998 = vmatmul.f32.gmra.mxu2 %v4466_v9  ;;  %2111 = vmatmul.f32.gmra.mxu3 %v3469_v45  ;;  %v4471_v45 = vld [vmem:[#allocation68_spill] sm:$0xff] }
 0x1ee   : > { %v1740_v19 = vpop.f32.mrf.mxu0 }
 0x1f0   : > { %v1465_v21 = vpop.f32.mrf.mxu2  ;;  %v1627_v57 = vpop.f32.mrf.mxu3 }
 0x1f1   : > { %v3950_v48 = vadd.f32 %v1465_v21, %v1353_v36  ;;  %v3952_v42 = vadd.f32 %v1740_v19, %v1627_v57  ;;  %v1355_v41 = vpop.f32.mrf.mxu1  ;;  %2224 = vmatmul.f32.gmra.mxu0 %v4469_v47  ;;  %v4473_v36 = vld [vmem:[#allocation80_spill] sm:$0xff]  ;;  %v4474_v57 = vld [vmem:[#allocation17_spill] sm:$0xff] }
 0x1f2   : > { %v1356_v9 = vadd.f32 %v1355_v41, %v4471_v45 }
 0x1f3   : > { %4468 = vst [vmem:[#allocation45_spill] sm:$0xff] %v3950_v48 }
 0x1f4   : > { %1807 = vmatmul.f32.gmra.mxu1 %v4465_v54 }
 0x1f5   : > { %2001 = vmatmul.f32.gmra.mxu2 %v4470_v39  ;;  %2114 = vmatmul.f32.gmra.mxu3 %v3494_v20  ;;  %v4475_v20 = vld [vmem:[#allocation71_spill] sm:$0xff] }
 0x1f6   : > { %v1743_v24 = vpop.f32.mrf.mxu0 }
 0x1f8   : > { %v1468_v26 = vpop.f32.mrf.mxu2  ;;  %v1630_v12 = vpop.f32.mrf.mxu3 }
 0x1f9   : > { %v3959_v29 = vadd.f32 %v1468_v26, %v1356_v9  ;;  %v3961_v21 = vadd.f32 %v1743_v24, %v1630_v12  ;;  %v1358_v19 = vpop.f32.mrf.mxu1  ;;  %2227 = vmatmul.f32.gmra.mxu0 %v4473_v36 }
 0x1fa   : > { %v1359_v39 = vadd.f32 %v1358_v19, %v4475_v20  ;;  %v4480_v19 = vld [vmem:[#allocation74_spill] sm:$0xff] }
 0x1fb   : > { %4472 = vst [vmem:[#allocation50_spill] sm:$0xff] %v3959_v29 }
 0x1fc   : > { %1810 = vmatmul.f32.gmra.mxu1 %v4469_v47  ;;  %v4478_v47 = vld [vmem:[#allocation21_spill] sm:$0xff] }
 0x1fd   : > { %2004 = vmatmul.f32.gmra.mxu2 %v4474_v57  ;;  %2117 = vmatmul.f32.gmra.mxu3 %v3515_v6  ;;  %v4479_v6 = vld [vmem:[#allocation47_spill] sm:$0xff] }
 0x1fe   : > { %v1746_v54 = vpop.f32.mrf.mxu0  ;;  %v1156_v9 = vadd.f32 %v3824_v46, %v4479_v6  ;;  %v4481_v57 = vld [vmem:[#allocation75_spill] sm:$0xff] }
 0x200   : > { %v1471_v48 = vpop.f32.mrf.mxu2  ;;  %v1633_v41 = vpop.f32.mrf.mxu3 }
 0x201   : > { %v3968_v45 = vadd.f32 %v1471_v48, %v1359_v39  ;;  %v3970_v26 = vadd.f32 %v1746_v54, %v1633_v41  ;;  %v1361_v24 = vpop.f32.mrf.mxu1  ;;  %2230 = vmatmul.f32.gmra.mxu0 %v3547_v63  ;;  %v1269_v54 = vadd.f32 %v4481_v57, %v1156_v9  ;;  %v4487_v9 = vld [vmem:[#allocation51_spill] sm:$0xff] }
 0x202   : > { %v1362_v48 = vadd.f32 %v1361_v24, %v4480_v19  ;;  %v4486_v24 = vld [vmem:[#allocation25_spill] sm:$0xff] }
 0x203   : > { %4476 = vst [vmem:[#allocation16_spill] sm:$0xff] %v3968_v45 }
 0x204   : > { %4477 = vst [vmem:[#allocation48_spill] sm:$0xff] %v3970_v26  ;;  %1813 = vmatmul.f32.gmra.mxu1 %v4473_v36  ;;  %v4485_v26 = vld [vmem:[#allocation78_spill] sm:$0xff] }
 0x205   : > { %2007 = vmatmul.f32.gmra.mxu2 %v4478_v47  ;;  %2120 = vmatmul.f32.gmra.mxu3 %v3536_v56  ;;  %v4484_v56 = vld [vmem:[#allocation77_spill] sm:$0xff] }
 0x206   : > { %v1749_v12 = vpop.f32.mrf.mxu0  ;;  %v1382_v47 = vadd.f32 %v4484_v56, %v1269_v54  ;;  %v4490_v56 = vld [vmem:[#allocation82_spill] sm:$0xff] }
 0x208   : > { %v1474_v20 = vpop.f32.mrf.mxu2  ;;  %v1636_v39 = vpop.f32.mrf.mxu3 }
 0x209   : > { %v3980_v41 = vadd.f32 %v1474_v20, %v1362_v48  ;;  %v3982_v45 = vadd.f32 %v1749_v12, %v1636_v39  ;;  %v1769_v36 = vpop.f32.mrf.mxu1  ;;  %2233 = vmatmul.f32.gmra.mxu0 %v3567_v60  ;;  %v1159_v12 = vadd.f32 %v3824_v46, %v4487_v9  ;;  %v4488_v48 = vld [vmem:[#allocation79_spill] sm:$0xff]  ;;  %v4491_v9 = vld [vmem:[#allocation29_spill] sm:$0xff] }
 0x20a   : > { %v1770_v6 = vadd.f32 %v1769_v36, %v4485_v26 }
 0x20b   : > { %4482 = vst [vmem:[#allocation54_spill] sm:$0xff] %v3980_v41  ;;  %v1272_v57 = vadd.f32 %v4488_v48, %v1159_v12  ;;  %v4492_v12 = vld [vmem:[#allocation55_spill] sm:$0xff] }
 0x20c   : > { %4483 = vst [vmem:[#allocation20_spill] sm:$0xff] %v3982_v45  ;;  %v1865_v29 = vadd.f32 %v1770_v6, %v1382_v47  ;;  %1816 = vmatmul.f32.gmra.mxu1 %v3547_v63  ;;  %v4489_v63 = vld [vmem:[#allocation81_spill] sm:$0xff]  ;;  %v1162_v48 = vadd.f32 %v3824_v46, %v4492_v12  ;;  %v4497_v12 = vld [vmem:[#allocation59_spill] sm:$0xff] }
 0x20d   : > { %2010 = vmatmul.f32.gmra.mxu2 %v4486_v24  ;;  %2123 = vmatmul.f32.gmra.mxu3 %v3555_v15  ;;  %v1385_v36 = vadd.f32 %v4489_v63, %v1272_v57  ;;  %v4505_v45 = vld [vmem:[#allocation89_spill] sm:$0xff] }
 0x20e   : > { %v2189_v19 = vpop.f32.mrf.mxu0 }
 0x210   : > { %v1963_v20 = vpop.f32.mrf.mxu2  ;;  %v2076_v54 = vpop.f32.mrf.mxu3 }
 0x211   : > { %v2077_v39 = vadd.f32 %v2076_v54, %v1963_v20  ;;  %v1772_v26 = vpop.f32.mrf.mxu1  ;;  %2236 = vmatmul.f32.gmra.mxu0 %v3587_v5 }
 0x212   : > { %v1773_v15 = vadd.f32 %v1772_v26, %v4490_v56 }
 0x213   : > { %v2190_v47 = vadd.f32 %v2189_v19, %v2077_v39  ;;  %v4493_v19 = vld [vmem:[#allocation83_spill] sm:$0xff] }
 0x214   : > { %v1866_v6 = vadd.f32 %v1773_v15, %v1385_v36  ;;  %1819 = vmatmul.f32.gmra.mxu1 %v3567_v60  ;;  %v1275_v20 = vadd.f32 %v4493_v19, %v1162_v48  ;;  %v4494_v60 = vld [vmem:[#allocation84_spill] sm:$0xff]  ;;  %v4495_v36 = vld [vmem:[#allocation85_spill] sm:$0xff]  ;;  %v1165_v48 = vadd.f32 %v3824_v46, %v4497_v12 }
 0x215   : > { %v2285_v24 = vadd.f32 %v2190_v47, %v1865_v29  ;;  %2013 = vmatmul.f32.gmra.mxu2 %v4491_v9  ;;  %2126 = vmatmul.f32.gmra.mxu3 %v3576_v8  ;;  %v4496_v9 = vld [vmem:[#allocation33_spill] sm:$0xff] }
 0x216   : > { %v2192_v57 = vpop.f32.mrf.mxu0  ;;  %v1388_v29 = vadd.f32 %v4494_v60, %v1275_v20  ;;  %v4498_v20 = vld [vmem:[#allocation86_spill] sm:$0xff] }
 0x217   : > { %2317 = vst [vmem:[%s4004_s15] sm:$0xff] %v2285_v24  ;;  %v1278_v60 = vadd.f32 %v4498_v20, %v1165_v48  ;;  %v4503_v48 = vld [vmem:[#allocation93_spill] sm:$0xff]  ;;  %v4504_v20 = vld [vmem:[#allocation63_spill] sm:$0xff] }
 0x218   : > { %v1966_v54 = vpop.f32.mrf.mxu2  ;;  %v2079_v39 = vpop.f32.mrf.mxu3 }
 0x219   : > { %v2080_v26 = vadd.f32 %v2079_v39, %v1966_v54  ;;  %v1775_v63 = vpop.f32.mrf.mxu1  ;;  %2239 = vmatmul.f32.gmra.mxu0 %v3607_v17  ;;  %v2387_v54 = vmul.f32 %v2285_v24, %v2285_v24 }
 0x21a   : > { %v1776_v56 = vadd.f32 %v1775_v63, %v4495_v36  ;;  %v4500_v36 = vld [vmem:[#allocation87_spill] sm:$0xff] }
 0x21b   : > { %v2193_v15 = vadd.f32 %v2192_v57, %v2080_v26 }
 0x21c   : > { %v1867_v8 = vadd.f32 %v1776_v56, %v1388_v29  ;;  %1822 = vmatmul.f32.gmra.mxu1 %v3587_v5  ;;  %v4499_v29 = vld [vmem:[#allocation97_spill] sm:$0xff]  ;;  %v4501_v56 = vld [vmem:[#allocation88_spill] sm:$0xff] }
 0x21d   : > { %v2286_v47 = vadd.f32 %v2193_v15, %v1866_v6  ;;  %2016 = vmatmul.f32.gmra.mxu2 %v4496_v9  ;;  %2129 = vmatmul.f32.gmra.mxu3 %v3595_v52  ;;  %v1391_v52 = vadd.f32 %v4500_v36, %v1278_v60 }
 0x21e   : > { %v2195_v19 = vpop.f32.mrf.mxu0 }
 0x21f   : > { %2318 = vst [vmem:[%s4004_s15 + $0x8] sm:$0xff] %v2286_v47  ;;  %v2349_v39 = vadd.f32 %v2286_v47, %v2285_v24  ;;  %v2388_v41 = vmul.f32 %v2286_v47, %v2286_v47  ;;  %v4502_v47 = vld [vmem:[#allocation37_spill] sm:$0xff] }
 0x220   : > { %v1969_v63 = vpop.f32.mrf.mxu2  ;;  %v2082_v57 = vpop.f32.mrf.mxu3 }
 0x221   : > { %v2419_v26 = vadd.f32 %v2388_v41, %v2387_v54  ;;  %v2083_v5 = vadd.f32 %v2082_v57, %v1969_v63  ;;  %v1778_v6 = vpop.f32.mrf.mxu1  ;;  %2242 = vmatmul.f32.gmra.mxu0 %v4499_v29  ;;  %v1168_v41 = vadd.f32 %v3824_v46, %v4504_v20  ;;  %v4511_v20 = vld [vmem:[#allocation67_spill] sm:$0xff] }
 0x222   : > { %v1779_v15 = vadd.f32 %v1778_v6, %v4501_v56 }
 0x223   : > { %v2196_v9 = vadd.f32 %v2195_v19, %v2083_v5  ;;  %v1281_v60 = vadd.f32 %v4505_v45, %v1168_v41  ;;  %v4510_v45 = vld [vmem:[#allocation98_spill] sm:$0xff] }
 0x224   : > { %v1868_v12 = vadd.f32 %v1779_v15, %v1391_v52  ;;  %1825 = vmatmul.f32.gmra.mxu1 %v3607_v17  ;;  %v4507_v52 = vld [vmem:[#allocation90_spill] sm:$0xff]  ;;  %v4508_v15 = vld [vmem:[#allocation91_spill] sm:$0xff] }
 0x225   : > { %v2287_v24 = vadd.f32 %v2196_v9, %v1867_v8  ;;  %2019 = vmatmul.f32.gmra.mxu2 %v4502_v47  ;;  %2132 = vmatmul.f32.gmra.mxu3 %v4503_v48  ;;  %v4506_v8 = vld [vmem:[#allocation102_spill] sm:$0xff]  ;;  %v1394_v56 = vadd.f32 %v4507_v52, %v1281_v60 }
 0x226   : > { %v2198_v54 = vpop.f32.mrf.mxu0 }
 0x227   : > { %2319 = vst [vmem:[%s4004_s15 + $0x10] sm:$0xff] %v2287_v24  ;;  %v2350_v63 = vadd.f32 %v2349_v39, %v2287_v24  ;;  %v2389_v57 = vmul.f32 %v2287_v24, %v2287_v24  ;;  %v4509_v24 = vld [vmem:[#allocation12_spill] sm:$0xff] }
 0x228   : > { %v1972_v36 = vpop.f32.mrf.mxu2  ;;  %v2085_v19 = vpop.f32.mrf.mxu3 }
 0x229   : > { %v2420_v5 = vadd.f32 %v2419_v26, %v2389_v57  ;;  %v2086_v6 = vadd.f32 %v2085_v19, %v1972_v36  ;;  %v1781_v17 = vpop.f32.mrf.mxu1  ;;  %2245 = vmatmul.f32.gmra.mxu0 %v4506_v8  ;;  %v1171_v26 = vadd.f32 %v3824_v46, %v4511_v20  ;;  %v4512_v19 = vld [vmem:[#allocation92_spill] sm:$0xff]  ;;  %v4517_v20 = vld [vmem:[#allocation19_spill] sm:$0xff] }
 0x22a   : > { %v1782_v9 = vadd.f32 %v1781_v17, %v4508_v15 }
 0x22b   : > { %v2199_v47 = vadd.f32 %v2198_v54, %v2086_v6  ;;  %v1284_v60 = vadd.f32 %v4512_v19, %v1171_v26  ;;  %v4518_v26 = vld [vmem:[#allocation70_spill] sm:$0xff] }
 0x22c   : > { %v1869_v48 = vadd.f32 %v1782_v9, %v1394_v56  ;;  %1828 = vmatmul.f32.gmra.mxu1 %v4499_v29  ;;  %v4514_v56 = vld [vmem:[#allocation94_spill] sm:$0xff]  ;;  %v4515_v9 = vld [vmem:[#allocation95_spill] sm:$0xff] }
 0x22d   : > { %v2288_v39 = vadd.f32 %v2199_v47, %v1868_v12  ;;  %2022 = vmatmul.f32.gmra.mxu2 %v4509_v24  ;;  %2135 = vmatmul.f32.gmra.mxu3 %v4510_v45  ;;  %v4513_v12 = vld [vmem:[#allocation105_spill] sm:$0xff]  ;;  %v1397_v15 = vadd.f32 %v4514_v56, %v1284_v60 }
 0x22e   : > { %v2201_v41 = vpop.f32.mrf.mxu0 }
 0x22f   : > { %2320 = vst [vmem:[%s4004_s15 + $0x18] sm:$0xff] %v2288_v39  ;;  %v2351_v57 = vadd.f32 %v2350_v63, %v2288_v39  ;;  %v2390_v36 = vmul.f32 %v2288_v39, %v2288_v39  ;;  %v4516_v39 = vld [vmem:[#allocation15_spill] sm:$0xff] }
 0x230   : > { %v1975_v52 = vpop.f32.mrf.mxu2  ;;  %v2088_v54 = vpop.f32.mrf.mxu3 }
 0x231   : > { %v2421_v6 = vadd.f32 %v2420_v5, %v2390_v36  ;;  %v2089_v17 = vadd.f32 %v2088_v54, %v1975_v52  ;;  %v1784_v29 = vpop.f32.mrf.mxu1  ;;  %2248 = vmatmul.f32.gmra.mxu0 %v4513_v12  ;;  %v1174_v5 = vadd.f32 %v3824_v46, %v4518_v26  ;;  %v4519_v54 = vld [vmem:[#allocation96_spill] sm:$0xff]  ;;  %v4524_v26 = vld [vmem:[#allocation73_spill] sm:$0xff] }
 0x232   : > { %v1785_v47 = vadd.f32 %v1784_v29, %v4515_v9 }
 0x233   : > { %v2202_v24 = vadd.f32 %v2201_v41, %v2089_v17  ;;  %v1287_v60 = vadd.f32 %v4519_v54, %v1174_v5 }
 0x234   : > { %v1870_v45 = vadd.f32 %v1785_v47, %v1397_v15  ;;  %1831 = vmatmul.f32.gmra.mxu1 %v4506_v8  ;;  %v4521_v15 = vld [vmem:[#allocation99_spill] sm:$0xff]  ;;  %v4522_v47 = vld [vmem:[#allocation100_spill] sm:$0xff] }
 0x235   : > { %v2289_v63 = vadd.f32 %v2202_v24, %v1869_v48  ;;  %2025 = vmatmul.f32.gmra.mxu2 %v4516_v39  ;;  %2138 = vmatmul.f32.gmra.mxu3 %v4517_v20  ;;  %v4520_v48 = vld [vmem:[#allocation108_spill] sm:$0xff]  ;;  %v1400_v9 = vadd.f32 %v4521_v15, %v1287_v60 }
 0x236   : > { %v2204_v36 = vpop.f32.mrf.mxu0 }
 0x237   : > { %2321 = vst [vmem:[%s4004_s15 + $0x20] sm:$0xff] %v2289_v63  ;;  %v2352_v19 = vadd.f32 %v2351_v57, %v2289_v63  ;;  %v2391_v52 = vmul.f32 %v2289_v63, %v2289_v63  ;;  %v4523_v63 = vld [vmem:[#allocation18_spill] sm:$0xff] }
 0x238   : > { %v1978_v56 = vpop.f32.mrf.mxu2  ;;  %v2091_v41 = vpop.f32.mrf.mxu3 }
 0x239   : > { %v2422_v17 = vadd.f32 %v2421_v6, %v2391_v52  ;;  %v2092_v29 = vadd.f32 %v2091_v41, %v1978_v56  ;;  %v1787_v8 = vpop.f32.mrf.mxu1  ;;  %2251 = vmatmul.f32.gmra.mxu0 %v4520_v48  ;;  %v1177_v6 = vadd.f32 %v3824_v46, %v4524_v26  ;;  %v4525_v56 = vld [vmem:[#allocation101_spill] sm:$0xff] }
 0x23a   : > { %v1788_v24 = vadd.f32 %v1787_v8, %v4522_v47 }
 0x23b   : > { %v2205_v39 = vadd.f32 %v2204_v36, %v2092_v29  ;;  %v1290_v60 = vadd.f32 %v4525_v56, %v1177_v6 }
 0x23c   : > { %v1871_v20 = vadd.f32 %v1788_v24, %v1400_v9  ;;  %1834 = vmatmul.f32.gmra.mxu1 %v4513_v12  ;;  %v4528_v24 = vld [vmem:[#allocation22_spill] sm:$0xff] }
 0x23d   : > { %v2290_v57 = vadd.f32 %v2205_v39, %v1870_v45  ;;  %2028 = vmatmul.f32.gmra.mxu2 %v4523_v63  ;;  %2141 = vmatmul.f32.gmra.mxu3 %v3675_v31  ;;  %v4526_v45 = vld [vmem:[#allocation103_spill] sm:$0xff]  ;;  %v4527_v31 = vld [vmem:[#allocation104_spill] sm:$0xff] }
 0x23e   : > { %v2207_v5 = vpop.f32.mrf.mxu0  ;;  %v1403_v15 = vadd.f32 %v4526_v45, %v1290_v60  ;;  %v4529_v39 = vld [vmem:[#allocation23_spill] sm:$0xff] }
 0x23f   : > { %2322 = vst [vmem:[%s4004_s15 + $0x28] sm:$0xff] %v2290_v57  ;;  %v2353_v52 = vadd.f32 %v2352_v19, %v2290_v57  ;;  %v2392_v54 = vmul.f32 %v2290_v57, %v2290_v57 }
 0x240   : > { %v1981_v41 = vpop.f32.mrf.mxu2  ;;  %v2094_v36 = vpop.f32.mrf.mxu3 }
 0x241   : > { %v2423_v29 = vadd.f32 %v2422_v17, %v2392_v54  ;;  %v2095_v8 = vadd.f32 %v2094_v36, %v1981_v41  ;;  %v1790_v12 = vpop.f32.mrf.mxu1  ;;  %2254 = vmatmul.f32.gmra.mxu0 %v3705_v34 }
 0x242   : > { %v1791_v9 = vadd.f32 %v1790_v12, %v4527_v31  ;;  %v4532_v12 = vld [vmem:[#allocation26_spill] sm:$0xff] }
 0x243   : > { %v2208_v47 = vadd.f32 %v2207_v5, %v2095_v8  ;;  %v4530_v5 = vld [vmem:[#allocation107_spill] sm:$0xff] }
 0x244   : > { %v1872_v46 = vadd.f32 %v1791_v9, %v1403_v15  ;;  %1837 = vmatmul.f32.gmra.mxu1 %v4520_v48 }
 0x245   : > { %v2291_v19 = vadd.f32 %v2208_v47, %v1871_v20  ;;  %2031 = vmatmul.f32.gmra.mxu2 %v4528_v24  ;;  %2144 = vmatmul.f32.gmra.mxu3 %v4529_v39  ;;  %v4531_v20 = vld [vmem:[#allocation106_spill] sm:$0xff]  ;;  %v4533_v24 = vld [vmem:[#allocation113_spill] sm:$0xff] }
 0x246   : > { %v2210_v57 = vpop.f32.mrf.mxu0  ;;  %v4534_v39 = vld [vmem:[#allocation109_spill] sm:$0xff] }
 0x247   : > { %2323 = vst [vmem:[%s4004_s15 + $0x30] sm:$0xff] %v2291_v19  ;;  %v2354_v17 = vadd.f32 %v2353_v52, %v2291_v19  ;;  %v2393_v63 = vmul.f32 %v2291_v19, %v2291_v19 }
 0x248   : > { %v1984_v26 = vpop.f32.mrf.mxu2  ;;  %v2097_v6 = vpop.f32.mrf.mxu3 }
 0x249   : > { %v2424_v54 = vadd.f32 %v2423_v29, %v2393_v63  ;;  %v2098_v56 = vadd.f32 %v2097_v6, %v1984_v26  ;;  %v1793_v60 = vpop.f32.mrf.mxu1  ;;  %2257 = vmatmul.f32.gmra.mxu0 %v3725_v50  ;;  %v4536_v26 = vld [vmem:[#allocation30_spill] sm:$0xff] }
 0x24a   : > { %v1794_v41 = vadd.f32 %v1793_v60, %v4530_v5 }
 0x24b   : > { %v2211_v48 = vadd.f32 %v2210_v57, %v2098_v56 }
 0x24c   : > { %v1873_v36 = vadd.f32 %v1794_v41, %v4531_v20  ;;  %1840 = vmatmul.f32.gmra.mxu1 %v3705_v34 }
 0x24d   : > { %v2292_v8 = vadd.f32 %v2211_v48, %v1872_v46  ;;  %2034 = vmatmul.f32.gmra.mxu2 %v4532_v12  ;;  %2147 = vmatmul.f32.gmra.mxu3 %v3715_v61  ;;  %v4535_v46 = vld [vmem:[#allocation27_spill] sm:$0xff] }
 0x24e   : > { %v2213_v52 = vpop.f32.mrf.mxu0  ;;  %v4539_v12 = vld [vmem:[#allocation111_spill] sm:$0xff] }
 0x24f   : > { %2324 = vst [vmem:[%s4004_s15 + $0x38] sm:$0xff] %v2292_v8  ;;  %v2355_v45 = vadd.f32 %v2354_v17, %v2292_v8  ;;  %v2394_v29 = vmul.f32 %v2292_v8, %v2292_v8  ;;  %v4537_v17 = vld [vmem:[#allocation31_spill] sm:$0xff]  ;;  %v4538_v8 = vld [vmem:[#allocation116_spill] sm:$0xff] }
 0x250   : > { %v1987_v15 = vpop.f32.mrf.mxu2  ;;  %v2100_v31 = vpop.f32.mrf.mxu3 }
 0x251   : > { %v2425_v9 = vadd.f32 %v2424_v54, %v2394_v29  ;;  %v2101_v47 = vadd.f32 %v2100_v31, %v1987_v15  ;;  %v1796_v19 = vpop.f32.mrf.mxu1  ;;  %2260 = vmatmul.f32.gmra.mxu0 %v4533_v24  ;;  %v4541_v31 = vld [vmem:[#allocation34_spill] sm:$0xff] }
 0x252   : > { %v1797_v57 = vadd.f32 %v1796_v19, %v4534_v39 }
 0x253   : > { %v2214_v34 = vadd.f32 %v2213_v52, %v2101_v47 }
 0x254   : > { %v1874_v63 = vadd.f32 %v1797_v57, %v4535_v46  ;;  %1843 = vmatmul.f32.gmra.mxu1 %v3725_v50 }
 0x255   : > { %v2293_v61 = vadd.f32 %v2214_v34, %v1873_v36  ;;  %2037 = vmatmul.f32.gmra.mxu2 %v4536_v26  ;;  %2150 = vmatmul.f32.gmra.mxu3 %v4537_v17  ;;  %v4540_v36 = vld [vmem:[#allocation110_spill] sm:$0xff]  ;;  %v680_v17 = vrot.slane %v3761_v38, 2 }
 0x256   : > { %v2216_v6 = vpop.f32.mrf.mxu0 }
 0x257   : > { %2325 = vst [vmem:[%s4004_s15 + $0x40] sm:$0xff] %v2293_v61  ;;  %v2356_v56 = vadd.f32 %v2355_v45, %v2293_v61  ;;  %v2395_v54 = vmul.f32 %v2293_v61, %v2293_v61  ;;  %v4542_v61 = vld [vmem:[#allocation112_spill] sm:$0xff] }
 0x258   : > { %v1990_v60 = vpop.f32.mrf.mxu2  ;;  %v2103_v5 = vpop.f32.mrf.mxu3 }
 0x259   : > { %v2426_v41 = vadd.f32 %v2425_v9, %v2395_v54  ;;  %v2104_v48 = vadd.f32 %v2103_v5, %v1990_v60  ;;  %v1799_v20 = vpop.f32.mrf.mxu1  ;;  %2263 = vmatmul.f32.gmra.mxu0 %v4538_v8  ;;  %v4544_v54 = vld [vmem:[#allocation38_spill] sm:$0xff] }
 0x25a   : > { %v1800_v52 = vadd.f32 %v1799_v20, %v4539_v12 }
 0x25b   : > { %v2217_v50 = vadd.f32 %v2216_v6, %v2104_v48 }
 0x25c   : > { %v1875_v29 = vadd.f32 %v1800_v52, %v4540_v36  ;;  %1846 = vmatmul.f32.gmra.mxu1 %v4533_v24 }
 0x25d   : > { %v2294_v15 = vadd.f32 %v2217_v50, %v1874_v63  ;;  %2040 = vmatmul.f32.gmra.mxu2 %v4541_v31  ;;  %2153 = vmatmul.f32.gmra.mxu3 %v3756_v0  ;;  %v679_v63 = vrot.slane %v3768_v10, 2  ;;  %v4543_v0 = vld [vmem:[#allocation35_spill] sm:$0xff] }
 0x25e   : > { %v2219_v45 = vpop.f32.mrf.mxu0 }
 0x25f   : > { %2326 = vst [vmem:[%s4004_s15 + $0x48] sm:$0xff] %v2294_v15  ;;  %v2357_v47 = vadd.f32 %v2356_v56, %v2294_v15  ;;  %v2396_v9 = vmul.f32 %v2294_v15, %v2294_v15  ;;  %v681_v48 = vsel %vm598_vm2, %v679_v63, %v680_v17  ;;  %v954_v36 = vrot.slane %v679_v63, 7  ;;  %v4547_v63 = vld [vmem:[#allocation117_spill] sm:$0xff] }
 0x260   : > { %v1993_v19 = vpop.f32.mrf.mxu2  ;;  %v2106_v39 = vpop.f32.mrf.mxu3 }
 0x261   : > { %v2427_v57 = vadd.f32 %v2426_v41, %v2396_v9  ;;  %v2107_v34 = vadd.f32 %v2106_v39, %v1993_v19  ;;  %v1802_v46 = vpop.f32.mrf.mxu1  ;;  %2266 = vmatmul.f32.gmra.mxu0 %v3792_v40 }
 0x262   : > { %v1803_v26 = vadd.f32 %v1802_v46, %v4542_v61 }
 0x263   : > { %v2220_v24 = vadd.f32 %v2219_v45, %v2107_v34 }
 0x264   : > { %v1876_v6 = vadd.f32 %v1803_v26, %v4543_v0  ;;  %1849 = vmatmul.f32.gmra.mxu1 %v4538_v8  ;;  %v4545_v8 = vld [vmem:[#allocation115_spill] sm:$0xff] }
 0x265   : > { %v2295_v56 = vadd.f32 %v2220_v24, %v1875_v29  ;;  %2043 = vmatmul.f32.gmra.mxu2 %v4544_v54  ;;  %2156 = vmatmul.f32.gmra.mxu3 %v3782_v59  ;;  %v955_v29 = vrot.slane %v681_v48, 7  ;;  %v4546_v59 = vld [vmem:[#allocation114_spill] sm:$0xff] }
 0x266   : > { %v2222_v60 = vpop.f32.mrf.mxu0 }
 0x267   : > { %2327 = vst [vmem:[%s4004_s15 + $0x50] sm:$0xff] %v2295_v56  ;;  %v2358_v5 = vadd.f32 %v2357_v47, %v2295_v56  ;;  %v2397_v41 = vmul.f32 %v2295_v56, %v2295_v56  ;;  %v956_v9 = vsel %vm707_vm0, %v954_v36, %v955_v29 }
 0x268   : > { %v1996_v20 = vpop.f32.mrf.mxu2  ;;  %v2109_v12 = vpop.f32.mrf.mxu3 }
 0x269   : > { %v2428_v10 = vadd.f32 %v2427_v57, %v2397_v41  ;;  %v2110_v38 = vadd.f32 %v2109_v12, %v1996_v20  ;;  %v1805_v52 = vpop.f32.mrf.mxu1  ;;  %2269 = vmatmul.f32.gmra.mxu0 %v3815_v2  ;;  %v683_v57 = vsel %vm598_vm2, %v680_v17, %v3199_v11  ;;  %v4548_v12 = vld [vmem:[#allocation9_spill] sm:$0xff] }
 0x26a   : > { %v1806_v50 = vadd.f32 %v1805_v52, %v4545_v8  ;;  %v961_v24 = vrot.slane %v683_v57, 7 }
 0x26b   : > { %v2223_v15 = vadd.f32 %v2222_v60, %v2110_v38 }
 0x26c   : > { %v1877_v31 = vadd.f32 %v1806_v50, %v4546_v59  ;;  %1852 = vmatmul.f32.gmra.mxu1 %v3792_v40  ;;  %v962_v17 = vsel %vm707_vm0, %v955_v29, %v961_v24 }
 0x26d   : > { %v2296_v45 = vadd.f32 %v2223_v15, %v1876_v6  ;;  %2046 = vmatmul.f32.gmra.mxu2 %v3796_v13  ;;  %2159 = vmatmul.f32.gmra.mxu3 %v3806_v35 }
 0x26e   : > { %v2225_v47 = vpop.f32.mrf.mxu0 }
 0x26f   : > { %2328 = vst [vmem:[%s4004_s15 + $0x58] sm:$0xff] %v2296_v45  ;;  %v2359_v19 = vadd.f32 %v2358_v5, %v2296_v45  ;;  %v2398_v39 = vmul.f32 %v2296_v45, %v2296_v45 }
 0x270   : > { %v1999_v34 = vpop.f32.mrf.mxu2  ;;  %v2112_v46 = vpop.f32.mrf.mxu3 }
 0x271   : > { %v2429_v61 = vadd.f32 %v2428_v10, %v2398_v39  ;;  %v2113_v26 = vadd.f32 %v2112_v46, %v1999_v34  ;;  %v1808_v40 = vpop.f32.mrf.mxu1  ;;  %2272 = vmatmul.f32.gmra.mxu0 %v956_v9  ;;  %v4549_v10 = vld [vmem:[#allocation40_spill] sm:$0xff] }
 0x272   : > { %v1809_v13 = vadd.f32 %v1808_v40, %v3788_v37 }
 0x273   : > { %v2226_v35 = vadd.f32 %v2225_v47, %v2113_v26 }
 0x274   : > { %v1878_v0 = vadd.f32 %v1809_v13, %v4547_v63  ;;  %1855 = vmatmul.f32.gmra.mxu1 %v3815_v2 }
 0x275   : > { %v2297_v6 = vadd.f32 %v2226_v35, %v1877_v31  ;;  %2049 = vmatmul.f32.gmra.mxu2 %v3818_v30  ;;  %2162 = vmatmul.f32.gmra.mxu3 %v3831_v53 }
 0x276   : > { %v2228_v11 = vpop.f32.mrf.mxu0 }
 0x277   : > { %2329 = vst [vmem:[%s4004_s15 + $0x60] sm:$0xff] %v2297_v6  ;;  %v2360_v56 = vadd.f32 %v2359_v19, %v2297_v6  ;;  %v2399_v54 = vmul.f32 %v2297_v6, %v2297_v6 }
 0x278   : > { %v2002_v60 = vpop.f32.mrf.mxu2  ;;  %v2115_v37 = vpop.f32.mrf.mxu3 }
 0x279   : > { %v2430_v5 = vadd.f32 %v2429_v61, %v2399_v54  ;;  %v2116_v41 = vadd.f32 %v2115_v37, %v2002_v60  ;;  %v1811_v48 = vpop.f32.mrf.mxu1  ;;  %2275 = vmatmul.f32.gmra.mxu0 %v962_v17 }
 0x27a   : > { %v1812_v2 = vadd.f32 %v1811_v48, %v3811_v49  ;;  %v4550_v49 = vld [vmem:[#allocation41_spill] sm:$0xff] }
 0x27b   : > { %v2229_v20 = vadd.f32 %v2228_v11, %v2116_v41 }
 0x27c   : > { %v1879_v30 = vadd.f32 %v1812_v2, %v3809_v18  ;;  %1858 = vmatmul.f32.gmra.mxu1 %v956_v9 }
 0x27d   : > { %v2298_v53 = vadd.f32 %v2229_v20, %v1878_v0  ;;  %2052 = vmatmul.f32.gmra.mxu2 %v4548_v12  ;;  %2165 = vmatmul.f32.gmra.mxu3 %v4549_v10 }
 0x27e   : > { %v2231_v38 = vpop.f32.mrf.mxu0 }
 0x27f   : > { %2330 = vst [vmem:[%s4004_s15 + $0x68] sm:$0xff] %v2298_v53  ;;  %v2361_v52 = vadd.f32 %v2360_v56, %v2298_v53  ;;  %v2400_v8 = vmul.f32 %v2298_v53, %v2298_v53 }
 0x280   : > { %v2005_v50 = vpop.f32.mrf.mxu2  ;;  %v2118_v36 = vpop.f32.mrf.mxu3 }
 0x281   : > { %v2431_v29 = vadd.f32 %v2430_v5, %v2400_v8  ;;  %v2119_v15 = vadd.f32 %v2118_v36, %v2005_v50  ;;  %v1814_v59 = vpop.f32.mrf.mxu1  ;;  %2278 = vmatmul.f32.gmra.mxu0 %v4550_v49 }
 0x282   : > { %v1815_v18 = vadd.f32 %v1814_v59, %v3835_v32 }
 0x283   : > { %v2232_v31 = vadd.f32 %v2231_v38, %v2119_v15 }
 0x284   : > { %v1880_v45 = vadd.f32 %v1815_v18, %v3833_v16  ;;  %1861 = vmatmul.f32.gmra.mxu1 %v962_v17 }
 0x285   : > { %v2299_v47 = vadd.f32 %v2232_v31, %v1879_v30  ;;  %2055 = vmatmul.f32.gmra.mxu2 %v4548_v12  ;;  %2168 = vmatmul.f32.gmra.mxu3 %v4549_v10 }
 0x286   : > { %v2234_v9 = vpop.f32.mrf.mxu0 }
 0x287   : > { %2331 = vst [vmem:[%s4004_s15 + $0x70] sm:$0xff] %v2299_v47  ;;  %v2362_v19 = vadd.f32 %v2361_v52, %v2299_v47  ;;  %v2401_v39 = vmul.f32 %v2299_v47, %v2299_v47 }
 0x288   : > { %v2008_v57 = vpop.f32.mrf.mxu2  ;;  %v2121_v34 = vpop.f32.mrf.mxu3 }
 0x289   : > { %v2432_v46 = vadd.f32 %v2431_v29, %v2401_v39  ;;  %v2122_v61 = vadd.f32 %v2121_v34, %v2008_v57  ;;  %v1817_v26 = vpop.f32.mrf.mxu1  ;;  %2281 = vmatmul.f32.gmra.mxu0 %v4550_v49 }
 0x28a   : > { %v1818_v16 = vadd.f32 %v1817_v26, %v3844_v27 }
 0x28b   : > { %v2235_v32 = vadd.f32 %v2234_v9, %v2122_v61 }
 0x28c   : > { %v1881_v40 = vadd.f32 %v1818_v16, %v3842_v58 }
 0x28d   : > { %v2300_v13 = vadd.f32 %v2235_v32, %v1880_v45 }
 0x28e   : > { %v2237_v24 = vpop.f32.mrf.mxu0 }
 0x28f   : > { %2332 = vst [vmem:[%s4004_s15 + $0x78] sm:$0xff] %v2300_v13  ;;  %v2363_v35 = vadd.f32 %v2362_v19, %v2300_v13  ;;  %v2402_v63 = vmul.f32 %v2300_v13, %v2300_v13 }
 0x290   : > { %v2011_v0 = vpop.f32.mrf.mxu2  ;;  %v2124_v6 = vpop.f32.mrf.mxu3 }
 0x291   : > { %v2433_v11 = vadd.f32 %v2432_v46, %v2402_v63  ;;  %v2125_v17 = vadd.f32 %v2124_v6, %v2011_v0  ;;  %v1820_v56 = vpop.f32.mrf.mxu1 }
 0x292   : > { %v1821_v54 = vadd.f32 %v1820_v56, %v3853_v44 }
 0x293   : > { %v2238_v60 = vadd.f32 %v2237_v24, %v2125_v17 }
 0x294   : > { %v1882_v37 = vadd.f32 %v1821_v54, %v3851_v55 }
 0x295   : > { %v2301_v27 = vadd.f32 %v2238_v60, %v1881_v40 }
 0x296   : > { %v2240_v5 = vpop.f32.mrf.mxu0 }
 0x297   : > { %2333 = vst [vmem:[%s4004_s15 + $0x80] sm:$0xff] %v2301_v27  ;;  %v2364_v58 = vadd.f32 %v2363_v35, %v2301_v27  ;;  %v2403_v41 = vmul.f32 %v2301_v27, %v2301_v27 }
 0x298   : > { %v2014_v48 = vpop.f32.mrf.mxu2  ;;  %v2127_v2 = vpop.f32.mrf.mxu3 }
 0x299   : > { %v2434_v20 = vadd.f32 %v2433_v11, %v2403_v41  ;;  %v2128_v30 = vadd.f32 %v2127_v2, %v2014_v48  ;;  %v1823_v53 = vpop.f32.mrf.mxu1 }
 0x29a   : > { %v1824_v12 = vadd.f32 %v1823_v53, %v3862_v1 }
 0x29b   : > { %v2241_v10 = vadd.f32 %v2240_v5, %v2128_v30 }
 0x29c   : > { %v1883_v38 = vadd.f32 %v1824_v12, %v3860_v51 }
 0x29d   : > { %v2302_v44 = vadd.f32 %v2241_v10, %v1882_v37 }
 0x29e   : > { %v2243_v52 = vpop.f32.mrf.mxu0 }
 0x29f   : > { %2334 = vst [vmem:[%s4004_s15 + $0x88] sm:$0xff] %v2302_v44  ;;  %v2365_v55 = vadd.f32 %v2364_v58, %v2302_v44  ;;  %v2404_v8 = vmul.f32 %v2302_v44, %v2302_v44  ;;  %v4551_v44 = vld [vmem:[#allocation42_spill] sm:$0xff] }
 0x2a0   : > { %v2017_v50 = vpop.f32.mrf.mxu2  ;;  %v2130_v36 = vpop.f32.mrf.mxu3 }
 0x2a1   : > { %v2435_v29 = vadd.f32 %v2434_v20, %v2404_v8  ;;  %v2131_v15 = vadd.f32 %v2130_v36, %v2017_v50  ;;  %v1826_v59 = vpop.f32.mrf.mxu1  ;;  %v4552_v8 = vld [vmem:[#allocation39_spill] sm:$0xff] }
 0x2a2   : > { %v1827_v49 = vadd.f32 %v1826_v59, %v3871_v33 }
 0x2a3   : > { %v2244_v18 = vadd.f32 %v2243_v52, %v2131_v15 }
 0x2a4   : > { %v1884_v31 = vadd.f32 %v1827_v49, %v3869_v43 }
 0x2a5   : > { %v2303_v1 = vadd.f32 %v2244_v18, %v1883_v38 }
 0x2a6   : > { %v2246_v45 = vpop.f32.mrf.mxu0 }
 0x2a7   : > { %2335 = vst [vmem:[%s4004_s15 + $0x90] sm:$0xff] %v2303_v1  ;;  %v2366_v51 = vadd.f32 %v2365_v55, %v2303_v1  ;;  %v2405_v47 = vmul.f32 %v2303_v1, %v2303_v1  ;;  %v4553_v1 = vld [vmem:[#allocation10_spill] sm:$0xff] }
 0x2a8   : > { %v2020_v9 = vpop.f32.mrf.mxu2  ;;  %v2133_v19 = vpop.f32.mrf.mxu3 }
 0x2a9   : > { %v2436_v39 = vadd.f32 %v2435_v29, %v2405_v47  ;;  %v2134_v57 = vadd.f32 %v2133_v19, %v2020_v9  ;;  %v1829_v34 = vpop.f32.mrf.mxu1  ;;  %v4554_v47 = vld [vmem:[#allocation44_spill] sm:$0xff] }
 0x2aa   : > { %v1830_v46 = vadd.f32 %v1829_v34, %v3880_v28 }
 0x2ab   : > { %v2247_v61 = vadd.f32 %v2246_v45, %v2134_v57 }
 0x2ac   : > { %v1885_v26 = vadd.f32 %v1830_v46, %v3878_v3 }
 0x2ad   : > { %v2304_v33 = vadd.f32 %v2247_v61, %v1884_v31 }
 0x2ae   : > { %v2249_v16 = vpop.f32.mrf.mxu0 }
 0x2af   : > { %2336 = vst [vmem:[%s4004_s15 + $0x98] sm:$0xff] %v2304_v33  ;;  %v2367_v43 = vadd.f32 %v2366_v51, %v2304_v33  ;;  %v2406_v32 = vmul.f32 %v2304_v33, %v2304_v33 }
 0x2b0   : > { %v2023_v40 = vpop.f32.mrf.mxu2  ;;  %v2136_v13 = vpop.f32.mrf.mxu3 }
 0x2b1   : > { %v2437_v24 = vadd.f32 %v2436_v39, %v2406_v32  ;;  %v2137_v35 = vadd.f32 %v2136_v13, %v2023_v40  ;;  %v1832_v63 = vpop.f32.mrf.mxu1  ;;  %v4555_v40 = vld [vmem:[#allocation43_spill] sm:$0xff] }
 0x2b2   : > { %v1833_v0 = vadd.f32 %v1832_v63, %v3889_v22 }
 0x2b3   : > { %v2250_v6 = vadd.f32 %v2249_v16, %v2137_v35 }
 0x2b4   : > { %v1886_v11 = vadd.f32 %v1833_v0, %v3887_v62 }
 0x2b5   : > { %v2305_v28 = vadd.f32 %v2250_v6, %v1885_v26 }
 0x2b6   : > { %v2252_v17 = vpop.f32.mrf.mxu0 }
 0x2b7   : > { %2337 = vst [vmem:[%s4004_s15 + $0xa0] sm:$0xff] %v2305_v28  ;;  %v2368_v3 = vadd.f32 %v2367_v43, %v2305_v28  ;;  %v2407_v56 = vmul.f32 %v2305_v28, %v2305_v28 }
 0x2b8   : > { %v2026_v54 = vpop.f32.mrf.mxu2  ;;  %v2139_v60 = vpop.f32.mrf.mxu3 }
 0x2b9   : > { %v2438_v37 = vadd.f32 %v2437_v24, %v2407_v56  ;;  %v2140_v27 = vadd.f32 %v2139_v60, %v2026_v54  ;;  %v1835_v5 = vpop.f32.mrf.mxu1  ;;  %v4556_v60 = vld [vmem:[#allocation46_spill] sm:$0xff] }
 0x2ba   : > { %v1836_v58 = vadd.f32 %v1835_v5, %v3898_v7 }
 0x2bb   : > { %v2253_v41 = vadd.f32 %v2252_v17, %v2140_v27 }
 0x2bc   : > { %v1887_v48 = vadd.f32 %v1836_v58, %v3896_v14 }
 0x2bd   : > { %v2306_v22 = vadd.f32 %v2253_v41, %v1886_v11 }
 0x2be   : > { %v2255_v2 = vpop.f32.mrf.mxu0 }
 0x2bf   : > { %2338 = vst [vmem:[%s4004_s15 + $0xa8] sm:$0xff] %v2306_v22  ;;  %v2369_v62 = vadd.f32 %v2368_v3, %v2306_v22  ;;  %v2408_v20 = vmul.f32 %v2306_v22, %v2306_v22 }
 0x2c0   : > { %v2029_v30 = vpop.f32.mrf.mxu2  ;;  %v2142_v53 = vpop.f32.mrf.mxu3 }
 0x2c1   : > { %v2439_v12 = vadd.f32 %v2438_v37, %v2408_v20  ;;  %v2143_v10 = vadd.f32 %v2142_v53, %v2029_v30  ;;  %v1838_v38 = vpop.f32.mrf.mxu1  ;;  %v4557_v53 = vld [vmem:[#allocation13_spill] sm:$0xff] }
 0x2c2   : > { %v1839_v52 = vadd.f32 %v1838_v38, %v4551_v44 }
 0x2c3   : > { %v2256_v55 = vadd.f32 %v2255_v2, %v2143_v10 }
 0x2c4   : > { %v1888_v50 = vadd.f32 %v1839_v52, %v4552_v8 }
 0x2c5   : > { %v2307_v7 = vadd.f32 %v2256_v55, %v1887_v48 }
 0x2c6   : > { %v2258_v36 = vpop.f32.mrf.mxu0 }
 0x2c7   : > { %2339 = vst [vmem:[%s4004_s15 + $0xb0] sm:$0xff] %v2307_v7  ;;  %v2370_v14 = vadd.f32 %v2369_v62, %v2307_v7  ;;  %v2409_v29 = vmul.f32 %v2307_v7, %v2307_v7 }
 0x2c8   : > { %v2032_v15 = vpop.f32.mrf.mxu2  ;;  %v2145_v59 = vpop.f32.mrf.mxu3 }
 0x2c9   : > { %v2440_v49 = vadd.f32 %v2439_v12, %v2409_v29  ;;  %v2146_v18 = vadd.f32 %v2145_v59, %v2032_v15  ;;  %v1841_v31 = vpop.f32.mrf.mxu1  ;;  %v4558_v29 = vld [vmem:[#allocation45_spill] sm:$0xff] }
 0x2ca   : > { %v1842_v45 = vadd.f32 %v1841_v31, %v4553_v1 }
 0x2cb   : > { %v2259_v51 = vadd.f32 %v2258_v36, %v2146_v18 }
 0x2cc   : > { %v1889_v9 = vadd.f32 %v1842_v45, %v4554_v47 }
 0x2cd   : > { %v2308_v19 = vadd.f32 %v2259_v51, %v1888_v50 }
 0x2ce   : > { %v2261_v39 = vpop.f32.mrf.mxu0 }
 0x2cf   : > { %2340 = vst [vmem:[%s4004_s15 + $0xb8] sm:$0xff] %v2308_v19  ;;  %v2371_v57 = vadd.f32 %v2370_v14, %v2308_v19  ;;  %v2410_v34 = vmul.f32 %v2308_v19, %v2308_v19 }
 0x2d0   : > { %v2035_v46 = vpop.f32.mrf.mxu2  ;;  %v2148_v61 = vpop.f32.mrf.mxu3 }
 0x2d1   : > { %v2441_v26 = vadd.f32 %v2440_v49, %v2410_v34  ;;  %v2149_v33 = vadd.f32 %v2148_v61, %v2035_v46  ;;  %v1844_v16 = vpop.f32.mrf.mxu1 }
 0x2d2   : > { %v1845_v43 = vadd.f32 %v1844_v16, %v3925_v23 }
 0x2d3   : > { %v2262_v32 = vadd.f32 %v2261_v39, %v2149_v33  ;;  %v4559_v39 = vld [vmem:[#allocation50_spill] sm:$0xff] }
 0x2d4   : > { %v1890_v13 = vadd.f32 %v1845_v43, %v4555_v40  ;;  %v4560_v40 = vld [vmem:[#allocation48_spill] sm:$0xff] }
 0x2d5   : > { %v2309_v24 = vadd.f32 %v2262_v32, %v1889_v9 }
 0x2d6   : > { %v2264_v35 = vpop.f32.mrf.mxu0 }
 0x2d7   : > { %2341 = vst [vmem:[%s4004_s15 + $0xc0] sm:$0xff] %v2309_v24  ;;  %v2372_v63 = vadd.f32 %v2371_v57, %v2309_v24  ;;  %v2411_v0 = vmul.f32 %v2309_v24, %v2309_v24 }
 0x2d8   : > { %v2038_v6 = vpop.f32.mrf.mxu2  ;;  %v2151_v11 = vpop.f32.mrf.mxu3 }
 0x2d9   : > { %v2442_v28 = vadd.f32 %v2441_v26, %v2411_v0  ;;  %v2152_v17 = vadd.f32 %v2151_v11, %v2038_v6  ;;  %v1847_v3 = vpop.f32.mrf.mxu1 }
 0x2da   : > { %v1848_v56 = vadd.f32 %v1847_v3, %v3934_v4 }
 0x2db   : > { %v2265_v54 = vadd.f32 %v2264_v35, %v2152_v17  ;;  %v4561_v35 = vld [vmem:[#allocation16_spill] sm:$0xff] }
 0x2dc   : > { %v1891_v37 = vadd.f32 %v1848_v56, %v4556_v60  ;;  %v4562_v60 = vld [vmem:[#allocation20_spill] sm:$0xff] }
 0x2dd   : > { %v2310_v23 = vadd.f32 %v2265_v54, %v1890_v13 }
 0x2de   : > { %v2267_v27 = vpop.f32.mrf.mxu0 }
 0x2df   : > { %2342 = vst [vmem:[%s4004_s15 + $0xc8] sm:$0xff] %v2310_v23  ;;  %v2373_v5 = vadd.f32 %v2372_v63, %v2310_v23  ;;  %v2412_v58 = vmul.f32 %v2310_v23, %v2310_v23 }
 0x2e0   : > { %v2041_v41 = vpop.f32.mrf.mxu2  ;;  %v2154_v48 = vpop.f32.mrf.mxu3 }
 0x2e1   : > { %v2443_v22 = vadd.f32 %v2442_v28, %v2412_v58  ;;  %v2155_v2 = vadd.f32 %v2154_v48, %v2041_v41  ;;  %v1850_v62 = vpop.f32.mrf.mxu1 }
 0x2e2   : > { %v1851_v20 = vadd.f32 %v1850_v62, %v3943_v25 }
 0x2e3   : > { %v2268_v30 = vadd.f32 %v2267_v27, %v2155_v2  ;;  %v4563_v27 = vld [vmem:[#allocation54_spill] sm:$0xff] }
 0x2e4   : > { %v1892_v12 = vadd.f32 %v1851_v20, %v4557_v53 }
 0x2e5   : > { %v2311_v4 = vadd.f32 %v2268_v30, %v1891_v37 }
 0x2e6   : > { %v2270_v10 = vpop.f32.mrf.mxu0 }
 0x2e7   : > { %2343 = vst [vmem:[%s4004_s15 + $0xd0] sm:$0xff] %v2311_v4  ;;  %v2374_v38 = vadd.f32 %v2373_v5, %v2311_v4  ;;  %v2413_v44 = vmul.f32 %v2311_v4, %v2311_v4 }
 0x2e8   : > { %v2044_v52 = vpop.f32.mrf.mxu2  ;;  %v2157_v55 = vpop.f32.mrf.mxu3 }
 0x2e9   : > { %v2444_v8 = vadd.f32 %v2443_v22, %v2413_v44  ;;  %v2158_v50 = vadd.f32 %v2157_v55, %v2044_v52  ;;  %v1853_v7 = vpop.f32.mrf.mxu1 }
 0x2ea   : > { %v1854_v36 = vadd.f32 %v1853_v7, %v3952_v42 }
 0x2eb   : > { %v2271_v14 = vadd.f32 %v2270_v10, %v2158_v50 }
 0x2ec   : > { %v1893_v15 = vadd.f32 %v1854_v36, %v4558_v29 }
 0x2ed   : > { %v2312_v25 = vadd.f32 %v2271_v14, %v1892_v12 }
 0x2ee   : > { %v2273_v59 = vpop.f32.mrf.mxu0 }
 0x2ef   : > { %2344 = vst [vmem:[%s4004_s15 + $0xd8] sm:$0xff] %v2312_v25  ;;  %v2375_v49 = vadd.f32 %v2374_v38, %v2312_v25  ;;  %v2414_v18 = vmul.f32 %v2312_v25, %v2312_v25 }
 0x2f0   : > { %v2047_v31 = vpop.f32.mrf.mxu2  ;;  %v2160_v1 = vpop.f32.mrf.mxu3 }
 0x2f1   : > { %v2445_v45 = vadd.f32 %v2444_v8, %v2414_v18  ;;  %v2161_v51 = vadd.f32 %v2160_v1, %v2047_v31  ;;  %v1856_v47 = vpop.f32.mrf.mxu1 }
 0x2f2   : > { %v1857_v9 = vadd.f32 %v1856_v47, %v3961_v21 }
 0x2f3   : > { %v2274_v19 = vadd.f32 %v2273_v59, %v2161_v51 }
 0x2f4   : > { %v1894_v57 = vadd.f32 %v1857_v9, %v4559_v39 }
 0x2f5   : > { %v2313_v42 = vadd.f32 %v2274_v19, %v1893_v15 }
 0x2f6   : > { %v2276_v34 = vpop.f32.mrf.mxu0 }
 0x2f7   : > { %2345 = vst [vmem:[%s4004_s15 + $0xe0] sm:$0xff] %v2313_v42  ;;  %v2376_v46 = vadd.f32 %v2375_v49, %v2313_v42  ;;  %v2415_v61 = vmul.f32 %v2313_v42, %v2313_v42 }
 0x2f8   : > { %v2050_v26 = vpop.f32.mrf.mxu2  ;;  %v2163_v33 = vpop.f32.mrf.mxu3 }
 0x2f9   : > { %v2446_v16 = vadd.f32 %v2445_v45, %v2415_v61  ;;  %v2164_v43 = vadd.f32 %v2163_v33, %v2050_v26  ;;  %v1859_v32 = vpop.f32.mrf.mxu1 }
 0x2fa   : > { %v1860_v13 = vadd.f32 %v1859_v32, %v4560_v40 }
 0x2fb   : > { %v2277_v24 = vadd.f32 %v2276_v34, %v2164_v43 }
 0x2fc   : > { %v1895_v21 = vadd.f32 %v1860_v13, %v4561_v35 }
 0x2fd   : > { %v2314_v63 = vadd.f32 %v2277_v24, %v1894_v57 }
 0x2fe   : > { %v2279_v0 = vpop.f32.mrf.mxu0 }
 0x2ff   : > { %2346 = vst [vmem:[%s4004_s15 + $0xe8] sm:$0xff] %v2314_v63  ;;  %v2377_v6 = vadd.f32 %v2376_v46, %v2314_v63  ;;  %v2416_v11 = vmul.f32 %v2314_v63, %v2314_v63 }
 0x300   : > { %v2053_v28 = vpop.f32.mrf.mxu2  ;;  %v2166_v17 = vpop.f32.mrf.mxu3 }
 0x301   : > { %v2447_v3 = vadd.f32 %v2446_v16, %v2416_v11  ;;  %v2167_v56 = vadd.f32 %v2166_v17, %v2053_v28  ;;  %v1862_v54 = vpop.f32.mrf.mxu1 }
 0x302   : > { %v1863_v37 = vadd.f32 %v1862_v54, %v4562_v60 }
 0x303   : > { %v2280_v23 = vadd.f32 %v2279_v0, %v2167_v56 }
 0x304   : > { %v1896_v5 = vadd.f32 %v1863_v37, %v4563_v27 }
 0x305   : > { %v2315_v58 = vadd.f32 %v2280_v23, %v1895_v21 }
 0x306   : > { %v2282_v22 = vpop.f32.mrf.mxu0 }
 0x307   : > { %2347 = vst [vmem:[%s4004_s15 + $0xf0] sm:$0xff] %v2315_v58  ;;  %v2378_v41 = vadd.f32 %v2377_v6, %v2315_v58  ;;  %v2417_v48 = vmul.f32 %v2315_v58, %v2315_v58 }
 0x308   : > { %v2056_v2 = vpop.f32.mrf.mxu2  ;;  %v2169_v62 = vpop.f32.mrf.mxu3 }
 0x309   : > { %v2448_v20 = vadd.f32 %v2447_v3, %v2417_v48  ;;  %v2170_v30 = vadd.f32 %v2169_v62, %v2056_v2 }
 0x30b   : > { %v2283_v53 = vadd.f32 %v2282_v22, %v2170_v30 }
 0x30d   : > { %v2316_v12 = vadd.f32 %v2283_v53, %v1896_v5 }
 0x30f   : > { %2348 = vst [vmem:[%s4004_s15 + $0xf8] sm:$0xff] %v2316_v12  ;;  %v2379_v4 = vadd.f32 %v2378_v41, %v2316_v12  ;;  %v2418_v10 = vmul.f32 %v2316_v12, %v2316_v12 }
 0x311   : > { %v2380_v38 = vrot.slane %v2379_v4, 4  ;;  %v2449_v44 = vadd.f32 %v2448_v20, %v2418_v10 }
 0x313   : > { %v2381_v52 = vadd.f32 %v2380_v38, %v2379_v4  ;;  %v2450_v55 = vrot.slane %v2449_v44, 4 }
 0x315   : > { %v2382_v8 = vrot.slane %v2381_v52, 2  ;;  %v2451_v50 = vadd.f32 %v2450_v55, %v2449_v44 }
 0x317   : > { %v2383_v7 = vadd.f32 %v2382_v8, %v2381_v52  ;;  %v2452_v36 = vrot.slane %v2451_v50, 2 }
 0x319   : > { %v2384_v14 = vrot.slane %v2383_v7, 1  ;;  %v2453_v29 = vadd.f32 %v2452_v36, %v2451_v50 }
 0x31b   : > { %v2385_v15 = vadd.f32 %v2384_v14, %v2383_v7  ;;  %v2454_v25 = vrot.slane %v2453_v29, 1 }
 0x31d   : > { %2386 = vst [vmem:[%s247_s25] sm:$0x1] %v2385_v15  ;;  %v2455_v59 = vadd.f32 %v2454_v25, %v2453_v29 }
 0x31f   : > { %2456 = vst [vmem:[%s247_s25 + $0x1] sm:$0x1] %v2455_v59 }
 0x320 PF: > { %p16_p4 = scmp.ge.s32.totalorder %s2857_s27, 4   ;;  %s4564_s15 = smov %s2775_s16 }
 0x321   : > { %s4565_s16 = smov %s2779_s17  ;;  %s4566_s17 = smov %s2870_s6 }
 0x322   : > { %s4567_s18 = smov %s2857_s27  ;;  %18 = sbr.rel (!%p16_p4) target bundleno = 4 (0x4), region = 91 }
 0x327   :  { %2492 = vsyncpa [#allocation4], 1 }
 0x328   :  { %2494 = vsyncpa [#allocation4 + $0x1], 1 }
 0x329   :  { %2495 = vsyncpa [#allocation6], 1 }

</bundles_post_ra>
